<compile_context>
chip_gen: v5e
topology: v5e:2x2
jax: 0.10.0
libtpu: 0.0.40
codegen_flags: <defaults>
</compile_context>

<pallas_src>
import functools

import numpy as np
import jax
import jax.numpy as jnp
from jax import lax
from jax.experimental import pallas as pl
from jax.experimental.pallas import tpu as pltpu

_SQRT2 = float(np.sqrt(2.0))


# ------------------------------ Pallas kernel ------------------------------ #

def _surface_embed_kernel(lens_ref, s_lm_ref, s_tt_ref, s_tv_ref,
                          a_lm_ref, a_tt_ref, const_ref, out_ref,
                          *, rbf_eps, ln_eps):
    """Fused per-batch-element embedding.

    lens_ref : SMEM (B,) int32          -> number of valid surface points S_b
    s_lm_ref : VMEM (1, Smax) f32       -> surface log-moneyness (zero padded)
    s_tt_ref : VMEM (1, Smax) f32       -> surface time-to-maturity
    s_tv_ref : VMEM (1, Smax) f32       -> surface total variance
    a_lm_ref : VMEM (Pmax, 1) f32       -> all-point (surface+query) log-moneyness
    a_tt_ref : VMEM (Pmax, 1) f32       -> all-point time-to-maturity
    const_ref: VMEM (10, K) f32         -> packed constants:
               rows 0,1 : RBF exponent coeffs (a_k, b_k)
               rows 2,3 : surface LayerNorm weight / bias
               rows 4,5 : query   LayerNorm weight / bias
               rows 6..9: PE inv_div / use_lm / use_sin / sqrt(2)*active
    out_ref  : VMEM (Pmax, K) f32
    """
    b = pl.program_id(0)
    n_surf = lens_ref[b]

    s_lm = s_lm_ref[...]                       # (1, Smax)
    s_tt = s_tt_ref[...]                       # (1, Smax)
    tv = s_tv_ref[...]                         # (1, Smax)
    a_lm = a_lm_ref[...]                       # (Pmax, 1)
    a_tt = a_tt_ref[...]                       # (Pmax, 1)
    const = const_ref[...]                     # (10, K)

    smax = s_lm.shape[-1]
    pmax = a_lm.shape[0]
    k_dim = const.shape[-1]

    # Mask for padded surface points (lane axis).
    s_mask = (lax.broadcasted_iota(jnp.int32, (1, smax), 1) < n_surf
              ).astype(jnp.float32)            # (1, Smax)
    tv_m = tv * s_mask

    # Squared coordinate differences, shared across all d_embedding kernels.
    dx = a_lm - s_lm                           # (Pmax, Smax)
    dt = a_tt - s_tt
    dx2 = dx * dx
    dt2 = dt * dt

    # Elliptical RBF kernels -> embedding columns.  K is small & static, so the
    # loop is fully unrolled; each iteration is a few (Pmax, Smax) vector ops,
    # one EUP exp and two lane reductions.
    lane_ids = lax.broadcasted_iota(jnp.int32, (1, k_dim), 1)
    embedded = jnp.zeros((pmax, k_dim), jnp.float32)
    for k in range(k_dim):
        a_k = const[0:1, k:k + 1]              # (1, 1)
        b_k = const[1:2, k:k + 1]              # (1, 1)
        e = jnp.exp(-(dx2 * a_k + dt2 * b_k)) + rbf_eps     # (Pmax, Smax)
        w = jnp.sum(e * tv_m, axis=1, keepdims=True)        # (Pmax, 1)
        n = jnp.sum(e * s_mask, axis=1, keepdims=True)      # (Pmax, 1)
        col = w / n                                          # (Pmax, 1)
        embedded = embedded + col * (lane_ids == k).astype(jnp.float32)

    # LayerNorm over the embedding dim; params selected per row
    # (rows < n_surf use the surface LN, the rest use the query LN).
    mean = jnp.mean(embedded, axis=1, keepdims=True)
    cent = embedded - mean
    var = jnp.mean(cent * cent, axis=1, keepdims=True)
    normed = cent * lax.rsqrt(var + ln_eps)

    row_ids = lax.broadcasted_iota(jnp.int32, (pmax, 1), 0)
    is_surf = (row_ids < n_surf).astype(jnp.float32)        # (Pmax, 1)
    ln_w = is_surf * const[2:3, :] + (1.0 - is_surf) * const[4:5, :]
    ln_b = is_surf * const[3:4, :] + (1.0 - is_surf) * const[5:6, :]
    ln_out = normed * ln_w + ln_b

    # Sinusoidal positional embedding (column selectors precomputed on host).
    inv_div = const[6:7, :]                    # (1, K)
    use_lm = const[7:8, :]
    use_sin = const[8:9, :]
    pe_mult = const[9:10, :]                   # sqrt(2) * active (0 if disabled)
    coord = a_lm * use_lm + a_tt * (1.0 - use_lm)           # (Pmax, K)
    arg = coord * inv_div
    pe = jnp.sin(arg) * use_sin + jnp.cos(arg) * (1.0 - use_sin)

    out_ref[...] = ln_out + pe * pe_mult


def _build_pallas_call(batch, smax, pmax, k_dim, rbf_eps, ln_eps):
    kernel = functools.partial(_surface_embed_kernel,
                               rbf_eps=rbf_eps, ln_eps=ln_eps)
    return pl.pallas_call(
        kernel,
        out_shape=jax.ShapeDtypeStruct((batch, pmax, k_dim), jnp.float32),
        grid_spec=pltpu.PrefetchScalarGridSpec(
            num_scalar_prefetch=1,             # lens (B,) int32 -> SMEM
            grid=(batch,),
            in_specs=[
                pl.BlockSpec((None, 1, smax), lambda b, lens: (b, 0, 0)),  # surf lm
                pl.BlockSpec((None, 1, smax), lambda b, lens: (b, 0, 0)),  # surf ttm
                pl.BlockSpec((None, 1, smax), lambda b, lens: (b, 0, 0)),  # surf tv
                pl.BlockSpec((None, pmax, 1), lambda b, lens: (b, 0, 0)),  # all lm
                pl.BlockSpec((None, pmax, 1), lambda b, lens: (b, 0, 0)),  # all ttm
                pl.BlockSpec((10, k_dim), lambda b, lens: (0, 0)),         # const table
            ],
            out_specs=pl.BlockSpec((None, pmax, k_dim), lambda b, lens: (b, 0, 0)),
        ),
        compiler_params=pltpu.CompilerParams(
            dimension_semantics=("arbitrary",)),
    )


def _round_up(x, m):
    return ((x + m - 1) // m) * m


@functools.partial(jax.jit, static_argnames=("rbf_eps", "ln_eps"))
def _forward_impl(in_lm, in_tt, in_tv, q_lm, q_tt, const, *, rbf_eps, ln_eps):
    """Pad ragged inputs, run the fused kernel once, split the outputs."""
    batch = len(in_lm)
    s_sizes = [int(x.shape[0]) for x in in_lm]
    q_sizes = [int(x.shape[0]) for x in q_lm]
    p_sizes = [s + q for s, q in zip(s_sizes, q_sizes)]
    smax = max(128, _round_up(max(s_sizes), 128))   # lane-dense surface axis
    pmax = max(8, _round_up(max(p_sizes), 8))       # sublane-aligned point axis
    k_dim = const.shape[-1]

    def pad_to(x, n):
        x = jnp.asarray(x, jnp.float32)
        return jnp.pad(x, (0, n - x.shape[0]))

    surf_lm = jnp.stack([pad_to(x, smax) for x in in_lm])[:, None, :]   # (B,1,Smax)
    surf_tt = jnp.stack([pad_to(x, smax) for x in in_tt])[:, None, :]
    surf_tv = jnp.stack([pad_to(x, smax) for x in in_tv])[:, None, :]
    all_lm = jnp.stack([pad_to(jnp.concatenate(
        [jnp.asarray(a, jnp.float32), jnp.asarray(b, jnp.float32)]), pmax)
        for a, b in zip(in_lm, q_lm)])[:, :, None]                      # (B,Pmax,1)
    all_tt = jnp.stack([pad_to(jnp.concatenate(
        [jnp.asarray(a, jnp.float32), jnp.asarray(b, jnp.float32)]), pmax)
        for a, b in zip(in_tt, q_tt)])[:, :, None]
    lens = jnp.array(s_sizes, dtype=jnp.int32)

    out = _build_pallas_call(batch, smax, pmax, k_dim, rbf_eps, ln_eps)(
        lens, surf_lm, surf_tt, surf_tv, all_lm, all_tt, const)

    surf_out = [out[i, :s_sizes[i], :] for i in range(batch)]
    query_out = [out[i, s_sizes[i]:s_sizes[i] + q_sizes[i], :] for i in range(batch)]
    return surf_out, query_out


# ---------------------------- Module equivalent ----------------------------- #

class SurfaceContinuousKernelPositionalEmbeddingPallas:
    """JAX/Pallas port of SurfaceContinuousKernelPositionalEmbedding (forward)."""

    def __init__(self, d_embedding, remove_kernel=False,
                 remove_positional_embedding=False):
        self.d_embedding = int(d_embedding)
        self.rbf_eps = 1e-10                     # EllipticalRBFKernel epsilon
        self.ln_eps = 1e-5                       # PyTorch LayerNorm default

        d = self.d_embedding
        # Parameters with PyTorch default init.
        self.rbf_log_scale = jnp.zeros((d, 2), jnp.float32)   # per-kernel log_scale
        self.ln_surf_weight = jnp.ones((d,), jnp.float32)
        self.ln_surf_bias = jnp.zeros((d,), jnp.float32)
        self.ln_query_weight = jnp.ones((d,), jnp.float32)
        self.ln_query_bias = jnp.zeros((d,), jnp.float32)
        self.pe_log_scale = jnp.log(jnp.float32(10000.0))

        # Fixed bandwidths: erfinv(k/(d+1)) * sqrt(2), k = 1..d.
        kvec = jnp.arange(1, d + 1, dtype=jnp.float32)
        bandwidths = jax.scipy.special.erfinv(kvec / float(d + 1)) * _SQRT2
        if remove_kernel:
            bandwidths = jnp.full((d,), self.rbf_eps, jnp.float32)
        self.bandwidths = bandwidths

        # Pack every per-column constant into one (10, d) f32 table.
        scale = jnp.exp(self.rbf_log_scale)                  # (d, 2)
        trace = jnp.sum(scale, axis=-1)                      # (d,)
        denom = trace * 2.0 * bandwidths * bandwidths        # (d,)
        coef_a = scale[:, 0] / denom
        coef_b = scale[:, 1] / denom

        j = jnp.arange(d)
        group = (4 * (j // 4)).astype(jnp.float32)
        inv_div = jnp.exp(-self.pe_log_scale * group / float(d))
        use_lm = ((j % 4) < 2).astype(jnp.float32)           # cols 4i,4i+1 use lm
        use_sin = ((j % 2) == 0).astype(jnp.float32)         # even cols use sin
        active = (j < 4 * (d // 4)).astype(jnp.float32)      # leftover cols stay 0
        if remove_positional_embedding:
            pe_mult = jnp.zeros((d,), jnp.float32)
        else:
            pe_mult = active * _SQRT2

        self.const = jnp.stack(
            [coef_a, coef_b,
             self.ln_surf_weight, self.ln_surf_bias,
             self.ln_query_weight, self.ln_query_bias,
             inv_div, use_lm, use_sin, pe_mult], axis=0).astype(jnp.float32)

    def __call__(self, input_surface_batch, query_points_batch):
        in_lm = list(input_surface_batch["Log Moneyness"])
        in_tt = list(input_surface_batch["Time to Maturity"])
        in_tv = list(input_surface_batch["Total Variance"])
        q_lm = list(query_points_batch["Log Moneyness"])
        q_tt = list(query_points_batch["Time to Maturity"])
        surf_out, query_out = _forward_impl(
            in_lm, in_tt, in_tv, q_lm, q_tt, self.const,
            rbf_eps=self.rbf_eps, ln_eps=self.ln_eps)
        return {"Input Surface": surf_out, "Query Points": query_out}


# -------------------------------- Reference --------------------------------- #

def _reference_forward(d_embedding, input_surface_batch, query_points_batch,
                       remove_kernel=False, remove_positional_embedding=False,
                       rbf_epsilon=1e-10):
    """Pure-JAX transcription of the PyTorch forward (for correctness check)."""
    kvec = jnp.arange(1, d_embedding + 1, dtype=jnp.float32)
    bandwidths = jax.scipy.special.erfinv(kvec / float(d_embedding + 1)) * _SQRT2
    if remove_kernel:
        bandwidths = jnp.full((d_embedding,), rbf_epsilon, jnp.float32)
    log_scale = jnp.zeros((d_embedding, 2), jnp.float32)
    pe_log_scale = jnp.log(jnp.float32(10000.0))

    def layer_norm(x, eps=1e-5):
        m = jnp.mean(x, axis=-1, keepdims=True)
        v = jnp.mean((x - m) ** 2, axis=-1, keepdims=True)
        return (x - m) / jnp.sqrt(v + eps)

    def positional_embedding(coords):
        pe = jnp.zeros((coords.shape[0], d_embedding), jnp.float32)
        if not remove_positional_embedding:
            for i in range(d_embedding // 4):
                div = jnp.exp(pe_log_scale) ** (4.0 * i / d_embedding)
                pe = pe.at[:, 4 * i].set(jnp.sin(coords[:, 0] / div))
                pe = pe.at[:, 4 * i + 1].set(jnp.cos(coords[:, 0] / div))
                pe = pe.at[:, 4 * i + 2].set(jnp.sin(coords[:, 1] / div))
                pe = pe.at[:, 4 * i + 3].set(jnp.cos(coords[:, 1] / div))
        return pe

    surf_out, query_out = [], []
    batch = len(input_surface_batch["Log Moneyness"])
    for i in range(batch):
        sc = jnp.stack([input_surface_batch["Log Moneyness"][i],
                        input_surface_batch["Time to Maturity"][i]], axis=-1)
        qc = jnp.stack([query_points_batch["Log Moneyness"][i],
                        query_points_batch["Time to Maturity"][i]], axis=-1)
        tv = input_surface_batch["Total Variance"][i]
        ac = jnp.concatenate([sc, qc], axis=0)
        diff = ac[:, None, :] - sc[None, :, :]               # (P, S, 2)
        cols = []
        for k in range(d_embedding):
            scale = jnp.exp(log_scale[k])
            sd = diff ** 2 * scale
            nd = jnp.sum(sd, axis=-1) / jnp.sum(scale)
            kv = jnp.exp(-nd / (2.0 * bandwidths[k] ** 2)) + rbf_epsilon
            cols.append(jnp.sum(kv * tv[None, :], axis=1) / jnp.sum(kv, axis=1))
        emb = jnp.stack(cols, axis=-1)                       # (P, d)
        n_s = sc.shape[0]
        es = layer_norm(emb[:n_s])
        eq = layer_norm(emb[n_s:])
        surf_out.append(es + positional_embedding(sc) * _SQRT2)
        query_out.append(eq + positional_embedding(qc) * _SQRT2)
    return surf_out, query_out


# ----------------------------------- Main ------------------------------------ #

if __name__ == "__main__":
    base_key = jax.random.PRNGKey(0)
    d_embedding = 16
    surf_sizes = [24, 18]       # ragged surface point counts
    query_sizes = [8, 10]       # ragged query point counts

    _counter = iter(range(10_000))   # never exhausted

    def rnd(shape, scale=1.0):
        k = jax.random.fold_in(base_key, next(_counter))
        return scale * jax.random.normal(k, shape, dtype=jnp.float32)

    input_surface_batch = {
        "Log Moneyness": [rnd((s,), 0.3) for s in surf_sizes],
        "Time to Maturity": [jnp.abs(rnd((s,), 0.5)) + 0.05 for s in surf_sizes],
        "Total Variance": [jnp.abs(rnd((s,), 0.1)) + 0.01 for s in surf_sizes],
    }
    query_points_batch = {
        "Log Moneyness": [rnd((s,), 0.3) for s in query_sizes],
        "Time to Maturity": [jnp.abs(rnd((s,), 0.5)) + 0.05 for s in query_sizes],
    }

    model = SurfaceContinuousKernelPositionalEmbeddingPallas(d_embedding)
    out = model(input_surface_batch, query_points_batch)
    jax.block_until_ready(out["Input Surface"][0])
    jax.block_until_ready(out["Query Points"][-1])

    # Correctness check against a pure-JAX transcription of the PyTorch module.
    ref_in, ref_q = _reference_forward(
        d_embedding, input_surface_batch, query_points_batch)
    for i in range(len(surf_sizes)):
        assert out["Input Surface"][i].shape == (surf_sizes[i], d_embedding)
        assert out["Query Points"][i].shape == (query_sizes[i], d_embedding)
        assert bool(jnp.allclose(out["Input Surface"][i], ref_in[i],
                                 atol=1e-3, rtol=1e-3)), \
            f"Input Surface embedding mismatch (batch {i})"
        assert bool(jnp.allclose(out["Query Points"][i], ref_q[i],
                                 atol=1e-3, rtol=1e-3)), \
            f"Query Points embedding mismatch (batch {i})"

    print("KERNEL_OK")
</pallas_src>

<mosaic_0001>
module attributes {stable_mosaic.version = 11 : i64} {
  func.func @_surface_embed_kernel(%arg0: i32, %arg1: memref<2xi32, #tpu.memory_space<smem>>, %arg2: memref<1x1x128xf32, #tpu.memory_space<vmem>>, %arg3: memref<1x1x128xf32, #tpu.memory_space<vmem>>, %arg4: memref<1x1x128xf32, #tpu.memory_space<vmem>>, %arg5: memref<1x32x1xf32, #tpu.memory_space<vmem>>, %arg6: memref<1x32x1xf32, #tpu.memory_space<vmem>>, %arg7: memref<10x16xf32, #tpu.memory_space<vmem>>, %arg8: memref<1x32x16xf32, #tpu.memory_space<vmem>>) attributes {dimension_semantics = [#tpu.dimension_semantics<arbitrary>], iteration_bounds = array<i64: 2>, scalar_prefetch = 1 : i64, scratch_operands = 0 : i64, tpu.core_type = #tpu.core_type<tc>, window_params = [{transform_indices = @transform_0, window_bounds = array<i64: 1, 1, 128>}, {transform_indices = @transform_1, window_bounds = array<i64: 1, 1, 128>}, {transform_indices = @transform_2, window_bounds = array<i64: 1, 1, 128>}, {transform_indices = @transform_3, window_bounds = array<i64: 1, 32, 1>}, {transform_indices = @transform_4, window_bounds = array<i64: 1, 32, 1>}, {pipeline_mode = #tpu.pipeline_mode<synchronous>, transform_indices = @transform_5, window_bounds = array<i64: 10, 16>}, {transform_indices = @transform_6, window_bounds = array<i64: 1, 32, 16>}]} {
    %0 = arith.index_cast %arg0 : i32 to index
    %1 = memref.load %arg1[%0] : memref<2xi32, #tpu.memory_space<smem>>
    %c0 = arith.constant 0 : index
    %c0_0 = arith.constant 0 : index
    %c0_1 = arith.constant 0 : index
    %2 = vector.load %arg2[%c0, %c0_0, %c0_1] : memref<1x1x128xf32, #tpu.memory_space<vmem>>, vector<1x1x128xf32>
    %3 = vector.shape_cast %2 : vector<1x1x128xf32> to vector<1x128xf32>
    %c0_2 = arith.constant 0 : index
    %c0_3 = arith.constant 0 : index
    %c0_4 = arith.constant 0 : index
    %4 = vector.load %arg3[%c0_2, %c0_3, %c0_4] : memref<1x1x128xf32, #tpu.memory_space<vmem>>, vector<1x1x128xf32>
    %5 = vector.shape_cast %4 : vector<1x1x128xf32> to vector<1x128xf32>
    %c0_5 = arith.constant 0 : index
    %c0_6 = arith.constant 0 : index
    %c0_7 = arith.constant 0 : index
    %6 = vector.load %arg4[%c0_5, %c0_6, %c0_7] : memref<1x1x128xf32, #tpu.memory_space<vmem>>, vector<1x1x128xf32>
    %7 = vector.shape_cast %6 : vector<1x1x128xf32> to vector<1x128xf32>
    %c0_8 = arith.constant 0 : index
    %c0_9 = arith.constant 0 : index
    %c0_10 = arith.constant 0 : index
    %8 = vector.load %arg5[%c0_8, %c0_9, %c0_10] : memref<1x32x1xf32, #tpu.memory_space<vmem>>, vector<1x32x1xf32>
    %9 = vector.shape_cast %8 : vector<1x32x1xf32> to vector<32x1xf32>
    %c0_11 = arith.constant 0 : index
    %c0_12 = arith.constant 0 : index
    %c0_13 = arith.constant 0 : index
    %10 = vector.load %arg6[%c0_11, %c0_12, %c0_13] : memref<1x32x1xf32, #tpu.memory_space<vmem>>, vector<1x32x1xf32>
    %11 = vector.shape_cast %10 : vector<1x32x1xf32> to vector<32x1xf32>
    %c0_14 = arith.constant 0 : index
    %c0_15 = arith.constant 0 : index
    %12 = vector.load %arg7[%c0_14, %c0_15] : memref<10x16xf32, #tpu.memory_space<vmem>>, vector<10x16xf32>
    %13 = tpu.iota {dimensions = array<i32: 1>} : vector<1x128xi32>
    %14 = vector.broadcast %1 : i32 to vector<1x128xi32>
    %15 = arith.cmpi slt, %13, %14 : vector<1x128xi32>
    %16 = arith.extui %15 : vector<1x128xi1> to vector<1x128xi32>
    %17 = arith.sitofp %16 : vector<1x128xi32> to vector<1x128xf32>
    %18 = arith.mulf %7, %17 : vector<1x128xf32>
    %19 = vector.broadcast %9 : vector<32x1xf32> to vector<32x128xf32>
    %20 = vector.broadcast %3 : vector<1x128xf32> to vector<32x128xf32>
    %21 = arith.subf %19, %20 : vector<32x128xf32>
    %22 = vector.broadcast %11 : vector<32x1xf32> to vector<32x128xf32>
    %23 = vector.broadcast %5 : vector<1x128xf32> to vector<32x128xf32>
    %24 = arith.subf %22, %23 : vector<32x128xf32>
    %25 = arith.mulf %21, %21 : vector<32x128xf32>
    %26 = arith.mulf %24, %24 : vector<32x128xf32>
    %27 = tpu.iota {dimensions = array<i32: 1>} : vector<1x16xi32>
    %cst = arith.constant 0.000000e+00 : f32
    %28 = vector.broadcast %cst : f32 to vector<32x16xf32>
    %29 = vector.extract_strided_slice %12 {offsets = [0, 0], sizes = [1, 1], strides = [1, 1]} : vector<10x16xf32> to vector<1x1xf32>
    %30 = vector.extract_strided_slice %12 {offsets = [1, 0], sizes = [1, 1], strides = [1, 1]} : vector<10x16xf32> to vector<1x1xf32>
    %31 = vector.broadcast %29 : vector<1x1xf32> to vector<32x128xf32>
    %32 = arith.mulf %25, %31 : vector<32x128xf32>
    %33 = vector.broadcast %30 : vector<1x1xf32> to vector<32x128xf32>
    %34 = arith.mulf %26, %33 : vector<32x128xf32>
    %35 = arith.addf %32, %34 : vector<32x128xf32>
    %cst_16 = arith.constant 0.000000e+00 : f32
    %36 = vector.broadcast %cst_16 : f32 to vector<32x128xf32>
    %37 = arith.subf %36, %35 : vector<32x128xf32>
    %38 = math.exp %37 : vector<32x128xf32>
    %cst_17 = arith.constant 1.000000e-10 : f32
    %39 = vector.broadcast %cst_17 : f32 to vector<32x128xf32>
    %40 = arith.addf %38, %39 : vector<32x128xf32>
    %41 = vector.broadcast %18 : vector<1x128xf32> to vector<32x128xf32>
    %42 = arith.mulf %40, %41 : vector<32x128xf32>
    %cst_18 = arith.constant dense<0.000000e+00> : vector<32xf32>
    %43 = vector.multi_reduction <add>, %42, %cst_18 [1] : vector<32x128xf32> to vector<32xf32>
    %44 = vector.shape_cast %43 : vector<32xf32> to vector<32x1xf32>
    %45 = vector.broadcast %17 : vector<1x128xf32> to vector<32x128xf32>
    %46 = arith.mulf %40, %45 : vector<32x128xf32>
    %cst_19 = arith.constant dense<0.000000e+00> : vector<32xf32>
    %47 = vector.multi_reduction <add>, %46, %cst_19 [1] : vector<32x128xf32> to vector<32xf32>
    %48 = vector.shape_cast %47 : vector<32xf32> to vector<32x1xf32>
    %49 = arith.divf %44, %48 : vector<32x1xf32>
    %c0_i32 = arith.constant 0 : i32
    %50 = vector.broadcast %c0_i32 : i32 to vector<1x16xi32>
    %51 = arith.cmpi eq, %27, %50 : vector<1x16xi32>
    %52 = arith.extui %51 : vector<1x16xi1> to vector<1x16xi32>
    %53 = arith.sitofp %52 : vector<1x16xi32> to vector<1x16xf32>
    %54 = vector.broadcast %49 : vector<32x1xf32> to vector<32x16xf32>
    %55 = vector.broadcast %53 : vector<1x16xf32> to vector<32x16xf32>
    %56 = arith.mulf %54, %55 : vector<32x16xf32>
    %57 = arith.addf %28, %56 : vector<32x16xf32>
    %58 = vector.extract_strided_slice %12 {offsets = [0, 1], sizes = [1, 1], strides = [1, 1]} : vector<10x16xf32> to vector<1x1xf32>
    %59 = vector.extract_strided_slice %12 {offsets = [1, 1], sizes = [1, 1], strides = [1, 1]} : vector<10x16xf32> to vector<1x1xf32>
    %60 = vector.broadcast %58 : vector<1x1xf32> to vector<32x128xf32>
    %61 = arith.mulf %25, %60 : vector<32x128xf32>
    %62 = vector.broadcast %59 : vector<1x1xf32> to vector<32x128xf32>
    %63 = arith.mulf %26, %62 : vector<32x128xf32>
    %64 = arith.addf %61, %63 : vector<32x128xf32>
    %cst_20 = arith.constant 0.000000e+00 : f32
    %65 = vector.broadcast %cst_20 : f32 to vector<32x128xf32>
    %66 = arith.subf %65, %64 : vector<32x128xf32>
    %67 = math.exp %66 : vector<32x128xf32>
    %cst_21 = arith.constant 1.000000e-10 : f32
    %68 = vector.broadcast %cst_21 : f32 to vector<32x128xf32>
    %69 = arith.addf %67, %68 : vector<32x128xf32>
    %70 = vector.broadcast %18 : vector<1x128xf32> to vector<32x128xf32>
    %71 = arith.mulf %69, %70 : vector<32x128xf32>
    %cst_22 = arith.constant dense<0.000000e+00> : vector<32xf32>
    %72 = vector.multi_reduction <add>, %71, %cst_22 [1] : vector<32x128xf32> to vector<32xf32>
    %73 = vector.shape_cast %72 : vector<32xf32> to vector<32x1xf32>
    %74 = vector.broadcast %17 : vector<1x128xf32> to vector<32x128xf32>
    %75 = arith.mulf %69, %74 : vector<32x128xf32>
    %cst_23 = arith.constant dense<0.000000e+00> : vector<32xf32>
    %76 = vector.multi_reduction <add>, %75, %cst_23 [1] : vector<32x128xf32> to vector<32xf32>
    %77 = vector.shape_cast %76 : vector<32xf32> to vector<32x1xf32>
    %78 = arith.divf %73, %77 : vector<32x1xf32>
    %c1_i32 = arith.constant 1 : i32
    %79 = vector.broadcast %c1_i32 : i32 to vector<1x16xi32>
    %80 = arith.cmpi eq, %27, %79 : vector<1x16xi32>
    %81 = arith.extui %80 : vector<1x16xi1> to vector<1x16xi32>
    %82 = arith.sitofp %81 : vector<1x16xi32> to vector<1x16xf32>
    %83 = vector.broadcast %78 : vector<32x1xf32> to vector<32x16xf32>
    %84 = vector.broadcast %82 : vector<1x16xf32> to vector<32x16xf32>
    %85 = arith.mulf %83, %84 : vector<32x16xf32>
    %86 = arith.addf %57, %85 : vector<32x16xf32>
    %87 = vector.extract_strided_slice %12 {offsets = [0, 2], sizes = [1, 1], strides = [1, 1]} : vector<10x16xf32> to vector<1x1xf32>
    %88 = vector.extract_strided_slice %12 {offsets = [1, 2], sizes = [1, 1], strides = [1, 1]} : vector<10x16xf32> to vector<1x1xf32>
    %89 = vector.broadcast %87 : vector<1x1xf32> to vector<32x128xf32>
    %90 = arith.mulf %25, %89 : vector<32x128xf32>
    %91 = vector.broadcast %88 : vector<1x1xf32> to vector<32x128xf32>
    %92 = arith.mulf %26, %91 : vector<32x128xf32>
    %93 = arith.addf %90, %92 : vector<32x128xf32>
    %cst_24 = arith.constant 0.000000e+00 : f32
    %94 = vector.broadcast %cst_24 : f32 to vector<32x128xf32>
    %95 = arith.subf %94, %93 : vector<32x128xf32>
    %96 = math.exp %95 : vector<32x128xf32>
    %cst_25 = arith.constant 1.000000e-10 : f32
    %97 = vector.broadcast %cst_25 : f32 to vector<32x128xf32>
    %98 = arith.addf %96, %97 : vector<32x128xf32>
    %99 = vector.broadcast %18 : vector<1x128xf32> to vector<32x128xf32>
    %100 = arith.mulf %98, %99 : vector<32x128xf32>
    %cst_26 = arith.constant dense<0.000000e+00> : vector<32xf32>
    %101 = vector.multi_reduction <add>, %100, %cst_26 [1] : vector<32x128xf32> to vector<32xf32>
    %102 = vector.shape_cast %101 : vector<32xf32> to vector<32x1xf32>
    %103 = vector.broadcast %17 : vector<1x128xf32> to vector<32x128xf32>
    %104 = arith.mulf %98, %103 : vector<32x128xf32>
    %cst_27 = arith.constant dense<0.000000e+00> : vector<32xf32>
    %105 = vector.multi_reduction <add>, %104, %cst_27 [1] : vector<32x128xf32> to vector<32xf32>
    %106 = vector.shape_cast %105 : vector<32xf32> to vector<32x1xf32>
    %107 = arith.divf %102, %106 : vector<32x1xf32>
    %c2_i32 = arith.constant 2 : i32
    %108 = vector.broadcast %c2_i32 : i32 to vector<1x16xi32>
    %109 = arith.cmpi eq, %27, %108 : vector<1x16xi32>
    %110 = arith.extui %109 : vector<1x16xi1> to vector<1x16xi32>
    %111 = arith.sitofp %110 : vector<1x16xi32> to vector<1x16xf32>
    %112 = vector.broadcast %107 : vector<32x1xf32> to vector<32x16xf32>
    %113 = vector.broadcast %111 : vector<1x16xf32> to vector<32x16xf32>
    %114 = arith.mulf %112, %113 : vector<32x16xf32>
    %115 = arith.addf %86, %114 : vector<32x16xf32>
    %116 = vector.extract_strided_slice %12 {offsets = [0, 3], sizes = [1, 1], strides = [1, 1]} : vector<10x16xf32> to vector<1x1xf32>
    %117 = vector.extract_strided_slice %12 {offsets = [1, 3], sizes = [1, 1], strides = [1, 1]} : vector<10x16xf32> to vector<1x1xf32>
    %118 = vector.broadcast %116 : vector<1x1xf32> to vector<32x128xf32>
    %119 = arith.mulf %25, %118 : vector<32x128xf32>
    %120 = vector.broadcast %117 : vector<1x1xf32> to vector<32x128xf32>
    %121 = arith.mulf %26, %120 : vector<32x128xf32>
    %122 = arith.addf %119, %121 : vector<32x128xf32>
    %cst_28 = arith.constant 0.000000e+00 : f32
    %123 = vector.broadcast %cst_28 : f32 to vector<32x128xf32>
    %124 = arith.subf %123, %122 : vector<32x128xf32>
    %125 = math.exp %124 : vector<32x128xf32>
    %cst_29 = arith.constant 1.000000e-10 : f32
    %126 = vector.broadcast %cst_29 : f32 to vector<32x128xf32>
    %127 = arith.addf %125, %126 : vector<32x128xf32>
    %128 = vector.broadcast %18 : vector<1x128xf32> to vector<32x128xf32>
    %129 = arith.mulf %127, %128 : vector<32x128xf32>
    %cst_30 = arith.constant dense<0.000000e+00> : vector<32xf32>
    %130 = vector.multi_reduction <add>, %129, %cst_30 [1] : vector<32x128xf32> to vector<32xf32>
    %131 = vector.shape_cast %130 : vector<32xf32> to vector<32x1xf32>
    %132 = vector.broadcast %17 : vector<1x128xf32> to vector<32x128xf32>
    %133 = arith.mulf %127, %132 : vector<32x128xf32>
    %cst_31 = arith.constant dense<0.000000e+00> : vector<32xf32>
    %134 = vector.multi_reduction <add>, %133, %cst_31 [1] : vector<32x128xf32> to vector<32xf32>
    %135 = vector.shape_cast %134 : vector<32xf32> to vector<32x1xf32>
    %136 = arith.divf %131, %135 : vector<32x1xf32>
    %c3_i32 = arith.constant 3 : i32
    %137 = vector.broadcast %c3_i32 : i32 to vector<1x16xi32>
    %138 = arith.cmpi eq, %27, %137 : vector<1x16xi32>
    %139 = arith.extui %138 : vector<1x16xi1> to vector<1x16xi32>
    %140 = arith.sitofp %139 : vector<1x16xi32> to vector<1x16xf32>
    %141 = vector.broadcast %136 : vector<32x1xf32> to vector<32x16xf32>
    %142 = vector.broadcast %140 : vector<1x16xf32> to vector<32x16xf32>
    %143 = arith.mulf %141, %142 : vector<32x16xf32>
    %144 = arith.addf %115, %143 : vector<32x16xf32>
    %145 = vector.extract_strided_slice %12 {offsets = [0, 4], sizes = [1, 1], strides = [1, 1]} : vector<10x16xf32> to vector<1x1xf32>
    %146 = vector.extract_strided_slice %12 {offsets = [1, 4], sizes = [1, 1], strides = [1, 1]} : vector<10x16xf32> to vector<1x1xf32>
    %147 = vector.broadcast %145 : vector<1x1xf32> to vector<32x128xf32>
    %148 = arith.mulf %25, %147 : vector<32x128xf32>
    %149 = vector.broadcast %146 : vector<1x1xf32> to vector<32x128xf32>
    %150 = arith.mulf %26, %149 : vector<32x128xf32>
    %151 = arith.addf %148, %150 : vector<32x128xf32>
    %cst_32 = arith.constant 0.000000e+00 : f32
    %152 = vector.broadcast %cst_32 : f32 to vector<32x128xf32>
    %153 = arith.subf %152, %151 : vector<32x128xf32>
    %154 = math.exp %153 : vector<32x128xf32>
    %cst_33 = arith.constant 1.000000e-10 : f32
    %155 = vector.broadcast %cst_33 : f32 to vector<32x128xf32>
    %156 = arith.addf %154, %155 : vector<32x128xf32>
    %157 = vector.broadcast %18 : vector<1x128xf32> to vector<32x128xf32>
    %158 = arith.mulf %156, %157 : vector<32x128xf32>
    %cst_34 = arith.constant dense<0.000000e+00> : vector<32xf32>
    %159 = vector.multi_reduction <add>, %158, %cst_34 [1] : vector<32x128xf32> to vector<32xf32>
    %160 = vector.shape_cast %159 : vector<32xf32> to vector<32x1xf32>
    %161 = vector.broadcast %17 : vector<1x128xf32> to vector<32x128xf32>
    %162 = arith.mulf %156, %161 : vector<32x128xf32>
    %cst_35 = arith.constant dense<0.000000e+00> : vector<32xf32>
    %163 = vector.multi_reduction <add>, %162, %cst_35 [1] : vector<32x128xf32> to vector<32xf32>
    %164 = vector.shape_cast %163 : vector<32xf32> to vector<32x1xf32>
    %165 = arith.divf %160, %164 : vector<32x1xf32>
    %c4_i32 = arith.constant 4 : i32
    %166 = vector.broadcast %c4_i32 : i32 to vector<1x16xi32>
    %167 = arith.cmpi eq, %27, %166 : vector<1x16xi32>
    %168 = arith.extui %167 : vector<1x16xi1> to vector<1x16xi32>
    %169 = arith.sitofp %168 : vector<1x16xi32> to vector<1x16xf32>
    %170 = vector.broadcast %165 : vector<32x1xf32> to vector<32x16xf32>
    %171 = vector.broadcast %169 : vector<1x16xf32> to vector<32x16xf32>
    %172 = arith.mulf %170, %171 : vector<32x16xf32>
    %173 = arith.addf %144, %172 : vector<32x16xf32>
    %174 = vector.extract_strided_slice %12 {offsets = [0, 5], sizes = [1, 1], strides = [1, 1]} : vector<10x16xf32> to vector<1x1xf32>
    %175 = vector.extract_strided_slice %12 {offsets = [1, 5], sizes = [1, 1], strides = [1, 1]} : vector<10x16xf32> to vector<1x1xf32>
    %176 = vector.broadcast %174 : vector<1x1xf32> to vector<32x128xf32>
    %177 = arith.mulf %25, %176 : vector<32x128xf32>
    %178 = vector.broadcast %175 : vector<1x1xf32> to vector<32x128xf32>
    %179 = arith.mulf %26, %178 : vector<32x128xf32>
    %180 = arith.addf %177, %179 : vector<32x128xf32>
    %cst_36 = arith.constant 0.000000e+00 : f32
    %181 = vector.broadcast %cst_36 : f32 to vector<32x128xf32>
    %182 = arith.subf %181, %180 : vector<32x128xf32>
    %183 = math.exp %182 : vector<32x128xf32>
    %cst_37 = arith.constant 1.000000e-10 : f32
    %184 = vector.broadcast %cst_37 : f32 to vector<32x128xf32>
    %185 = arith.addf %183, %184 : vector<32x128xf32>
    %186 = vector.broadcast %18 : vector<1x128xf32> to vector<32x128xf32>
    %187 = arith.mulf %185, %186 : vector<32x128xf32>
    %cst_38 = arith.constant dense<0.000000e+00> : vector<32xf32>
    %188 = vector.multi_reduction <add>, %187, %cst_38 [1] : vector<32x128xf32> to vector<32xf32>
    %189 = vector.shape_cast %188 : vector<32xf32> to vector<32x1xf32>
    %190 = vector.broadcast %17 : vector<1x128xf32> to vector<32x128xf32>
    %191 = arith.mulf %185, %190 : vector<32x128xf32>
    %cst_39 = arith.constant dense<0.000000e+00> : vector<32xf32>
    %192 = vector.multi_reduction <add>, %191, %cst_39 [1] : vector<32x128xf32> to vector<32xf32>
    %193 = vector.shape_cast %192 : vector<32xf32> to vector<32x1xf32>
    %194 = arith.divf %189, %193 : vector<32x1xf32>
    %c5_i32 = arith.constant 5 : i32
    %195 = vector.broadcast %c5_i32 : i32 to vector<1x16xi32>
    %196 = arith.cmpi eq, %27, %195 : vector<1x16xi32>
    %197 = arith.extui %196 : vector<1x16xi1> to vector<1x16xi32>
    %198 = arith.sitofp %197 : vector<1x16xi32> to vector<1x16xf32>
    %199 = vector.broadcast %194 : vector<32x1xf32> to vector<32x16xf32>
    %200 = vector.broadcast %198 : vector<1x16xf32> to vector<32x16xf32>
    %201 = arith.mulf %199, %200 : vector<32x16xf32>
    %202 = arith.addf %173, %201 : vector<32x16xf32>
    %203 = vector.extract_strided_slice %12 {offsets = [0, 6], sizes = [1, 1], strides = [1, 1]} : vector<10x16xf32> to vector<1x1xf32>
    %204 = vector.extract_strided_slice %12 {offsets = [1, 6], sizes = [1, 1], strides = [1, 1]} : vector<10x16xf32> to vector<1x1xf32>
    %205 = vector.broadcast %203 : vector<1x1xf32> to vector<32x128xf32>
    %206 = arith.mulf %25, %205 : vector<32x128xf32>
    %207 = vector.broadcast %204 : vector<1x1xf32> to vector<32x128xf32>
    %208 = arith.mulf %26, %207 : vector<32x128xf32>
    %209 = arith.addf %206, %208 : vector<32x128xf32>
    %cst_40 = arith.constant 0.000000e+00 : f32
    %210 = vector.broadcast %cst_40 : f32 to vector<32x128xf32>
    %211 = arith.subf %210, %209 : vector<32x128xf32>
    %212 = math.exp %211 : vector<32x128xf32>
    %cst_41 = arith.constant 1.000000e-10 : f32
    %213 = vector.broadcast %cst_41 : f32 to vector<32x128xf32>
    %214 = arith.addf %212, %213 : vector<32x128xf32>
    %215 = vector.broadcast %18 : vector<1x128xf32> to vector<32x128xf32>
    %216 = arith.mulf %214, %215 : vector<32x128xf32>
    %cst_42 = arith.constant dense<0.000000e+00> : vector<32xf32>
    %217 = vector.multi_reduction <add>, %216, %cst_42 [1] : vector<32x128xf32> to vector<32xf32>
    %218 = vector.shape_cast %217 : vector<32xf32> to vector<32x1xf32>
    %219 = vector.broadcast %17 : vector<1x128xf32> to vector<32x128xf32>
    %220 = arith.mulf %214, %219 : vector<32x128xf32>
    %cst_43 = arith.constant dense<0.000000e+00> : vector<32xf32>
    %221 = vector.multi_reduction <add>, %220, %cst_43 [1] : vector<32x128xf32> to vector<32xf32>
    %222 = vector.shape_cast %221 : vector<32xf32> to vector<32x1xf32>
    %223 = arith.divf %218, %222 : vector<32x1xf32>
    %c6_i32 = arith.constant 6 : i32
    %224 = vector.broadcast %c6_i32 : i32 to vector<1x16xi32>
    %225 = arith.cmpi eq, %27, %224 : vector<1x16xi32>
    %226 = arith.extui %225 : vector<1x16xi1> to vector<1x16xi32>
    %227 = arith.sitofp %226 : vector<1x16xi32> to vector<1x16xf32>
    %228 = vector.broadcast %223 : vector<32x1xf32> to vector<32x16xf32>
    %229 = vector.broadcast %227 : vector<1x16xf32> to vector<32x16xf32>
    %230 = arith.mulf %228, %229 : vector<32x16xf32>
    %231 = arith.addf %202, %230 : vector<32x16xf32>
    %232 = vector.extract_strided_slice %12 {offsets = [0, 7], sizes = [1, 1], strides = [1, 1]} : vector<10x16xf32> to vector<1x1xf32>
    %233 = vector.extract_strided_slice %12 {offsets = [1, 7], sizes = [1, 1], strides = [1, 1]} : vector<10x16xf32> to vector<1x1xf32>
    %234 = vector.broadcast %232 : vector<1x1xf32> to vector<32x128xf32>
    %235 = arith.mulf %25, %234 : vector<32x128xf32>
    %236 = vector.broadcast %233 : vector<1x1xf32> to vector<32x128xf32>
    %237 = arith.mulf %26, %236 : vector<32x128xf32>
    %238 = arith.addf %235, %237 : vector<32x128xf32>
    %cst_44 = arith.constant 0.000000e+00 : f32
    %239 = vector.broadcast %cst_44 : f32 to vector<32x128xf32>
    %240 = arith.subf %239, %238 : vector<32x128xf32>
    %241 = math.exp %240 : vector<32x128xf32>
    %cst_45 = arith.constant 1.000000e-10 : f32
    %242 = vector.broadcast %cst_45 : f32 to vector<32x128xf32>
    %243 = arith.addf %241, %242 : vector<32x128xf32>
    %244 = vector.broadcast %18 : vector<1x128xf32> to vector<32x128xf32>
    %245 = arith.mulf %243, %244 : vector<32x128xf32>
    %cst_46 = arith.constant dense<0.000000e+00> : vector<32xf32>
    %246 = vector.multi_reduction <add>, %245, %cst_46 [1] : vector<32x128xf32> to vector<32xf32>
    %247 = vector.shape_cast %246 : vector<32xf32> to vector<32x1xf32>
    %248 = vector.broadcast %17 : vector<1x128xf32> to vector<32x128xf32>
    %249 = arith.mulf %243, %248 : vector<32x128xf32>
    %cst_47 = arith.constant dense<0.000000e+00> : vector<32xf32>
    %250 = vector.multi_reduction <add>, %249, %cst_47 [1] : vector<32x128xf32> to vector<32xf32>
    %251 = vector.shape_cast %250 : vector<32xf32> to vector<32x1xf32>
    %252 = arith.divf %247, %251 : vector<32x1xf32>
    %c7_i32 = arith.constant 7 : i32
    %253 = vector.broadcast %c7_i32 : i32 to vector<1x16xi32>
    %254 = arith.cmpi eq, %27, %253 : vector<1x16xi32>
    %255 = arith.extui %254 : vector<1x16xi1> to vector<1x16xi32>
    %256 = arith.sitofp %255 : vector<1x16xi32> to vector<1x16xf32>
    %257 = vector.broadcast %252 : vector<32x1xf32> to vector<32x16xf32>
    %258 = vector.broadcast %256 : vector<1x16xf32> to vector<32x16xf32>
    %259 = arith.mulf %257, %258 : vector<32x16xf32>
    %260 = arith.addf %231, %259 : vector<32x16xf32>
    %261 = vector.extract_strided_slice %12 {offsets = [0, 8], sizes = [1, 1], strides = [1, 1]} : vector<10x16xf32> to vector<1x1xf32>
    %262 = vector.extract_strided_slice %12 {offsets = [1, 8], sizes = [1, 1], strides = [1, 1]} : vector<10x16xf32> to vector<1x1xf32>
    %263 = vector.broadcast %261 : vector<1x1xf32> to vector<32x128xf32>
    %264 = arith.mulf %25, %263 : vector<32x128xf32>
    %265 = vector.broadcast %262 : vector<1x1xf32> to vector<32x128xf32>
    %266 = arith.mulf %26, %265 : vector<32x128xf32>
    %267 = arith.addf %264, %266 : vector<32x128xf32>
    %cst_48 = arith.constant 0.000000e+00 : f32
    %268 = vector.broadcast %cst_48 : f32 to vector<32x128xf32>
    %269 = arith.subf %268, %267 : vector<32x128xf32>
    %270 = math.exp %269 : vector<32x128xf32>
    %cst_49 = arith.constant 1.000000e-10 : f32
    %271 = vector.broadcast %cst_49 : f32 to vector<32x128xf32>
    %272 = arith.addf %270, %271 : vector<32x128xf32>
    %273 = vector.broadcast %18 : vector<1x128xf32> to vector<32x128xf32>
    %274 = arith.mulf %272, %273 : vector<32x128xf32>
    %cst_50 = arith.constant dense<0.000000e+00> : vector<32xf32>
    %275 = vector.multi_reduction <add>, %274, %cst_50 [1] : vector<32x128xf32> to vector<32xf32>
    %276 = vector.shape_cast %275 : vector<32xf32> to vector<32x1xf32>
    %277 = vector.broadcast %17 : vector<1x128xf32> to vector<32x128xf32>
    %278 = arith.mulf %272, %277 : vector<32x128xf32>
    %cst_51 = arith.constant dense<0.000000e+00> : vector<32xf32>
    %279 = vector.multi_reduction <add>, %278, %cst_51 [1] : vector<32x128xf32> to vector<32xf32>
    %280 = vector.shape_cast %279 : vector<32xf32> to vector<32x1xf32>
    %281 = arith.divf %276, %280 : vector<32x1xf32>
    %c8_i32 = arith.constant 8 : i32
    %282 = vector.broadcast %c8_i32 : i32 to vector<1x16xi32>
    %283 = arith.cmpi eq, %27, %282 : vector<1x16xi32>
    %284 = arith.extui %283 : vector<1x16xi1> to vector<1x16xi32>
    %285 = arith.sitofp %284 : vector<1x16xi32> to vector<1x16xf32>
    %286 = vector.broadcast %281 : vector<32x1xf32> to vector<32x16xf32>
    %287 = vector.broadcast %285 : vector<1x16xf32> to vector<32x16xf32>
    %288 = arith.mulf %286, %287 : vector<32x16xf32>
    %289 = arith.addf %260, %288 : vector<32x16xf32>
    %290 = vector.extract_strided_slice %12 {offsets = [0, 9], sizes = [1, 1], strides = [1, 1]} : vector<10x16xf32> to vector<1x1xf32>
    %291 = vector.extract_strided_slice %12 {offsets = [1, 9], sizes = [1, 1], strides = [1, 1]} : vector<10x16xf32> to vector<1x1xf32>
    %292 = vector.broadcast %290 : vector<1x1xf32> to vector<32x128xf32>
    %293 = arith.mulf %25, %292 : vector<32x128xf32>
    %294 = vector.broadcast %291 : vector<1x1xf32> to vector<32x128xf32>
    %295 = arith.mulf %26, %294 : vector<32x128xf32>
    %296 = arith.addf %293, %295 : vector<32x128xf32>
    %cst_52 = arith.constant 0.000000e+00 : f32
    %297 = vector.broadcast %cst_52 : f32 to vector<32x128xf32>
    %298 = arith.subf %297, %296 : vector<32x128xf32>
    %299 = math.exp %298 : vector<32x128xf32>
    %cst_53 = arith.constant 1.000000e-10 : f32
    %300 = vector.broadcast %cst_53 : f32 to vector<32x128xf32>
    %301 = arith.addf %299, %300 : vector<32x128xf32>
    %302 = vector.broadcast %18 : vector<1x128xf32> to vector<32x128xf32>
    %303 = arith.mulf %301, %302 : vector<32x128xf32>
    %cst_54 = arith.constant dense<0.000000e+00> : vector<32xf32>
    %304 = vector.multi_reduction <add>, %303, %cst_54 [1] : vector<32x128xf32> to vector<32xf32>
    %305 = vector.shape_cast %304 : vector<32xf32> to vector<32x1xf32>
    %306 = vector.broadcast %17 : vector<1x128xf32> to vector<32x128xf32>
    %307 = arith.mulf %301, %306 : vector<32x128xf32>
    %cst_55 = arith.constant dense<0.000000e+00> : vector<32xf32>
    %308 = vector.multi_reduction <add>, %307, %cst_55 [1] : vector<32x128xf32> to vector<32xf32>
    %309 = vector.shape_cast %308 : vector<32xf32> to vector<32x1xf32>
    %310 = arith.divf %305, %309 : vector<32x1xf32>
    %c9_i32 = arith.constant 9 : i32
    %311 = vector.broadcast %c9_i32 : i32 to vector<1x16xi32>
    %312 = arith.cmpi eq, %27, %311 : vector<1x16xi32>
    %313 = arith.extui %312 : vector<1x16xi1> to vector<1x16xi32>
    %314 = arith.sitofp %313 : vector<1x16xi32> to vector<1x16xf32>
    %315 = vector.broadcast %310 : vector<32x1xf32> to vector<32x16xf32>
    %316 = vector.broadcast %314 : vector<1x16xf32> to vector<32x16xf32>
    %317 = arith.mulf %315, %316 : vector<32x16xf32>
    %318 = arith.addf %289, %317 : vector<32x16xf32>
    %319 = vector.extract_strided_slice %12 {offsets = [0, 10], sizes = [1, 1], strides = [1, 1]} : vector<10x16xf32> to vector<1x1xf32>
    %320 = vector.extract_strided_slice %12 {offsets = [1, 10], sizes = [1, 1], strides = [1, 1]} : vector<10x16xf32> to vector<1x1xf32>
    %321 = vector.broadcast %319 : vector<1x1xf32> to vector<32x128xf32>
    %322 = arith.mulf %25, %321 : vector<32x128xf32>
    %323 = vector.broadcast %320 : vector<1x1xf32> to vector<32x128xf32>
    %324 = arith.mulf %26, %323 : vector<32x128xf32>
    %325 = arith.addf %322, %324 : vector<32x128xf32>
    %cst_56 = arith.constant 0.000000e+00 : f32
    %326 = vector.broadcast %cst_56 : f32 to vector<32x128xf32>
    %327 = arith.subf %326, %325 : vector<32x128xf32>
    %328 = math.exp %327 : vector<32x128xf32>
    %cst_57 = arith.constant 1.000000e-10 : f32
    %329 = vector.broadcast %cst_57 : f32 to vector<32x128xf32>
    %330 = arith.addf %328, %329 : vector<32x128xf32>
    %331 = vector.broadcast %18 : vector<1x128xf32> to vector<32x128xf32>
    %332 = arith.mulf %330, %331 : vector<32x128xf32>
    %cst_58 = arith.constant dense<0.000000e+00> : vector<32xf32>
    %333 = vector.multi_reduction <add>, %332, %cst_58 [1] : vector<32x128xf32> to vector<32xf32>
    %334 = vector.shape_cast %333 : vector<32xf32> to vector<32x1xf32>
    %335 = vector.broadcast %17 : vector<1x128xf32> to vector<32x128xf32>
    %336 = arith.mulf %330, %335 : vector<32x128xf32>
    %cst_59 = arith.constant dense<0.000000e+00> : vector<32xf32>
    %337 = vector.multi_reduction <add>, %336, %cst_59 [1] : vector<32x128xf32> to vector<32xf32>
    %338 = vector.shape_cast %337 : vector<32xf32> to vector<32x1xf32>
    %339 = arith.divf %334, %338 : vector<32x1xf32>
    %c10_i32 = arith.constant 10 : i32
    %340 = vector.broadcast %c10_i32 : i32 to vector<1x16xi32>
    %341 = arith.cmpi eq, %27, %340 : vector<1x16xi32>
    %342 = arith.extui %341 : vector<1x16xi1> to vector<1x16xi32>
    %343 = arith.sitofp %342 : vector<1x16xi32> to vector<1x16xf32>
    %344 = vector.broadcast %339 : vector<32x1xf32> to vector<32x16xf32>
    %345 = vector.broadcast %343 : vector<1x16xf32> to vector<32x16xf32>
    %346 = arith.mulf %344, %345 : vector<32x16xf32>
    %347 = arith.addf %318, %346 : vector<32x16xf32>
    %348 = vector.extract_strided_slice %12 {offsets = [0, 11], sizes = [1, 1], strides = [1, 1]} : vector<10x16xf32> to vector<1x1xf32>
    %349 = vector.extract_strided_slice %12 {offsets = [1, 11], sizes = [1, 1], strides = [1, 1]} : vector<10x16xf32> to vector<1x1xf32>
    %350 = vector.broadcast %348 : vector<1x1xf32> to vector<32x128xf32>
    %351 = arith.mulf %25, %350 : vector<32x128xf32>
    %352 = vector.broadcast %349 : vector<1x1xf32> to vector<32x128xf32>
    %353 = arith.mulf %26, %352 : vector<32x128xf32>
    %354 = arith.addf %351, %353 : vector<32x128xf32>
    %cst_60 = arith.constant 0.000000e+00 : f32
    %355 = vector.broadcast %cst_60 : f32 to vector<32x128xf32>
    %356 = arith.subf %355, %354 : vector<32x128xf32>
    %357 = math.exp %356 : vector<32x128xf32>
    %cst_61 = arith.constant 1.000000e-10 : f32
    %358 = vector.broadcast %cst_61 : f32 to vector<32x128xf32>
    %359 = arith.addf %357, %358 : vector<32x128xf32>
    %360 = vector.broadcast %18 : vector<1x128xf32> to vector<32x128xf32>
    %361 = arith.mulf %359, %360 : vector<32x128xf32>
    %cst_62 = arith.constant dense<0.000000e+00> : vector<32xf32>
    %362 = vector.multi_reduction <add>, %361, %cst_62 [1] : vector<32x128xf32> to vector<32xf32>
    %363 = vector.shape_cast %362 : vector<32xf32> to vector<32x1xf32>
    %364 = vector.broadcast %17 : vector<1x128xf32> to vector<32x128xf32>
    %365 = arith.mulf %359, %364 : vector<32x128xf32>
    %cst_63 = arith.constant dense<0.000000e+00> : vector<32xf32>
    %366 = vector.multi_reduction <add>, %365, %cst_63 [1] : vector<32x128xf32> to vector<32xf32>
    %367 = vector.shape_cast %366 : vector<32xf32> to vector<32x1xf32>
    %368 = arith.divf %363, %367 : vector<32x1xf32>
    %c11_i32 = arith.constant 11 : i32
    %369 = vector.broadcast %c11_i32 : i32 to vector<1x16xi32>
    %370 = arith.cmpi eq, %27, %369 : vector<1x16xi32>
    %371 = arith.extui %370 : vector<1x16xi1> to vector<1x16xi32>
    %372 = arith.sitofp %371 : vector<1x16xi32> to vector<1x16xf32>
    %373 = vector.broadcast %368 : vector<32x1xf32> to vector<32x16xf32>
    %374 = vector.broadcast %372 : vector<1x16xf32> to vector<32x16xf32>
    %375 = arith.mulf %373, %374 : vector<32x16xf32>
    %376 = arith.addf %347, %375 : vector<32x16xf32>
    %377 = vector.extract_strided_slice %12 {offsets = [0, 12], sizes = [1, 1], strides = [1, 1]} : vector<10x16xf32> to vector<1x1xf32>
    %378 = vector.extract_strided_slice %12 {offsets = [1, 12], sizes = [1, 1], strides = [1, 1]} : vector<10x16xf32> to vector<1x1xf32>
    %379 = vector.broadcast %377 : vector<1x1xf32> to vector<32x128xf32>
    %380 = arith.mulf %25, %379 : vector<32x128xf32>
    %381 = vector.broadcast %378 : vector<1x1xf32> to vector<32x128xf32>
    %382 = arith.mulf %26, %381 : vector<32x128xf32>
    %383 = arith.addf %380, %382 : vector<32x128xf32>
    %cst_64 = arith.constant 0.000000e+00 : f32
    %384 = vector.broadcast %cst_64 : f32 to vector<32x128xf32>
    %385 = arith.subf %384, %383 : vector<32x128xf32>
    %386 = math.exp %385 : vector<32x128xf32>
    %cst_65 = arith.constant 1.000000e-10 : f32
    %387 = vector.broadcast %cst_65 : f32 to vector<32x128xf32>
    %388 = arith.addf %386, %387 : vector<32x128xf32>
    %389 = vector.broadcast %18 : vector<1x128xf32> to vector<32x128xf32>
    %390 = arith.mulf %388, %389 : vector<32x128xf32>
    %cst_66 = arith.constant dense<0.000000e+00> : vector<32xf32>
    %391 = vector.multi_reduction <add>, %390, %cst_66 [1] : vector<32x128xf32> to vector<32xf32>
    %392 = vector.shape_cast %391 : vector<32xf32> to vector<32x1xf32>
    %393 = vector.broadcast %17 : vector<1x128xf32> to vector<32x128xf32>
    %394 = arith.mulf %388, %393 : vector<32x128xf32>
    %cst_67 = arith.constant dense<0.000000e+00> : vector<32xf32>
    %395 = vector.multi_reduction <add>, %394, %cst_67 [1] : vector<32x128xf32> to vector<32xf32>
    %396 = vector.shape_cast %395 : vector<32xf32> to vector<32x1xf32>
    %397 = arith.divf %392, %396 : vector<32x1xf32>
    %c12_i32 = arith.constant 12 : i32
    %398 = vector.broadcast %c12_i32 : i32 to vector<1x16xi32>
    %399 = arith.cmpi eq, %27, %398 : vector<1x16xi32>
    %400 = arith.extui %399 : vector<1x16xi1> to vector<1x16xi32>
    %401 = arith.sitofp %400 : vector<1x16xi32> to vector<1x16xf32>
    %402 = vector.broadcast %397 : vector<32x1xf32> to vector<32x16xf32>
    %403 = vector.broadcast %401 : vector<1x16xf32> to vector<32x16xf32>
    %404 = arith.mulf %402, %403 : vector<32x16xf32>
    %405 = arith.addf %376, %404 : vector<32x16xf32>
    %406 = vector.extract_strided_slice %12 {offsets = [0, 13], sizes = [1, 1], strides = [1, 1]} : vector<10x16xf32> to vector<1x1xf32>
    %407 = vector.extract_strided_slice %12 {offsets = [1, 13], sizes = [1, 1], strides = [1, 1]} : vector<10x16xf32> to vector<1x1xf32>
    %408 = vector.broadcast %406 : vector<1x1xf32> to vector<32x128xf32>
    %409 = arith.mulf %25, %408 : vector<32x128xf32>
    %410 = vector.broadcast %407 : vector<1x1xf32> to vector<32x128xf32>
    %411 = arith.mulf %26, %410 : vector<32x128xf32>
    %412 = arith.addf %409, %411 : vector<32x128xf32>
    %cst_68 = arith.constant 0.000000e+00 : f32
    %413 = vector.broadcast %cst_68 : f32 to vector<32x128xf32>
    %414 = arith.subf %413, %412 : vector<32x128xf32>
    %415 = math.exp %414 : vector<32x128xf32>
    %cst_69 = arith.constant 1.000000e-10 : f32
    %416 = vector.broadcast %cst_69 : f32 to vector<32x128xf32>
    %417 = arith.addf %415, %416 : vector<32x128xf32>
    %418 = vector.broadcast %18 : vector<1x128xf32> to vector<32x128xf32>
    %419 = arith.mulf %417, %418 : vector<32x128xf32>
    %cst_70 = arith.constant dense<0.000000e+00> : vector<32xf32>
    %420 = vector.multi_reduction <add>, %419, %cst_70 [1] : vector<32x128xf32> to vector<32xf32>
    %421 = vector.shape_cast %420 : vector<32xf32> to vector<32x1xf32>
    %422 = vector.broadcast %17 : vector<1x128xf32> to vector<32x128xf32>
    %423 = arith.mulf %417, %422 : vector<32x128xf32>
    %cst_71 = arith.constant dense<0.000000e+00> : vector<32xf32>
    %424 = vector.multi_reduction <add>, %423, %cst_71 [1] : vector<32x128xf32> to vector<32xf32>
    %425 = vector.shape_cast %424 : vector<32xf32> to vector<32x1xf32>
    %426 = arith.divf %421, %425 : vector<32x1xf32>
    %c13_i32 = arith.constant 13 : i32
    %427 = vector.broadcast %c13_i32 : i32 to vector<1x16xi32>
    %428 = arith.cmpi eq, %27, %427 : vector<1x16xi32>
    %429 = arith.extui %428 : vector<1x16xi1> to vector<1x16xi32>
    %430 = arith.sitofp %429 : vector<1x16xi32> to vector<1x16xf32>
    %431 = vector.broadcast %426 : vector<32x1xf32> to vector<32x16xf32>
    %432 = vector.broadcast %430 : vector<1x16xf32> to vector<32x16xf32>
    %433 = arith.mulf %431, %432 : vector<32x16xf32>
    %434 = arith.addf %405, %433 : vector<32x16xf32>
    %435 = vector.extract_strided_slice %12 {offsets = [0, 14], sizes = [1, 1], strides = [1, 1]} : vector<10x16xf32> to vector<1x1xf32>
    %436 = vector.extract_strided_slice %12 {offsets = [1, 14], sizes = [1, 1], strides = [1, 1]} : vector<10x16xf32> to vector<1x1xf32>
    %437 = vector.broadcast %435 : vector<1x1xf32> to vector<32x128xf32>
    %438 = arith.mulf %25, %437 : vector<32x128xf32>
    %439 = vector.broadcast %436 : vector<1x1xf32> to vector<32x128xf32>
    %440 = arith.mulf %26, %439 : vector<32x128xf32>
    %441 = arith.addf %438, %440 : vector<32x128xf32>
    %cst_72 = arith.constant 0.000000e+00 : f32
    %442 = vector.broadcast %cst_72 : f32 to vector<32x128xf32>
    %443 = arith.subf %442, %441 : vector<32x128xf32>
    %444 = math.exp %443 : vector<32x128xf32>
    %cst_73 = arith.constant 1.000000e-10 : f32
    %445 = vector.broadcast %cst_73 : f32 to vector<32x128xf32>
    %446 = arith.addf %444, %445 : vector<32x128xf32>
    %447 = vector.broadcast %18 : vector<1x128xf32> to vector<32x128xf32>
    %448 = arith.mulf %446, %447 : vector<32x128xf32>
    %cst_74 = arith.constant dense<0.000000e+00> : vector<32xf32>
    %449 = vector.multi_reduction <add>, %448, %cst_74 [1] : vector<32x128xf32> to vector<32xf32>
    %450 = vector.shape_cast %449 : vector<32xf32> to vector<32x1xf32>
    %451 = vector.broadcast %17 : vector<1x128xf32> to vector<32x128xf32>
    %452 = arith.mulf %446, %451 : vector<32x128xf32>
    %cst_75 = arith.constant dense<0.000000e+00> : vector<32xf32>
    %453 = vector.multi_reduction <add>, %452, %cst_75 [1] : vector<32x128xf32> to vector<32xf32>
    %454 = vector.shape_cast %453 : vector<32xf32> to vector<32x1xf32>
    %455 = arith.divf %450, %454 : vector<32x1xf32>
    %c14_i32 = arith.constant 14 : i32
    %456 = vector.broadcast %c14_i32 : i32 to vector<1x16xi32>
    %457 = arith.cmpi eq, %27, %456 : vector<1x16xi32>
    %458 = arith.extui %457 : vector<1x16xi1> to vector<1x16xi32>
    %459 = arith.sitofp %458 : vector<1x16xi32> to vector<1x16xf32>
    %460 = vector.broadcast %455 : vector<32x1xf32> to vector<32x16xf32>
    %461 = vector.broadcast %459 : vector<1x16xf32> to vector<32x16xf32>
    %462 = arith.mulf %460, %461 : vector<32x16xf32>
    %463 = arith.addf %434, %462 : vector<32x16xf32>
    %464 = vector.extract_strided_slice %12 {offsets = [0, 15], sizes = [1, 1], strides = [1, 1]} : vector<10x16xf32> to vector<1x1xf32>
    %465 = vector.extract_strided_slice %12 {offsets = [1, 15], sizes = [1, 1], strides = [1, 1]} : vector<10x16xf32> to vector<1x1xf32>
    %466 = vector.broadcast %464 : vector<1x1xf32> to vector<32x128xf32>
    %467 = arith.mulf %25, %466 : vector<32x128xf32>
    %468 = vector.broadcast %465 : vector<1x1xf32> to vector<32x128xf32>
    %469 = arith.mulf %26, %468 : vector<32x128xf32>
    %470 = arith.addf %467, %469 : vector<32x128xf32>
    %cst_76 = arith.constant 0.000000e+00 : f32
    %471 = vector.broadcast %cst_76 : f32 to vector<32x128xf32>
    %472 = arith.subf %471, %470 : vector<32x128xf32>
    %473 = math.exp %472 : vector<32x128xf32>
    %cst_77 = arith.constant 1.000000e-10 : f32
    %474 = vector.broadcast %cst_77 : f32 to vector<32x128xf32>
    %475 = arith.addf %473, %474 : vector<32x128xf32>
    %476 = vector.broadcast %18 : vector<1x128xf32> to vector<32x128xf32>
    %477 = arith.mulf %475, %476 : vector<32x128xf32>
    %cst_78 = arith.constant dense<0.000000e+00> : vector<32xf32>
    %478 = vector.multi_reduction <add>, %477, %cst_78 [1] : vector<32x128xf32> to vector<32xf32>
    %479 = vector.shape_cast %478 : vector<32xf32> to vector<32x1xf32>
    %480 = vector.broadcast %17 : vector<1x128xf32> to vector<32x128xf32>
    %481 = arith.mulf %475, %480 : vector<32x128xf32>
    %cst_79 = arith.constant dense<0.000000e+00> : vector<32xf32>
    %482 = vector.multi_reduction <add>, %481, %cst_79 [1] : vector<32x128xf32> to vector<32xf32>
    %483 = vector.shape_cast %482 : vector<32xf32> to vector<32x1xf32>
    %484 = arith.divf %479, %483 : vector<32x1xf32>
    %c15_i32 = arith.constant 15 : i32
    %485 = vector.broadcast %c15_i32 : i32 to vector<1x16xi32>
    %486 = arith.cmpi eq, %27, %485 : vector<1x16xi32>
    %487 = arith.extui %486 : vector<1x16xi1> to vector<1x16xi32>
    %488 = arith.sitofp %487 : vector<1x16xi32> to vector<1x16xf32>
    %489 = vector.broadcast %484 : vector<32x1xf32> to vector<32x16xf32>
    %490 = vector.broadcast %488 : vector<1x16xf32> to vector<32x16xf32>
    %491 = arith.mulf %489, %490 : vector<32x16xf32>
    %492 = arith.addf %463, %491 : vector<32x16xf32>
    %cst_80 = arith.constant dense<0.000000e+00> : vector<32xf32>
    %493 = vector.multi_reduction <add>, %492, %cst_80 [1] : vector<32x16xf32> to vector<32xf32>
    %494 = vector.shape_cast %493 : vector<32xf32> to vector<32x1xf32>
    %cst_81 = arith.constant 1.600000e+01 : f32
    %495 = vector.broadcast %cst_81 : f32 to vector<32x1xf32>
    %496 = arith.divf %494, %495 : vector<32x1xf32>
    %497 = vector.broadcast %496 : vector<32x1xf32> to vector<32x16xf32>
    %498 = arith.subf %492, %497 : vector<32x16xf32>
    %499 = arith.mulf %498, %498 : vector<32x16xf32>
    %cst_82 = arith.constant dense<0.000000e+00> : vector<32xf32>
    %500 = vector.multi_reduction <add>, %499, %cst_82 [1] : vector<32x16xf32> to vector<32xf32>
    %501 = vector.shape_cast %500 : vector<32xf32> to vector<32x1xf32>
    %cst_83 = arith.constant 1.600000e+01 : f32
    %502 = vector.broadcast %cst_83 : f32 to vector<32x1xf32>
    %503 = arith.divf %501, %502 : vector<32x1xf32>
    %cst_84 = arith.constant 9.99999974E-6 : f32
    %504 = vector.broadcast %cst_84 : f32 to vector<32x1xf32>
    %505 = arith.addf %503, %504 : vector<32x1xf32>
    %506 = math.rsqrt %505 : vector<32x1xf32>
    %507 = vector.broadcast %506 : vector<32x1xf32> to vector<32x16xf32>
    %508 = arith.mulf %498, %507 : vector<32x16xf32>
    %509 = tpu.iota {dimensions = array<i32: 0>} : vector<32x1xi32>
    %510 = vector.broadcast %1 : i32 to vector<32x1xi32>
    %511 = arith.cmpi slt, %509, %510 : vector<32x1xi32>
    %512 = arith.extui %511 : vector<32x1xi1> to vector<32x1xi32>
    %513 = arith.sitofp %512 : vector<32x1xi32> to vector<32x1xf32>
    %514 = vector.extract_strided_slice %12 {offsets = [2, 0], sizes = [1, 16], strides = [1, 1]} : vector<10x16xf32> to vector<1x16xf32>
    %515 = vector.broadcast %513 : vector<32x1xf32> to vector<32x16xf32>
    %516 = vector.broadcast %514 : vector<1x16xf32> to vector<32x16xf32>
    %517 = arith.mulf %515, %516 : vector<32x16xf32>
    %cst_85 = arith.constant 1.000000e+00 : f32
    %518 = vector.broadcast %cst_85 : f32 to vector<32x1xf32>
    %519 = arith.subf %518, %513 : vector<32x1xf32>
    %520 = vector.extract_strided_slice %12 {offsets = [4, 0], sizes = [1, 16], strides = [1, 1]} : vector<10x16xf32> to vector<1x16xf32>
    %521 = vector.broadcast %519 : vector<32x1xf32> to vector<32x16xf32>
    %522 = vector.broadcast %520 : vector<1x16xf32> to vector<32x16xf32>
    %523 = arith.mulf %521, %522 : vector<32x16xf32>
    %524 = arith.addf %517, %523 : vector<32x16xf32>
    %525 = vector.extract_strided_slice %12 {offsets = [3, 0], sizes = [1, 16], strides = [1, 1]} : vector<10x16xf32> to vector<1x16xf32>
    %526 = vector.broadcast %513 : vector<32x1xf32> to vector<32x16xf32>
    %527 = vector.broadcast %525 : vector<1x16xf32> to vector<32x16xf32>
    %528 = arith.mulf %526, %527 : vector<32x16xf32>
    %cst_86 = arith.constant 1.000000e+00 : f32
    %529 = vector.broadcast %cst_86 : f32 to vector<32x1xf32>
    %530 = arith.subf %529, %513 : vector<32x1xf32>
    %531 = vector.extract_strided_slice %12 {offsets = [5, 0], sizes = [1, 16], strides = [1, 1]} : vector<10x16xf32> to vector<1x16xf32>
    %532 = vector.broadcast %530 : vector<32x1xf32> to vector<32x16xf32>
    %533 = vector.broadcast %531 : vector<1x16xf32> to vector<32x16xf32>
    %534 = arith.mulf %532, %533 : vector<32x16xf32>
    %535 = arith.addf %528, %534 : vector<32x16xf32>
    %536 = arith.mulf %508, %524 : vector<32x16xf32>
    %537 = arith.addf %536, %535 : vector<32x16xf32>
    %538 = vector.extract_strided_slice %12 {offsets = [6, 0], sizes = [1, 16], strides = [1, 1]} : vector<10x16xf32> to vector<1x16xf32>
    %539 = vector.extract_strided_slice %12 {offsets = [7, 0], sizes = [1, 16], strides = [1, 1]} : vector<10x16xf32> to vector<1x16xf32>
    %540 = vector.extract_strided_slice %12 {offsets = [8, 0], sizes = [1, 16], strides = [1, 1]} : vector<10x16xf32> to vector<1x16xf32>
    %541 = vector.extract_strided_slice %12 {offsets = [9, 0], sizes = [1, 16], strides = [1, 1]} : vector<10x16xf32> to vector<1x16xf32>
    %542 = vector.broadcast %9 : vector<32x1xf32> to vector<32x16xf32>
    %543 = vector.broadcast %539 : vector<1x16xf32> to vector<32x16xf32>
    %544 = arith.mulf %542, %543 : vector<32x16xf32>
    %cst_87 = arith.constant 1.000000e+00 : f32
    %545 = vector.broadcast %cst_87 : f32 to vector<1x16xf32>
    %546 = arith.subf %545, %539 : vector<1x16xf32>
    %547 = vector.broadcast %11 : vector<32x1xf32> to vector<32x16xf32>
    %548 = vector.broadcast %546 : vector<1x16xf32> to vector<32x16xf32>
    %549 = arith.mulf %547, %548 : vector<32x16xf32>
    %550 = arith.addf %544, %549 : vector<32x16xf32>
    %551 = vector.broadcast %538 : vector<1x16xf32> to vector<32x16xf32>
    %552 = arith.mulf %550, %551 : vector<32x16xf32>
    %553 = math.sin %552 : vector<32x16xf32>
    %554 = vector.broadcast %540 : vector<1x16xf32> to vector<32x16xf32>
    %555 = arith.mulf %553, %554 : vector<32x16xf32>
    %556 = math.cos %552 : vector<32x16xf32>
    %cst_88 = arith.constant 1.000000e+00 : f32
    %557 = vector.broadcast %cst_88 : f32 to vector<1x16xf32>
    %558 = arith.subf %557, %540 : vector<1x16xf32>
    %559 = vector.broadcast %558 : vector<1x16xf32> to vector<32x16xf32>
    %560 = arith.mulf %556, %559 : vector<32x16xf32>
    %561 = arith.addf %555, %560 : vector<32x16xf32>
    %562 = vector.broadcast %541 : vector<1x16xf32> to vector<32x16xf32>
    %563 = arith.mulf %561, %562 : vector<32x16xf32>
    %564 = arith.addf %537, %563 : vector<32x16xf32>
    %c0_89 = arith.constant 0 : index
    %c0_90 = arith.constant 0 : index
    %c0_91 = arith.constant 0 : index
    %565 = vector.load %arg8[%c0_89, %c0_90, %c0_91] : memref<1x32x16xf32, #tpu.memory_space<vmem>>, vector<1x32x16xf32>
    %566 = vector.shape_cast %565 : vector<1x32x16xf32> to vector<32x16xf32>
    %567 = vector.shape_cast %564 : vector<32x16xf32> to vector<1x32x16xf32>
    tpu.vector_store %arg8[%c0_89, %c0_90, %c0_91], %567 {strides = array<i32>} : memref<1x32x16xf32, #tpu.memory_space<vmem>>, vector<1x32x16xf32>,
    return
  }
  func.func @transform_0(%arg0: i32, %arg1: memref<2xi32, #tpu.memory_space<smem>>) -> (i32, i32, i32) {
    %c0_i32 = arith.constant 0 : i32
    %c0_i32_0 = arith.constant 0 : i32
    %c0_i32_1 = arith.constant 0 : i32
    return %arg0, %c0_i32, %c0_i32_0 : i32, i32, i32
  }
  func.func @transform_1(%arg0: i32, %arg1: memref<2xi32, #tpu.memory_space<smem>>) -> (i32, i32, i32) {
    %c0_i32 = arith.constant 0 : i32
    %c0_i32_0 = arith.constant 0 : i32
    %c0_i32_1 = arith.constant 0 : i32
    return %arg0, %c0_i32, %c0_i32_0 : i32, i32, i32
  }
  func.func @transform_2(%arg0: i32, %arg1: memref<2xi32, #tpu.memory_space<smem>>) -> (i32, i32, i32) {
    %c0_i32 = arith.constant 0 : i32
    %c0_i32_0 = arith.constant 0 : i32
    %c0_i32_1 = arith.constant 0 : i32
    return %arg0, %c0_i32, %c0_i32_0 : i32, i32, i32
  }
  func.func @transform_3(%arg0: i32, %arg1: memref<2xi32, #tpu.memory_space<smem>>) -> (i32, i32, i32) {
    %c0_i32 = arith.constant 0 : i32
    %c0_i32_0 = arith.constant 0 : i32
    %c0_i32_1 = arith.constant 0 : i32
    return %arg0, %c0_i32, %c0_i32_0 : i32, i32, i32
  }
  func.func @transform_4(%arg0: i32, %arg1: memref<2xi32, #tpu.memory_space<smem>>) -> (i32, i32, i32) {
    %c0_i32 = arith.constant 0 : i32
    %c0_i32_0 = arith.constant 0 : i32
    %c0_i32_1 = arith.constant 0 : i32
    return %arg0, %c0_i32, %c0_i32_0 : i32, i32, i32
  }
  func.func @transform_5(%arg0: i32, %arg1: memref<2xi32, #tpu.memory_space<smem>>) -> (i32, i32) {
    %c0_i32 = arith.constant 0 : i32
    %c0_i32_0 = arith.constant 0 : i32
    %c0_i32_1 = arith.constant 0 : i32
    return %c0_i32, %c0_i32_0 : i32, i32
  }
  func.func @transform_6(%arg0: i32, %arg1: memref<2xi32, #tpu.memory_space<smem>>) -> (i32, i32, i32) {
    %c0_i32 = arith.constant 0 : i32
    %c0_i32_0 = arith.constant 0 : i32
    %c0_i32_1 = arith.constant 0 : i32
    return %arg0, %c0_i32, %c0_i32_0 : i32, i32, i32
  }
}

</mosaic_0001>

<bundles_post_ra>
// kernel: _forward_impl.1
= control target key start
LH: loop header
LB: loop body
LE: loop exit
PB: predicated region body
PF: predicated region fallthrough
CT: control target
= control target key end

     0   :  { %s4521_s27 = smov [#allocation3]   ;;  %s6813_s0 = inlined_call_operand.vmem [shape: s32[2], index: 0, kind: input, shape index: {}]   ;;  %s6814_s1 = inlined_call_operand.vmem [shape: f32[2,1,128], index: 1, kind: input, shape index: {}]   ;;  %s6815_s2 = inlined_call_operand.vmem [shape: f32[2,1,128], index: 2, kind: input, shape index: {}]   ;;  %s6816_s3 = inlined_call_operand.vmem [shape: f32[2,1,128], index: 3, kind: input, shape index: {}]   ;;  %s6817_s4 = inlined_call_operand.vmem [shape: f32[2,32,1], index: 4, kind: input, shape index: {}]   ;;  %s6818_s5 = inlined_call_operand.vmem [shape: f32[2,32,1], index: 5, kind: input, shape index: {}]   ;;  %s6819_s6 = inlined_call_operand.vmem [shape: f32[10,16], index: 6, kind: input, shape index: {}]   ;;  %s6820_s7 = inlined_call_operand.vmem [shape: f32[2,32,16], index: 7, kind: output, shape index: {}]  }
   0x1   :  { %s13_s26 = sshll.u32 %s6813_s0, 4  ;;  %s14_s26 = int_to_ptr.vmem [resolvable:$true] %s13_s26 }
   0x2   :  { %16 = dma.vmem_to_smem %s14_s26, 16, %s4521_s27, [#allocation2] }
   0x3   :  { %4515 = dma.done.wait [#allocation2], 16 }
   0x4   :  { %4516 = vsyncadd [#allocation2], 4294967280 }
   0x5   :  { %19 = sfence }
   0x6   :  { %s4589_s28 = smov 0  }
   0x7 LB: > { %s4595_s29 = sadd.s32 4294967295, %s4519_s28   ;;  %p4070_p0 = scmp.ge.s32.totalorder %s4519_s28, 1  ;;  %s4519_s28 = sphi %s4589_s28, %s25_s28  }
   0x8   : > { %p255_p1 = scmp.lt.s32.totalorder %s4519_s28, 3 }
   0xa   : > { %p256_p2 = pnand %p4070_p0, %p255_p1 }
   0xc   : > { %259 = sbr.rel (%p256_p2) target bundleno = 2718 (0xa9e), region = 44 }
  0x11   : > { %p299_p3 = scmp.lt.s32.totalorder %s4595_s29, 1  ;;  %v4603_v0 = vld [vmem:[%s6819_s6] sm:$0xff]  ;;  %v6822_v1 = vmov 0   ;;  %s4523_s22 = smov 126   ;;  %v6821_v33 = vlaneseq  ;;  %v6824_v39 = vmov 0.0  }
  0x12   : > { %4225 = vset.pattern.permute.xlu1 %v6822_v1  ;;  %4224 = vset.pattern.permute.xlu0 %v6822_v1  ;;  %v4608_v2 = vrot.slane %v4603_v0, 1  ;;  %4127 = vpush %v4603_v0  ;;  %s4524_s23 = smov 127   ;;  %s323_s10 = sld [smem:[#allocation3 + %s4595_s29]] }
  0x13   : > { %s4612_s8 = scalar_select %p299_p3, %s4595_s29, 1  ;;  %4226 = vset.pattern.permute.xlu2 %v6822_v1  ;;  %v4675_v36 = vand.u32 127, %v6821_v33 }
  0x14   : > { %4129 = vpush %v4608_v2  ;;  %s4526_s16 = smov 125   ;;  %s4527_s19 = smov 124  }
  0x15   : > { %s4617_s9 = sshll.u32 %s4612_s8, 5  ;;  %s304_s18 = scalar_lea.vmem %s6815_s2, %s4612_s8  ;;  %vm529_vm5 = vcmp.eq.s32.totalorder %v4675_v36, 0  ;;  %vm662_vm8 = vcmp.eq.s32.totalorder %v4675_v36, 1 }
  0x16   : > { %s312_s12 = scalar_lea.vmem %s6817_s4, %s4617_s9  ;;  %s317_s15 = scalar_lea.vmem %s6818_s5, %s4617_s9  ;;  %v4227_v22 = vld [vmem:[%s304_s18] ss:$0 sm:$0xff] }
  0x17   : > { %v329_v3 = vld [vmem:[%s312_s12 + $0x10] sm:$0xff]  ;;  %v327_v4 = vld [vmem:[%s312_s12] sm:$0xff]  ;;  %s301_s21 = scalar_lea.vmem %s6814_s1, %s4612_s8  ;;  %v330_v6 = vld [vmem:[%s312_s12 + $0x18] sm:$0xff]  ;;  %s307_s13 = scalar_lea.vmem %s6816_s3, %s4612_s8 }
  0x18   : > { %356 = vperm.xlu1 %4225, %v329_v3   ;;  %346 = vperm.xlu0 %4224, %v327_v4   ;;  %v331_v5 = vld [vmem:[%s317_s15] sm:$0xff]  ;;  %v328_v7 = vld [vmem:[%s312_s12 + $0x8] sm:$0xff]  ;;  %v334_v9 = vld [vmem:[%s317_s15 + $0x18] sm:$0xff]  ;;  %v4677_v37 = vstv %s323_s10  ;;  %s4529_s27 = smov 122   ;;  %s4530_s10 = smov 121  }
  0x19   : > { %373 = vperm.xlu2 %4226, %v331_v5   ;;  %v332_v8 = vld [vmem:[%s317_s15 + $0x8] sm:$0xff]  ;;  %v333_v10 = vld [vmem:[%s317_s15 + $0x10] sm:$0xff]  ;;  %v4228_v23 = vld [vmem:[%s301_s21] ss:$0 sm:$0xff]  ;;  %6862 = vst [vmem:[#allocation6_spill] sm:$0xff] %v4677_v37  ;;  %vm340_vm0 = vcmp.lt.s32.totalorder %v4675_v36, %v4677_v37  ;;  %s4538_s24 = smov 113  }
  0x1a   : > { %v4686_v40 = vsel %vm340_vm0, 1.0, %v6824_v39  ;;  %v326_v41 = vld [vmem:[%s307_s13] sm:$0x1]  ;;  %s4531_s13 = smov 120  }
  0x1b   : > { %v343_v44 = vmul.f32 %v4686_v40, %v326_v41 }
  0x1d   : > { %v4695_v48 = vperm.slane %v343_v44, 0 }
  0x20   : > { %361 = vperm.xlu1 %4225, %v330_v6   ;;  %351 = vperm.xlu0 %4224, %v328_v7  }
  0x21   : > { %378 = vperm.xlu2 %4226, %v332_v8  }
  0x28   : > { %388 = vperm.xlu1 %4225, %v334_v9   ;;  %383 = vperm.xlu0 %4224, %v333_v10  }
  0x29   : > { %673 = vrot.lane.b32.xlu2 %v4603_v0, %s4523_s22 }
  0x30   : > { %549 = vrot.lane.b32.xlu1 %v4608_v2, %s4524_s23  ;;  %540 = vrot.lane.b32.xlu0 %v4603_v0, %s4524_s23  ;;  %s4537_s23 = smov 115  }
  0x38   : > { %682 = vrot.lane.b32.xlu0 %v4608_v2, %s4523_s22  ;;  %s4528_s22 = smov 123  }
  0x43   : > { %s4128_s0 = spop %4127 }
  0x44   : > { %v408_v28 = vstv %s4128_s0 }
  0x45   : > { %s4130_s30 = spop %4129 }
  0x46   : > { %v416_v29 = vstv %s4130_s30 }
  0x73   : > { %v4647_v15 = vpop.permute.xlu2 %373 }
  0x74   : > { %v394_v24 = vsub.f32 %v4647_v15, %v4227_v22 }
  0x76   : > { %v4667_v26 = vmul.f32 %v394_v24, %v394_v24 }
  0x78   : > { %v418_v31 = vmul.f32 %v416_v29, %v4667_v26 }
  0x7b   : > { %v4653_v18 = vpop.permute.xlu2 %378 }
  0x7c   : > { %v395_v42 = vsub.f32 %v4653_v18, %v4227_v22 }
  0x7e   : > { %v4691_v45 = vmul.f32 %v395_v42, %v395_v42 }
  0x80   : > { %v419_v50 = vmul.f32 %v416_v29, %v4691_v45 }
  0x83   : > { %v674_v20 = vpop.permute.xlu2 %673 }
  0x8a   : > { %v4639_v11 = vpop.permute.xlu1 %356  ;;  %v4641_v12 = vpop.permute.xlu0 %346 }
  0x8b   : > { %6861 = vst [vmem:[#allocation5_spill] sm:$0xff] %v4639_v11  ;;  %v367_v25 = vsub.f32 %v4641_v12, %v4228_v23  ;;  %v369_v54 = vsub.f32 %v4639_v11, %v4228_v23 }
  0x8d   : > { %v4669_v27 = vmul.f32 %v367_v25, %v367_v25  ;;  %v4704_v59 = vmul.f32 %v369_v54, %v369_v54 }
  0x8f   : > { %v410_v30 = vmul.f32 %v408_v28, %v4669_v27  ;;  %v412_v3 = vmul.f32 %v408_v28, %v4704_v59 }
  0x91   : > { %v422_v32 = vadd.f32 %v418_v31, %v410_v30 }
  0x92   : > { %v4643_v13 = vpop.permute.xlu1 %361  ;;  %v4645_v14 = vpop.permute.xlu0 %351 }
  0x93   : > { %v426_v35 = vsub.f32 0.0, %v422_v32  ;;  %v368_v43 = vsub.f32 %v4645_v14, %v4228_v23  ;;  %v370_v55 = vsub.f32 %v4643_v13, %v4228_v23 }
  0x95   : > { %v430_v38 = vmul.f32 1.442695, %v426_v35  ;;  %v4693_v46 = vmul.f32 %v368_v43, %v368_v43  ;;  %v4706_v60 = vmul.f32 %v370_v55, %v370_v55 }
  0x97   : > { %4229 = vpow2.f32 %v430_v38  ;;  %v411_v49 = vmul.f32 %v408_v28, %v4693_v46  ;;  %v413_v5 = vmul.f32 %v408_v28, %v4706_v60 }
  0x99   : > { %v423_v53 = vadd.f32 %v419_v50, %v411_v49 }
  0x9a   : > { %v4649_v16 = vpop.permute.xlu1 %388  ;;  %v4651_v17 = vpop.permute.xlu0 %383 }
  0x9b   : > { %v397_v56 = vsub.f32 %v4649_v16, %v4227_v22  ;;  %v396_v57 = vsub.f32 %v4651_v17, %v4227_v22  ;;  %v427_v58 = vsub.f32 0.0, %v423_v53 }
  0x9d   : > { %v4230_v47 = vpop.eup %4229  ;;  %v4708_v61 = vmul.f32 %v397_v56, %v397_v56  ;;  %v4710_v62 = vmul.f32 %v396_v57, %v396_v57  ;;  %v432_v63 = vmul.f32 1.442695, %v427_v58 }
  0x9e   : > { %v438_v51 = vadd.f32 1e-10, %v4230_v47 }
  0x9f   : > { %4231 = vpow2.f32 %v432_v63  ;;  %v420_v4 = vmul.f32 %v416_v29, %v4710_v62  ;;  %v421_v6 = vmul.f32 %v416_v29, %v4708_v61 }
  0xa0   : > { %v445_v52 = vmul.f32 %v4695_v48, %v438_v51  ;;  %v457_v44 = vmul.f32 %v4686_v40, %v438_v51 }
  0xa1   : > { %v424_v7 = vadd.f32 %v420_v4, %v412_v3  ;;  %v425_v8 = vadd.f32 %v421_v6, %v413_v5 }
  0xa2   : > { %v550_v19 = vpop.permute.xlu1 %549  ;;  %v541_v21 = vpop.permute.xlu0 %540  ;;  %449 = vadd.xlane.f32.xlu2 %v445_v52 }
  0xa3   : > { %4131 = vpush %v541_v21  ;;  %v428_v9 = vsub.f32 0.0, %v424_v7 }
  0xa4   : > { %4133 = vpush %v550_v19  ;;  %v429_v19 = vsub.f32 0.0, %v425_v8 }
  0xa5   : > { %4135 = vpush %v674_v20  ;;  %v4232_v10 = vpop.eup %4231  ;;  %v434_v21 = vmul.f32 1.442695, %v428_v9 }
  0xa6   : > { %v439_v20 = vadd.f32 1e-10, %v4232_v10  ;;  %v436_v23 = vmul.f32 1.442695, %v429_v19 }
  0xa7   : > { %4233 = vpow2.f32 %v434_v21 }
  0xa8   : > { %v446_v22 = vmul.f32 %v4695_v48, %v439_v20  ;;  %4235 = vpow2.f32 %v436_v23  ;;  %v458_v28 = vmul.f32 %v4686_v40, %v439_v20 }
  0xaa   : > { %v683_v34 = vpop.permute.xlu0 %682  ;;  %451 = vadd.xlane.f32.xlu0 %v446_v22 }
  0xab   : > { %4137 = vpush %v683_v34 }
  0xad   : > { %v4234_v24 = vpop.eup %4233 }
  0xae   : > { %v4236_v25 = vpop.eup %4235  ;;  %v440_v30 = vadd.f32 1e-10, %v4234_v24 }
  0xaf   : > { %v441_v31 = vadd.f32 1e-10, %v4236_v25 }
  0xb0   : > { %v447_v29 = vmul.f32 %v4695_v48, %v440_v30  ;;  %v459_v34 = vmul.f32 %v4686_v40, %v440_v30 }
  0xb1   : > { %v448_v32 = vmul.f32 %v4695_v48, %v441_v31  ;;  %v460_v19 = vmul.f32 %v4686_v40, %v441_v31 }
  0xb2   : > { %463 = vadd.xlane.f32.xlu0 %v458_v28  ;;  %453 = vadd.xlane.f32.xlu1 %v447_v29 }
  0xb3   : > { %455 = vadd.xlane.f32.xlu2 %v448_v32 }
  0xba   : > { %465 = vadd.xlane.f32.xlu1 %v459_v34 }
  0xbb   : > { %461 = vadd.xlane.f32.xlu2 %v457_v44 }
  0xc3   : > { %467 = vadd.xlane.f32.xlu2 %v460_v19 }
  0xd4   : > { %s4132_s29 = spop %4131 }
  0xd5   : > { %s4134_s8 = spop %4133  ;;  %v543_v35 = vstv %s4132_s29 }
  0xd6   : > { %v552_v38 = vstv %s4134_s8  ;;  %v545_v41 = vmul.f32 %v543_v35, %v4669_v27  ;;  %v546_v42 = vmul.f32 %v543_v35, %v4693_v46  ;;  %v547_v43 = vmul.f32 %v543_v35, %v4704_v59  ;;  %s4136_s14 = spop %4135 }
  0xd7   : > { %v554_v47 = vmul.f32 %v552_v38, %v4667_v26  ;;  %v555_v49 = vmul.f32 %v552_v38, %v4691_v45  ;;  %v556_v50 = vmul.f32 %v552_v38, %v4710_v62  ;;  %v4728_v55 = vstv %s4136_s14  ;;  %s4532_s14 = smov 119  }
  0xd8   : > { %v548_v56 = vmul.f32 %v543_v35, %v4706_v60  ;;  %v557_v57 = vmul.f32 %v552_v38, %v4708_v61  ;;  %v678_v4 = vmul.f32 %v4728_v55, %v4669_v27  ;;  %v681_v7 = vmul.f32 %v4728_v55, %v4706_v60 }
  0xd9   : > { %v558_v52 = vadd.f32 %v554_v47, %v545_v41  ;;  %v559_v53 = vadd.f32 %v555_v49, %v546_v42  ;;  %v560_v54 = vadd.f32 %v556_v50, %v547_v43  ;;  %v679_v20 = vmul.f32 %v4728_v55, %v4693_v46 }
  0xda   : > { %v561_v22 = vadd.f32 %v557_v57, %v548_v56 }
  0xdb   : > { %v564_v51 = vsub.f32 0.0, %v560_v54  ;;  %v562_v63 = vsub.f32 0.0, %v558_v52  ;;  %v563_v3 = vsub.f32 0.0, %v559_v53 }
  0xdc   : > { %s4138_s15 = spop %4137  ;;  %v565_v34 = vsub.f32 0.0, %v561_v22 }
  0xdd   : > { %v685_v58 = vstv %s4138_s15  ;;  %v570_v9 = vmul.f32 1.442695, %v564_v51  ;;  %v566_v10 = vmul.f32 1.442695, %v562_v63  ;;  %v568_v24 = vmul.f32 1.442695, %v563_v3 }
  0xde   : > { %v687_v5 = vmul.f32 %v685_v58, %v4667_v26  ;;  %v688_v6 = vmul.f32 %v685_v58, %v4691_v45  ;;  %v690_v8 = vmul.f32 %v685_v58, %v4708_v61  ;;  %v572_v43 = vmul.f32 1.442695, %v565_v34 }
  0xdf   : > { %4237 = vpow2.f32 %v570_v9 }
  0xe0   : > { %v691_v21 = vadd.f32 %v687_v5, %v678_v4  ;;  %v694_v23 = vadd.f32 %v690_v8, %v681_v7  ;;  %v692_v25 = vadd.f32 %v688_v6, %v679_v20  ;;  %4239 = vpow2.f32 %v566_v10 }
  0xe1   : > { %4241 = vpow2.f32 %v568_v24  ;;  %v689_v7 = vmul.f32 %v685_v58, %v4710_v62  ;;  %v680_v10 = vmul.f32 %v4728_v55, %v4704_v59 }
  0xe2   : > { %v695_v30 = vsub.f32 0.0, %v691_v21  ;;  %v698_v28 = vsub.f32 0.0, %v694_v23  ;;  %v696_v35 = vsub.f32 0.0, %v692_v25 }
  0xe3   : > { %v693_v19 = vadd.f32 %v689_v7, %v680_v10 }
  0xe4   : > { %v699_v29 = vmul.f32 1.442695, %v695_v30  ;;  %v705_v32 = vmul.f32 1.442695, %v698_v28  ;;  %v701_v47 = vmul.f32 1.442695, %v696_v35 }
  0xe5   : > { %v4238_v31 = vpop.eup %4237  ;;  %v697_v22 = vsub.f32 0.0, %v693_v19 }
  0xe6   : > { %4243 = vpow2.f32 %v699_v29  ;;  %v4240_v38 = vpop.eup %4239  ;;  %v576_v41 = vadd.f32 1e-10, %v4238_v31 }
  0xe7   : > { %4245 = vpow2.f32 %v705_v32  ;;  %v574_v42 = vadd.f32 1e-10, %v4240_v38  ;;  %v4242_v49 = vpop.eup %4241  ;;  %v703_v23 = vmul.f32 1.442695, %v697_v22 }
  0xe8   : > { %v580_v44 = vmul.f32 %v576_v41, %v4695_v48  ;;  %4247 = vpow2.f32 %v572_v43  ;;  %v575_v51 = vadd.f32 1e-10, %v4242_v49  ;;  %v592_v55 = vmul.f32 %v4686_v40, %v576_v41 }
  0xe9   : > { %v590_v50 = vmul.f32 %v4686_v40, %v574_v42  ;;  %v578_v52 = vmul.f32 %v574_v42, %v4695_v48  ;;  %4249 = vpow2.f32 %v701_v47 }
  0xea   : > { %586 = vadd.xlane.f32.xlu0 %v580_v44  ;;  %v579_v5 = vmul.f32 %v575_v51, %v4695_v48  ;;  %v591_v25 = vmul.f32 %v4686_v40, %v575_v51  ;;  %4251 = vpow2.f32 %v703_v23 }
  0xeb   : > { %594 = vadd.xlane.f32.xlu1 %v590_v50  ;;  %582 = vadd.xlane.f32.xlu2 %v578_v52 }
  0xec   : > { %v4244_v53 = vpop.eup %4243 }
  0xed   : > { %v4246_v54 = vpop.eup %4245  ;;  %v707_v56 = vadd.f32 1e-10, %v4244_v53 }
  0xee   : > { %v710_v57 = vadd.f32 1e-10, %v4246_v54  ;;  %v4248_v4 = vpop.eup %4247 }
  0xef   : > { %v711_v3 = vmul.f32 %v707_v56, %v4695_v48  ;;  %v4250_v6 = vpop.eup %4249  ;;  %v577_v9 = vadd.f32 1e-10, %v4248_v4  ;;  %v723_v24 = vmul.f32 %v4686_v40, %v707_v56 }
  0xf0   : > { %v714_v63 = vmul.f32 %v710_v57, %v4695_v48  ;;  %v708_v8 = vadd.f32 1e-10, %v4250_v6  ;;  %v4252_v30 = vpop.eup %4251  ;;  %v726_v34 = vmul.f32 %v4686_v40, %v710_v57 }
  0xf1   : > { %v581_v21 = vmul.f32 %v577_v9, %v4695_v48  ;;  %v709_v28 = vadd.f32 1e-10, %v4252_v30  ;;  %v593_v32 = vmul.f32 %v4686_v40, %v577_v9 }
  0xf2   : > { %721 = vadd.xlane.f32.xlu0 %v714_v63  ;;  %v712_v20 = vmul.f32 %v708_v8, %v4695_v48  ;;  %v724_v58 = vmul.f32 %v4686_v40, %v708_v8 }
  0xf3   : > { %715 = vadd.xlane.f32.xlu1 %v711_v3  ;;  %584 = vadd.xlane.f32.xlu2 %v579_v5  ;;  %v725_v29 = vmul.f32 %v4686_v40, %v709_v28  ;;  %v713_v35 = vmul.f32 %v709_v28, %v4695_v48 }
  0xfb   : > { %717 = vadd.xlane.f32.xlu1 %v712_v20  ;;  %588 = vadd.xlane.f32.xlu2 %v581_v21 }
 0x103   : > { %727 = vadd.xlane.f32.xlu1 %v723_v24  ;;  %596 = vadd.xlane.f32.xlu2 %v591_v25 }
 0x10b   : > { %729 = vadd.xlane.f32.xlu1 %v724_v58  ;;  %598 = vadd.xlane.f32.xlu2 %v592_v55 }
 0x113   : > { %731 = vadd.xlane.f32.xlu1 %v725_v29  ;;  %600 = vadd.xlane.f32.xlu2 %v593_v32 }
 0x115   : > { %v4763_v38 = vpop.xlane.xlu2 %449 }
 0x11b   : > { %733 = vadd.xlane.f32.xlu1 %v726_v34  ;;  %719 = vadd.xlane.f32.xlu2 %v713_v35 }
 0x11d   : > { %v452_v31 = vpop.xlane.xlu0 %451 }
 0x125   : > { %v464_v41 = vpop.xlane.xlu0 %463  ;;  %v4767_v53 = vpop.xlane.xlu1 %453 }
 0x126   : > { %4253 = vrcp.f32 %v464_v41  ;;  %v4765_v42 = vpop.xlane.xlu2 %455  ;;  %v495_v49 = vand.u32 2147483648, %v464_v41  ;;  %v493_v52 = vand.u32 2147483647, %v464_v41  ;;  %vm489_vm2 = vweird.f32 %v464_v41 }
 0x128   : > { %v496_v57 = vor.u32 1.1754944e-38, %v495_v49  ;;  %vm494_vm4 = vcmp.eq.f32.partialorder %v493_v52, 8.507059e+37 }
 0x12c   : > { %v4254_v43 = vpop.eup %4253 }
 0x12d   : > { %v485_v44 = vmul.f32 %v4254_v43, %v464_v41  ;;  %vm490_vm1 = vweird.f32 %v4254_v43  ;;  %v4771_v4 = vpop.xlane.xlu1 %465 }
 0x12e   : > { %v4769_v54 = vpop.xlane.xlu2 %461  ;;  %vm491_vm3 = vmor %vm489_vm2, %vm490_vm1  ;;  %4255 = vrcp.f32 %v4771_v4  ;;  %vm504_vm13 = vweird.f32 %v4771_v4 }
 0x12f   : > { %v486_v47 = vsub.f32 1.0, %v485_v44 }
 0x131   : > { %v487_v50 = vmul.f32 %v4254_v43, %v486_v47 }
 0x133   : > { %815 = vrot.lane.b32.xlu2 %v4608_v2, %s4526_s16  ;;  %v488_v56 = vadd.f32 %v4254_v43, %v487_v50 }
 0x134   : > { %806 = vrot.lane.b32.xlu1 %v4603_v0, %s4526_s16  ;;  %v4788_v22 = vpop.eup %4255 }
 0x135   : > { %v492_v51 = vsel %vm491_vm3, %v4254_v43, %v488_v56  ;;  %v500_v24 = vmul.f32 %v4788_v22, %v4771_v4  ;;  %v4797_v43 = vsel %vm529_vm5, 1.0, %v6824_v39  ;;  %vm505_vm11 = vweird.f32 %v4788_v22 }
 0x136   : > { %v497_v63 = vsel %vm494_vm4, %v496_v57, %v492_v51  ;;  %v4773_v5 = vpop.xlane.xlu2 %467  ;;  %v510_v57 = vand.u32 2147483648, %v4771_v4  ;;  %v4805_v51 = vsel %vm662_vm8, 1.0, %v6824_v39  ;;  %vm4813_vm14 = vmor %vm504_vm13, %vm505_vm11 }
 0x137   : > { %v498_v3 = vmul.f32 %v497_v63, %v452_v31  ;;  %v501_v28 = vsub.f32 1.0, %v500_v24 }
 0x139   : > { %v502_v41 = vmul.f32 %v4788_v22, %v501_v28 }
 0x13b   : > { %v503_v24 = vadd.f32 %v4788_v22, %v502_v41 }
 0x15e   : > { %v4775_v6 = vpop.xlane.xlu1 %594  ;;  %v4777_v7 = vpop.xlane.xlu2 %582 }
 0x166   : > { %v4779_v8 = vpop.xlane.xlu1 %715  ;;  %v585_v9 = vpop.xlane.xlu2 %584 }
 0x16e   : > { %v4781_v10 = vpop.xlane.xlu1 %717  ;;  %v4783_v19 = vpop.xlane.xlu2 %588 }
 0x176   : > { %v4786_v20 = vpop.xlane.xlu1 %727  ;;  %v597_v21 = vpop.xlane.xlu2 %596 }
 0x177   : > { %4257 = vrcp.f32 %v597_v21  ;;  %v628_v29 = vand.u32 2147483648, %v597_v21  ;;  %v626_v34 = vand.u32 2147483647, %v597_v21  ;;  %vm622_vm7 = vweird.f32 %v597_v21 }
 0x179   : > { %v629_v44 = vor.u32 1.1754944e-38, %v628_v29  ;;  %vm627_vm10 = vcmp.eq.f32.partialorder %v626_v34, 8.507059e+37 }
 0x17d   : > { %v4258_v23 = vpop.eup %4257 }
 0x17e   : > { %v4792_v25 = vpop.xlane.xlu1 %729  ;;  %v599_v58 = vpop.xlane.xlu2 %598  ;;  %v618_v55 = vmul.f32 %v4258_v23, %v597_v21  ;;  %vm623_vm6 = vweird.f32 %v4258_v23 }
 0x17f   : > { %4259 = vrcp.f32 %v599_v58  ;;  %vm624_vm9 = vmor %vm622_vm7, %vm623_vm6  ;;  %v641_v29 = vand.u32 2147483647, %v599_v58  ;;  %vm637_vm15 = vweird.f32 %v599_v58  ;;  %vm755_vm13 = vweird.f32 %v4792_v25 }
 0x180   : > { %v619_v30 = vsub.f32 1.0, %v618_v55  ;;  %v533_v55 = vmul.f32 %v4797_v43, %v498_v3 }
 0x181   : > { %vm642_vm1 = vcmp.eq.f32.partialorder %v641_v29, 8.507059e+37 }
 0x182   : > { %v620_v32 = vmul.f32 %v4258_v23, %v619_v30 }
 0x184   : > { %v621_v35 = vadd.f32 %v4258_v23, %v620_v32  ;;  %v508_v32 = vand.u32 2147483647, %v4771_v4 }
 0x185   : > { %v4260_v31 = vpop.eup %4259 }
 0x186   : > { %v4800_v47 = vpop.xlane.xlu1 %731  ;;  %v601_v49 = vpop.xlane.xlu2 %600  ;;  %v625_v50 = vsel %vm624_vm9, %v4258_v23, %v621_v35  ;;  %v633_v52 = vmul.f32 %v4260_v31, %v599_v58  ;;  %v643_v23 = vand.u32 2147483648, %v599_v58  ;;  %vm638_vm12 = vweird.f32 %v4260_v31 }
 0x187   : > { %4261 = vrcp.f32 %v4800_v47  ;;  %v630_v56 = vsel %vm627_vm10, %v629_v44, %v625_v50  ;;  %vm639_vm0 = vmor %vm637_vm15, %vm638_vm12  ;;  %vm509_vm2 = vcmp.eq.f32.partialorder %v508_v32, 8.507059e+37  ;;  %v656_v1 = vand.u32 2147483647, %v601_v49 }
 0x188   : > { %4263 = vrcp.f32 %v601_v49  ;;  %v631_v63 = vmul.f32 %v630_v56, %v585_v9  ;;  %v634_v21 = vsub.f32 1.0, %v633_v52  ;;  %v644_v44 = vor.u32 1.1754944e-38, %v643_v23 }
 0x189   : > { %v507_v52 = vsel %vm4813_vm14, %v4788_v22, %v503_v24  ;;  %v511_v56 = vor.u32 1.1754944e-38, %v510_v57  ;;  %v658_v39 = vand.u32 2147483648, %v601_v49  ;;  %v776_v23 = vand.u32 2147483648, %v4800_v47 }
 0x18a   : > { %v666_v30 = vmul.f32 %v4805_v51, %v631_v63  ;;  %v635_v28 = vmul.f32 %v4260_v31, %v634_v21  ;;  %v587_v21 = vpop.xlane.xlu0 %586  ;;  %v774_v22 = vand.u32 2147483647, %v4800_v47  ;;  %vm770_vm5 = vweird.f32 %v4800_v47 }
 0x18b   : > { %v512_v58 = vsel %vm509_vm2, %v511_v56, %v507_v52  ;;  %vm652_vm6 = vweird.f32 %v601_v49  ;;  %vm657_vm9 = vcmp.eq.f32.partialorder %v656_v1, 8.507059e+37  ;;  %v777_v29 = vor.u32 1.1754944e-38, %v776_v23 }
 0x18c   : > { %v636_v35 = vadd.f32 %v4260_v31, %v635_v28  ;;  %v4817_v41 = vadd.f32 %v666_v30, %v533_v55  ;;  %v513_v57 = vmul.f32 %v512_v58, %v4767_v53  ;;  %vm795_vm10 = vcmp.eq.s32.totalorder %v4675_v36, 2 }
 0x18d   : > { %v4262_v34 = vpop.eup %4261  ;;  %vm775_vm11 = vcmp.eq.f32.partialorder %v774_v22, 8.507059e+37  ;;  %v6865_v56 = vmov 0.0   ;;  %vm519_vm2 = vweird.f32 %v4773_v5 }
 0x18e   : > { %v4264_v3 = vpop.eup %4263  ;;  %v766_v50 = vmul.f32 %v4262_v34, %v4800_v47  ;;  %v640_v4 = vsel %vm639_vm0, %v4260_v31, %v636_v35  ;;  %vm771_vm3 = vweird.f32 %v4262_v34  ;;  %v720_v47 = vpop.xlane.xlu2 %719  ;;  %v534_v53 = vmul.f32 %v4797_v43, %v513_v57 }
 0x18f   : > { %v648_v63 = vmul.f32 %v4264_v3, %v601_v49  ;;  %v645_v33 = vsel %vm642_vm1, %v644_v44, %v640_v4  ;;  %vm653_vm4 = vweird.f32 %v4264_v3  ;;  %vm772_vm7 = vmor %vm770_vm5, %vm771_vm3  ;;  %v4834_v1 = vsel %vm795_vm10, 1.0, %v6865_v56 }
 0x190   : > { %v646_v55 = vmul.f32 %v645_v33, %v587_v21  ;;  %v767_v30 = vsub.f32 1.0, %v766_v50  ;;  %vm654_vm8 = vmor %vm652_vm6, %vm653_vm4  ;;  %v659_v33 = vor.u32 1.1754944e-38, %v658_v39  ;;  %vm928_vm6 = vcmp.eq.s32.totalorder %v4675_v36, 3 }
 0x191   : > { %v649_v28 = vsub.f32 1.0, %v648_v63  ;;  %v4839_v63 = vpop.xlane.xlu1 %733 }
 0x192   : > { %v768_v9 = vmul.f32 %v4262_v34, %v767_v30  ;;  %v667_v35 = vmul.f32 %v4805_v51, %v646_v55 }
 0x193   : > { %v650_v37 = vmul.f32 %v4264_v3, %v649_v28 }
 0x194   : > { %v769_v24 = vadd.f32 %v4262_v34, %v768_v9  ;;  %v671_v39 = vadd.f32 %v667_v35, %v534_v53 }
 0x195   : > { %v651_v31 = vadd.f32 %v4264_v3, %v650_v37 }
 0x196   : > { %v773_v44 = vsel %vm772_vm7, %v4262_v34, %v769_v24  ;;  %v816_v34 = vpop.permute.xlu2 %815 }
 0x197   : > { %v655_v32 = vsel %vm654_vm8, %v4264_v3, %v651_v31  ;;  %v778_v52 = vsel %vm775_vm11, %v777_v29, %v773_v44 }
 0x198   : > { %v660_v50 = vsel %vm657_vm9, %v659_v33, %v655_v32  ;;  %v779_v49 = vmul.f32 %v778_v52, %v720_v47  ;;  %vm785_vm9 = vweird.f32 %v4839_v63 }
 0x199   : > { %v4830_v37 = vmul.f32 %v660_v50, %v4783_v19 }
 0x19a   : > { %v800_v4 = vmul.f32 %v4834_v1, %v779_v49 }
 0x19c   : > { %v4837_v3 = vadd.f32 %v800_v4, %v671_v39 }
 0x1a6   : > { %v807_v21 = vpop.permute.xlu1 %806 }
 0x1a7   : > { %4139 = vpush %v807_v21 }
 0x1a8   : > { %4141 = vpush %v816_v34 }
 0x1d8   : > { %s4140_s17 = spop %4139 }
 0x1d9   : > { %v809_v19 = vstv %s4140_s17  ;;  %s4142_s18 = spop %4141 }
 0x1da   : > { %v811_v28 = vmul.f32 %v809_v19, %v4669_v27  ;;  %v812_v58 = vmul.f32 %v809_v19, %v4693_v46  ;;  %v814_v55 = vmul.f32 %v809_v19, %v4706_v60  ;;  %v818_v30 = vstv %s4142_s18 }
 0x1db   : > { %v820_v23 = vmul.f32 %v818_v30, %v4667_v26  ;;  %v821_v9 = vmul.f32 %v818_v30, %v4691_v45  ;;  %v823_v22 = vmul.f32 %v818_v30, %v4708_v61  ;;  %v813_v32 = vmul.f32 %v809_v19, %v4704_v59 }
 0x1dc   : > { %v822_v35 = vmul.f32 %v818_v30, %v4710_v62 }
 0x1dd   : > { %v824_v31 = vadd.f32 %v820_v23, %v811_v28  ;;  %v825_v57 = vadd.f32 %v821_v9, %v812_v58  ;;  %v827_v24 = vadd.f32 %v823_v22, %v814_v55 }
 0x1de   : > { %v826_v47 = vadd.f32 %v822_v35, %v813_v32  ;;  %v4859_v32 = vpop.xlane.xlu0 %721 }
 0x1df   : > { %v831_v33 = vsub.f32 0.0, %v827_v24  ;;  %v828_v29 = vsub.f32 0.0, %v824_v31  ;;  %v829_v44 = vsub.f32 0.0, %v825_v57 }
 0x1e0   : > { %v830_v49 = vsub.f32 0.0, %v826_v47 }
 0x1e1   : > { %v838_v50 = vmul.f32 1.442695, %v831_v33  ;;  %v832_v52 = vmul.f32 1.442695, %v828_v29  ;;  %v834_v53 = vmul.f32 1.442695, %v829_v44 }
 0x1e2   : > { %v836_v58 = vmul.f32 1.442695, %v830_v49 }
 0x1e3   : > { %4265 = vpow2.f32 %v838_v50 }
 0x1e4   : > { %4267 = vpow2.f32 %v832_v52 }
 0x1e5   : > { %4269 = vpow2.f32 %v834_v53 }
 0x1e6   : > { %4271 = vpow2.f32 %v836_v58 }
 0x1e7   : > { %4273 = vrcp.f32 %v4792_v25 }
 0x1e8   : > { %4275 = vrcp.f32 %v4773_v5 }
 0x1e9   : > { %v4266_v39 = vpop.eup %4265  ;;  %4277 = vrcp.f32 %v4839_v63 }
 0x1ea   : > { %v4268_v4 = vpop.eup %4267  ;;  %v843_v34 = vadd.f32 1e-10, %v4266_v39 }
 0x1eb   : > { %v840_v21 = vadd.f32 1e-10, %v4268_v4  ;;  %v4270_v30 = vpop.eup %4269 }
 0x1ec   : > { %v847_v28 = vmul.f32 %v843_v34, %v4695_v48  ;;  %v841_v23 = vadd.f32 1e-10, %v4270_v30  ;;  %v4272_v22 = vpop.eup %4271  ;;  %v859_v29 = vmul.f32 %v4686_v40, %v843_v34 }
 0x1ed   : > { %v856_v19 = vmul.f32 %v4686_v40, %v840_v21  ;;  %v844_v55 = vmul.f32 %v840_v21, %v4695_v48  ;;  %v842_v31 = vadd.f32 1e-10, %v4272_v22  ;;  %v4274_v50 = vpop.eup %4273 }
 0x1ee   : > { %854 = vadd.xlane.f32.xlu1 %v847_v28  ;;  %v845_v9 = vmul.f32 %v841_v23, %v4695_v48  ;;  %v857_v24 = vmul.f32 %v4686_v40, %v841_v23  ;;  %v751_v52 = vmul.f32 %v4274_v50, %v4792_v25  ;;  %v4868_v49 = vpop.eup %4275  ;;  %vm756_vm12 = vweird.f32 %v4274_v50 }
 0x1ef   : > { %860 = vadd.xlane.f32.xlu2 %v856_v19  ;;  %848 = vadd.xlane.f32.xlu0 %v844_v55  ;;  %v846_v57 = vmul.f32 %v842_v31, %v4695_v48  ;;  %v858_v33 = vmul.f32 %v4686_v40, %v842_v31  ;;  %v515_v39 = vmul.f32 %v4868_v49, %v4773_v5  ;;  %v4873_v21 = vpop.eup %4277  ;;  %v761_v28 = vand.u32 2147483648, %v4792_v25  ;;  %vm757_vm14 = vmor %vm755_vm13, %vm756_vm12 }
 0x1f0   : > { %v752_v53 = vsub.f32 1.0, %v751_v52  ;;  %v759_v19 = vand.u32 2147483647, %v4792_v25  ;;  %v781_v30 = vmul.f32 %v4873_v21, %v4839_v63  ;;  %vm520_vm0 = vweird.f32 %v4868_v49 }
 0x1f1   : > { %v516_v58 = vsub.f32 1.0, %v515_v39  ;;  %v762_v23 = vor.u32 1.1754944e-38, %v761_v28  ;;  %vm4886_vm3 = vmor %vm519_vm2, %vm520_vm0  ;;  %v523_v28 = vand.u32 2147483647, %v4773_v5  ;;  %vm786_vm8 = vweird.f32 %v4873_v21 }
 0x1f2   : > { %vm760_vm15 = vcmp.eq.f32.partialorder %v759_v19, 8.507059e+37  ;;  %vm4906_vm10 = vmor %vm785_vm9, %vm786_vm8  ;;  %vm474_vm8 = vweird.f32 %v4769_v54 }
 0x1f3   : > { %v517_v22 = vmul.f32 %v4868_v49, %v516_v58  ;;  %vm524_vm12 = vcmp.eq.f32.partialorder %v523_v28, 8.507059e+37 }
 0x1f5   : > { %v518_v52 = vadd.f32 %v4868_v49, %v517_v22 }
 0x1f7   : > { %850 = vadd.xlane.f32.xlu0 %v845_v9 }
 0x1ff   : > { %852 = vadd.xlane.f32.xlu0 %v846_v57 }
 0x207   : > { %862 = vadd.xlane.f32.xlu0 %v857_v24  ;;  %948 = vrot.lane.b32.xlu1 %v4608_v2, %s4527_s19 }
 0x20f   : > { %864 = vadd.xlane.f32.xlu0 %v858_v33  ;;  %v782_v33 = vsub.f32 1.0, %v781_v30 }
 0x211   : > { %v783_v39 = vmul.f32 %v4873_v21, %v782_v33 }
 0x213   : > { %v784_v33 = vadd.f32 %v4873_v21, %v783_v39 }
 0x217   : > { %866 = vadd.xlane.f32.xlu0 %v859_v29 }
 0x22b   : > { %939 = vrot.lane.b32.xlu0 %v4603_v0, %s4527_s19  ;;  %v753_v0 = vmul.f32 %v4274_v50, %v752_v53  ;;  %s4533_s19 = smov 118  }
 0x22d   : > { %v754_v34 = vadd.f32 %v4274_v50, %v753_v0 }
 0x22f   : > { %v758_v55 = vsel %vm757_vm14, %v4274_v50, %v754_v34 }
 0x230   : > { %v763_v31 = vsel %vm760_vm15, %v762_v23, %v758_v55  ;;  %v525_v55 = vand.u32 2147483648, %v4773_v5  ;;  %v791_v5 = vand.u32 2147483648, %v4839_v63 }
 0x231   : > { %v764_v25 = vmul.f32 %v763_v31, %v4781_v10  ;;  %v522_v10 = vsel %vm4886_vm3, %v4868_v49, %v518_v52  ;;  %v789_v52 = vand.u32 2147483647, %v4839_v63  ;;  %v788_v63 = vsel %vm4906_vm10, %v4873_v21, %v784_v33 }
 0x233   : > { %v799_v30 = vmul.f32 %v4834_v1, %v764_v25  ;;  %vm790_vm14 = vcmp.eq.f32.partialorder %v789_v52, 8.507059e+37 }
 0x235   : > { %v803_v25 = vadd.f32 %v799_v30, %v4817_v41  ;;  %v792_v41 = vor.u32 1.1754944e-38, %v791_v5 }
 0x262   : > { %v4861_v35 = vpop.xlane.xlu0 %848 }
 0x26a   : > { %v851_v44 = vpop.xlane.xlu0 %850 }
 0x272   : > { %v4866_v47 = vpop.xlane.xlu0 %852 }
 0x27a   : > { %v863_v4 = vpop.xlane.xlu0 %862 }
 0x27b   : > { %4279 = vrcp.f32 %v863_v4  ;;  %v894_v50 = vand.u32 2147483648, %v863_v4  ;;  %v892_v0 = vand.u32 2147483647, %v863_v4  ;;  %vm888_vm4 = vweird.f32 %v863_v4 }
 0x27d   : > { %v895_v23 = vor.u32 1.1754944e-38, %v894_v50  ;;  %vm893_vm7 = vcmp.eq.f32.partialorder %v892_v0, 8.507059e+37 }
 0x281   : > { %v4280_v9 = vpop.eup %4279 }
 0x282   : > { %v884_v57 = vmul.f32 %v4280_v9, %v863_v4  ;;  %v865_v24 = vpop.xlane.xlu0 %864  ;;  %vm889_vm1 = vweird.f32 %v4280_v9 }
 0x283   : > { %4281 = vrcp.f32 %v865_v24  ;;  %vm890_vm5 = vmor %vm888_vm4, %vm889_vm1  ;;  %v909_v50 = vand.u32 2147483648, %v865_v24  ;;  %v907_v34 = vand.u32 2147483647, %v865_v24  ;;  %vm903_vm13 = vweird.f32 %v865_v24 }
 0x284   : > { %v885_v29 = vsub.f32 1.0, %v884_v57 }
 0x285   : > { %vm908_vm0 = vcmp.eq.f32.partialorder %v907_v34, 8.507059e+37 }
 0x286   : > { %v886_v53 = vmul.f32 %v4280_v9, %v885_v29 }
 0x288   : > { %v887_v58 = vadd.f32 %v4280_v9, %v886_v53 }
 0x289   : > { %v4282_v19 = vpop.eup %4281 }
 0x28a   : > { %v891_v22 = vsel %vm890_vm5, %v4280_v9, %v887_v58  ;;  %v899_v31 = vmul.f32 %v4282_v19, %v865_v24  ;;  %v867_v57 = vpop.xlane.xlu0 %866  ;;  %v4904_v9 = vsel %vm928_vm6, 1.0, %v6865_v56  ;;  %vm904_vm11 = vweird.f32 %v4282_v19 }
 0x28b   : > { %v896_v4 = vsel %vm893_vm7, %v895_v23, %v891_v22  ;;  %4283 = vrcp.f32 %v867_v57  ;;  %vm905_vm15 = vmor %vm903_vm13, %vm904_vm11  ;;  %v924_v5 = vand.u32 2147483648, %v867_v57  ;;  %v922_v52 = vand.u32 2147483647, %v867_v57 }
 0x28c   : > { %v897_v49 = vmul.f32 %v896_v4, %v851_v44  ;;  %v900_v29 = vsub.f32 1.0, %v899_v31  ;;  %v526_v44 = vor.u32 1.1754944e-38, %v525_v55  ;;  %v910_v31 = vor.u32 1.1754944e-38, %v909_v50  ;;  %v855_v55 = vpop.xlane.xlu1 %854 }
 0x28d   : > { %v793_v4 = vsel %vm790_vm14, %v792_v41, %v788_v63  ;;  %vm918_vm2 = vweird.f32 %v867_v57  ;;  %vm923_vm4 = vcmp.eq.f32.partialorder %v922_v52, 8.507059e+37  ;;  %vm607_vm7 = vweird.f32 %v4775_v6 }
 0x28e   : > { %v932_v0 = vmul.f32 %v4904_v9, %v897_v49  ;;  %v901_v39 = vmul.f32 %v4282_v19, %v900_v29  ;;  %v527_v22 = vsel %vm524_vm12, %v526_v44, %v522_v10  ;;  %v794_v33 = vmul.f32 %v793_v4, %v4859_v32 }
 0x28f   : > { %v528_v21 = vmul.f32 %v527_v22, %v4765_v42  ;;  %vm740_vm12 = vweird.f32 %v4786_v20 }
 0x290   : > { %v4914_v58 = vadd.f32 %v932_v0, %v803_v25  ;;  %v902_v30 = vadd.f32 %v4282_v19, %v901_v39  ;;  %v801_v32 = vmul.f32 %v4834_v1, %v794_v33 }
 0x291   : > { %v4284_v23 = vpop.eup %4283  ;;  %v535_v42 = vmul.f32 %v4797_v43, %v528_v21 }
 0x292   : > { %v906_v49 = vsel %vm905_vm15, %v4282_v19, %v902_v30  ;;  %v914_v29 = vmul.f32 %v4284_v23, %v867_v57  ;;  %vm919_vm1 = vweird.f32 %v4284_v23  ;;  %v668_v19 = vmul.f32 %v4805_v51, %v4830_v37 }
 0x293   : > { %v911_v28 = vsel %vm908_vm0, %v910_v31, %v906_v49  ;;  %vm920_vm3 = vmor %vm918_vm2, %vm919_vm1 }
 0x294   : > { %v912_v11 = vmul.f32 %v911_v28, %v4866_v47  ;;  %v915_v53 = vsub.f32 1.0, %v914_v29  ;;  %v925_v47 = vor.u32 1.1754944e-38, %v924_v5  ;;  %v672_v39 = vadd.f32 %v668_v19, %v535_v42  ;;  %v949_v44 = vpop.permute.xlu1 %948 }
 0x296   : > { %v933_v24 = vmul.f32 %v4904_v9, %v912_v11  ;;  %v916_v10 = vmul.f32 %v4284_v23, %v915_v53  ;;  %v805_v41 = vadd.f32 %v801_v32, %v672_v39 }
 0x298   : > { %v4923_v25 = vadd.f32 %v933_v24, %v4837_v3  ;;  %v917_v50 = vadd.f32 %v4284_v23, %v916_v10 }
 0x29a   : > { %v921_v0 = vsel %vm920_vm3, %v4284_v23, %v917_v50 }
 0x29b   : > { %v926_v11 = vsel %vm923_vm4, %v925_v47, %v921_v0 }
 0x29c   : > { %v927_v34 = vmul.f32 %v926_v11, %v855_v55 }
 0x29d   : > { %v940_v63 = vpop.permute.xlu0 %939 }
 0x29e   : > { %v934_v37 = vmul.f32 %v4904_v9, %v927_v34  ;;  %4143 = vpush %v940_v63 }
 0x29f   : > { %4145 = vpush %v949_v44 }
 0x2a0   : > { %v4928_v3 = vadd.f32 %v934_v37, %v805_v41 }
 0x2cf   : > { %s4144_s20 = spop %4143 }
 0x2d0   : > { %v942_v57 = vstv %s4144_s20  ;;  %s4146_s21 = spop %4145  ;;  %s4534_s20 = smov 117  }
 0x2d1   : > { %v944_v30 = vmul.f32 %v942_v57, %v4669_v27  ;;  %v945_v23 = vmul.f32 %v942_v57, %v4693_v46  ;;  %v946_v22 = vmul.f32 %v942_v57, %v4704_v59  ;;  %v951_v31 = vstv %s4146_s21  ;;  %s4535_s21 = smov 116  }
 0x2d2   : > { %v953_v4 = vmul.f32 %v951_v31, %v4667_v26  ;;  %v954_v49 = vmul.f32 %v951_v31, %v4691_v45  ;;  %v955_v29 = vmul.f32 %v951_v31, %v4710_v62  ;;  %v947_v5 = vmul.f32 %v942_v57, %v4706_v60 }
 0x2d3   : > { %v956_v24 = vmul.f32 %v951_v31, %v4708_v61 }
 0x2d4   : > { %v957_v28 = vadd.f32 %v953_v4, %v944_v30  ;;  %v958_v55 = vadd.f32 %v954_v49, %v945_v23  ;;  %v959_v53 = vadd.f32 %v955_v29, %v946_v22 }
 0x2d5   : > { %v960_v50 = vadd.f32 %v956_v24, %v947_v5 }
 0x2d6   : > { %v962_v21 = vsub.f32 0.0, %v958_v55  ;;  %v961_v33 = vsub.f32 0.0, %v957_v28  ;;  %v963_v10 = vsub.f32 0.0, %v959_v53  ;;  %v4950_v28 = vld [vmem:[%s6819_s6] sm:$0xff]  ;;  %v861_v55 = vpop.xlane.xlu2 %860 }
 0x2d7   : > { %v964_v42 = vsub.f32 0.0, %v960_v50  ;;  %vm873_vm0 = vweird.f32 %v861_v55 }
 0x2d8   : > { %v967_v52 = vmul.f32 1.442695, %v962_v21  ;;  %v965_v19 = vmul.f32 1.442695, %v961_v33  ;;  %v969_v47 = vmul.f32 1.442695, %v963_v10 }
 0x2d9   : > { %v971_v44 = vmul.f32 1.442695, %v964_v42 }
 0x2da   : > { %4285 = vpow2.f32 %v967_v52 }
 0x2db   : > { %4287 = vpow2.f32 %v965_v19 }
 0x2dc   : > { %4289 = vpow2.f32 %v969_v47 }
 0x2dd   : > { %4291 = vpow2.f32 %v971_v44  ;;  %v613_v44 = vand.u32 2147483648, %v4775_v6 }
 0x2de   : > { %4293 = vrcp.f32 %v4775_v6 }
 0x2df   : > { %4295 = vrcp.f32 %v4769_v54 }
 0x2e0   : > { %v4286_v32 = vpop.eup %4285  ;;  %4297 = vrcp.f32 %v4786_v20 }
 0x2e1   : > { %v4288_v0 = vpop.eup %4287  ;;  %v974_v11 = vadd.f32 1e-10, %v4286_v32  ;;  %4299 = vrcp.f32 %v861_v55 }
 0x2e2   : > { %v973_v39 = vadd.f32 1e-10, %v4288_v0  ;;  %v4290_v37 = vpop.eup %4289 }
 0x2e3   : > { %v978_v34 = vmul.f32 %v974_v11, %v4695_v48  ;;  %v975_v57 = vadd.f32 1e-10, %v4290_v37  ;;  %v4292_v23 = vpop.eup %4291  ;;  %v990_v4 = vmul.f32 %v4686_v40, %v974_v11 }
 0x2e4   : > { %v989_v63 = vmul.f32 %v4686_v40, %v973_v39  ;;  %v977_v41 = vmul.f32 %v973_v39, %v4695_v48  ;;  %v976_v22 = vadd.f32 1e-10, %v4292_v23  ;;  %v4294_v53 = vpop.eup %4293 }
 0x2e5   : > { %983 = vadd.xlane.f32.xlu0 %v978_v34  ;;  %v979_v30 = vmul.f32 %v975_v57, %v4695_v48  ;;  %v991_v49 = vmul.f32 %v4686_v40, %v975_v57  ;;  %v4296_v21 = vpop.eup %4295  ;;  %v603_v5 = vmul.f32 %v4294_v53, %v4775_v6  ;;  %vm608_vm5 = vweird.f32 %v4294_v53 }
 0x2e6   : > { %993 = vadd.xlane.f32.xlu1 %v989_v63  ;;  %981 = vadd.xlane.f32.xlu2 %v977_v41  ;;  %v980_v31 = vmul.f32 %v976_v22, %v4695_v48  ;;  %v992_v29 = vmul.f32 %v4686_v40, %v976_v22  ;;  %v4298_v33 = vpop.eup %4297  ;;  %v470_v10 = vmul.f32 %v4296_v21, %v4769_v54  ;;  %v480_v63 = vand.u32 2147483648, %v4769_v54  ;;  %vm4965_vm9 = vmor %vm607_vm7, %vm608_vm5 }
 0x2e7   : > { %v4300_v24 = vpop.eup %4299  ;;  %v736_v52 = vmul.f32 %v4298_v33, %v4786_v20  ;;  %v604_v19 = vsub.f32 1.0, %v603_v5  ;;  %vm475_vm6 = vweird.f32 %v4296_v21  ;;  %v611_v57 = vand.u32 2147483647, %v4775_v6 }
 0x2e8   : > { %v869_v50 = vmul.f32 %v4300_v24, %v861_v55  ;;  %v471_v47 = vsub.f32 1.0, %v470_v10  ;;  %vm741_vm10 = vweird.f32 %v4298_v33  ;;  %v746_v5 = vand.u32 2147483648, %v4786_v20  ;;  %vm4972_vm11 = vmor %vm474_vm8, %vm475_vm6 }
 0x2e9   : > { %v737_v42 = vsub.f32 1.0, %v736_v52  ;;  %v605_v32 = vmul.f32 %v4294_v53, %v604_v19  ;;  %vm874_vm13 = vweird.f32 %v4300_v24  ;;  %v481_v52 = vor.u32 1.1754944e-38, %v480_v63  ;;  %vm742_vm15 = vmor %vm740_vm12, %vm741_vm10 }
 0x2ea   : > { %v870_v0 = vsub.f32 1.0, %v869_v50  ;;  %v472_v11 = vmul.f32 %v4296_v21, %v471_v47  ;;  %vm612_vm14 = vcmp.eq.f32.partialorder %v611_v57, 8.507059e+37  ;;  %vm875_vm2 = vmor %vm873_vm0, %vm874_vm13  ;;  %vm1061_vm7 = vcmp.eq.s32.totalorder %v4675_v36, 4 }
 0x2eb   : > { %v738_v39 = vmul.f32 %v4298_v33, %v737_v42  ;;  %v606_v34 = vadd.f32 %v4294_v53, %v605_v32  ;;  %v877_v42 = vand.u32 2147483647, %v861_v55  ;;  %v747_v32 = vor.u32 1.1754944e-38, %v746_v5 }
 0x2ec   : > { %v871_v41 = vmul.f32 %v4300_v24, %v870_v0  ;;  %v473_v37 = vadd.f32 %v4296_v21, %v472_v11 }
 0x2ed   : > { %v739_v22 = vadd.f32 %v4298_v33, %v738_v39  ;;  %vm878_vm4 = vcmp.eq.f32.partialorder %v877_v42, 8.507059e+37 }
 0x2ee   : > { %985 = vadd.xlane.f32.xlu2 %v979_v30  ;;  %v478_v30 = vand.u32 2147483647, %v4769_v54  ;;  %v744_v54 = vand.u32 2147483647, %v4786_v20  ;;  %v872_v10 = vadd.f32 %v4300_v24, %v871_v41  ;;  %v477_v19 = vsel %vm4972_vm11, %v4296_v21, %v473_v37 }
 0x2ef   : > { %v743_v47 = vsel %vm742_vm15, %v4298_v33, %v739_v22 }
 0x2f0   : > { %vm479_vm1 = vcmp.eq.f32.partialorder %v478_v30, 8.507059e+37  ;;  %vm745_vm3 = vcmp.eq.f32.partialorder %v744_v54, 8.507059e+37  ;;  %v876_v20 = vsel %vm875_vm2, %v4300_v24, %v872_v10  ;;  %v4995_v54 = vsel %vm1061_vm7, 1.0, %v6865_v56 }
 0x2f1   : > { %v482_v0 = vsel %vm479_vm1, %v481_v52, %v477_v19 }
 0x2f2   : > { %v483_v41 = vmul.f32 %v482_v0, %v4763_v38 }
 0x2f4   : > { %v532_v22 = vmul.f32 %v4797_v43, %v483_v41 }
 0x2f6   : > { %987 = vadd.xlane.f32.xlu2 %v980_v31 }
 0x2f9   : > { %1081 = vrot.lane.b32.xlu0 %v4608_v2, %s4528_s22 }
 0x2fe   : > { %995 = vadd.xlane.f32.xlu2 %v990_v4 }
 0x306   : > { %997 = vadd.xlane.f32.xlu2 %v991_v49  ;;  %v610_v49 = vsel %vm4965_vm9, %v4294_v53, %v606_v34  ;;  %v879_v53 = vand.u32 2147483648, %v861_v55  ;;  %v748_v34 = vsel %vm745_vm3, %v747_v32, %v743_v47 }
 0x307   : > { %v749_v55 = vmul.f32 %v748_v34, %v4779_v8 }
 0x30e   : > { %999 = vadd.xlane.f32.xlu2 %v992_v29  ;;  %v614_v29 = vor.u32 1.1754944e-38, %v613_v44  ;;  %v880_v44 = vor.u32 1.1754944e-38, %v879_v53 }
 0x310   : > { %v615_v50 = vsel %vm612_vm14, %v614_v29, %v610_v49  ;;  %v881_v33 = vsel %vm878_vm4, %v880_v44, %v876_v20  ;;  %v798_v49 = vmul.f32 %v4834_v1, %v749_v55 }
 0x311   : > { %v616_v39 = vmul.f32 %v615_v50, %v4777_v7  ;;  %v882_v24 = vmul.f32 %v881_v33, %v4861_v35 }
 0x313   : > { %v665_v57 = vmul.f32 %v4805_v51, %v616_v39  ;;  %v931_v5 = vmul.f32 %v4904_v9, %v882_v24 }
 0x315   : > { %v669_v8 = vadd.f32 %v665_v57, %v532_v22 }
 0x317   : > { %v802_v43 = vadd.f32 %v798_v49, %v669_v8 }
 0x319   : > { %v935_v1 = vadd.f32 %v931_v5, %v802_v43 }
 0x326   : > { %1072 = vrot.lane.b32.xlu2 %v4950_v28, %s4528_s22  ;;  %s4536_s22 = smov 114  }
 0x359   : > { %v994_v31 = vpop.xlane.xlu1 %993  ;;  %v982_v4 = vpop.xlane.xlu2 %981 }
 0x35a   : > { %4301 = vrcp.f32 %v994_v31  ;;  %v1012_v30 = vand.u32 2147483648, %v994_v31  ;;  %v1010_v7 = vand.u32 2147483647, %v994_v31  ;;  %vm1006_vm6 = vweird.f32 %v994_v31 }
 0x35c   : > { %v1013_v38 = vor.u32 1.1754944e-38, %v1012_v30  ;;  %vm1011_vm9 = vcmp.eq.f32.partialorder %v1010_v7, 8.507059e+37 }
 0x360   : > { %v4302_v11 = vpop.eup %4301 }
 0x361   : > { %v1002_v21 = vmul.f32 %v4302_v11, %v994_v31  ;;  %v4982_v63 = vpop.xlane.xlu2 %985  ;;  %vm1007_vm5 = vweird.f32 %v4302_v11 }
 0x362   : > { %vm1008_vm8 = vmor %vm1006_vm6, %vm1007_vm5 }
 0x363   : > { %v1003_v37 = vsub.f32 1.0, %v1002_v21 }
 0x365   : > { %v1004_v23 = vmul.f32 %v4302_v11, %v1003_v37 }
 0x367   : > { %v1005_v29 = vadd.f32 %v4302_v11, %v1004_v23 }
 0x369   : > { %v1009_v51 = vsel %vm1008_vm8, %v4302_v11, %v1005_v29  ;;  %v4992_v6 = vpop.xlane.xlu2 %987  ;;  %vm1194_vm8 = vcmp.eq.s32.totalorder %v4675_v36, 5 }
 0x36a   : > { %v1014_v35 = vsel %vm1011_vm9, %v1013_v38, %v1009_v51 }
 0x36b   : > { %v1015_v10 = vmul.f32 %v1014_v35, %v982_v4  ;;  %v984_v4 = vpop.xlane.xlu0 %983 }
 0x36d   : > { %v1064_v31 = vmul.f32 %v4995_v54, %v1015_v10 }
 0x36f   : > { %v4998_v52 = vadd.f32 %v1064_v31, %v935_v1 }
 0x371   : > { %v996_v19 = vpop.xlane.xlu2 %995 }
 0x372   : > { %4303 = vrcp.f32 %v996_v19  ;;  %v1027_v42 = vand.u32 2147483648, %v996_v19  ;;  %v1025_v0 = vand.u32 2147483647, %v996_v19  ;;  %vm1021_vm11 = vweird.f32 %v996_v19 }
 0x373   : > { %v1082_v29 = vpop.permute.xlu0 %1081 }
 0x374   : > { %v1028_v39 = vor.u32 1.1754944e-38, %v1027_v42  ;;  %vm1026_vm13 = vcmp.eq.f32.partialorder %v1025_v0, 8.507059e+37 }
 0x378   : > { %v4304_v53 = vpop.eup %4303 }
 0x379   : > { %v1017_v50 = vmul.f32 %v4304_v53, %v996_v19  ;;  %v998_v9 = vpop.xlane.xlu2 %997  ;;  %vm1022_vm10 = vweird.f32 %v4304_v53 }
 0x37a   : > { %4305 = vrcp.f32 %v998_v9  ;;  %vm1023_vm12 = vmor %vm1021_vm11, %vm1022_vm10  ;;  %v1042_v37 = vand.u32 2147483648, %v998_v9  ;;  %v1040_v24 = vand.u32 2147483647, %v998_v9  ;;  %vm1036_vm15 = vweird.f32 %v998_v9 }
 0x37b   : > { %v1018_v47 = vsub.f32 1.0, %v1017_v50 }
 0x37c   : > { %v1043_v49 = vor.u32 1.1754944e-38, %v1042_v37  ;;  %vm1041_vm1 = vcmp.eq.f32.partialorder %v1040_v24, 8.507059e+37 }
 0x37d   : > { %v1019_v32 = vmul.f32 %v4304_v53, %v1018_v47 }
 0x37f   : > { %v1020_v20 = vadd.f32 %v4304_v53, %v1019_v32 }
 0x380   : > { %v4306_v11 = vpop.eup %4305 }
 0x381   : > { %v1024_v34 = vsel %vm1023_vm12, %v4304_v53, %v1020_v20  ;;  %v1032_v44 = vmul.f32 %v4306_v11, %v998_v9  ;;  %v1000_v21 = vpop.xlane.xlu2 %999  ;;  %vm1037_vm14 = vweird.f32 %v4306_v11 }
 0x382   : > { %v1029_v41 = vsel %vm1026_vm13, %v1028_v39, %v1024_v34  ;;  %4307 = vrcp.f32 %v1000_v21  ;;  %vm1038_vm0 = vmor %vm1036_vm15, %vm1037_vm14  ;;  %v1057_v10 = vand.u32 2147483648, %v1000_v21  ;;  %v1055_v31 = vand.u32 2147483647, %v1000_v21 }
 0x383   : > { %v1030_v33 = vmul.f32 %v1029_v41, %v984_v4  ;;  %v1033_v55 = vsub.f32 1.0, %v1032_v44  ;;  %vm1051_vm3 = vweird.f32 %v1000_v21 }
 0x384   : > { %v1058_v50 = vor.u32 1.1754944e-38, %v1057_v10  ;;  %vm1056_vm5 = vcmp.eq.f32.partialorder %v1055_v31, 8.507059e+37 }
 0x385   : > { %v1065_v57 = vmul.f32 %v4995_v54, %v1030_v33  ;;  %v1034_v30 = vmul.f32 %v4306_v11, %v1033_v55 }
 0x387   : > { %v5002_v23 = vadd.f32 %v1065_v57, %v4914_v58  ;;  %v1035_v7 = vadd.f32 %v4306_v11, %v1034_v30 }
 0x388   : > { %v4308_v22 = vpop.eup %4307 }
 0x389   : > { %v1039_v38 = vsel %vm1038_vm0, %v4306_v11, %v1035_v7  ;;  %v1047_v8 = vmul.f32 %v4308_v22, %v1000_v21  ;;  %v1073_v5 = vpop.permute.xlu2 %1072  ;;  %vm1052_vm2 = vweird.f32 %v4308_v22 }
 0x38a   : > { %v1044_v51 = vsel %vm1041_vm1, %v1043_v49, %v1039_v38  ;;  %4147 = vpush %v1073_v5  ;;  %vm1053_vm4 = vmor %vm1051_vm3, %vm1052_vm2 }
 0x38b   : > { %v1045_v35 = vmul.f32 %v1044_v51, %v4982_v63  ;;  %v1048_v43 = vsub.f32 1.0, %v1047_v8  ;;  %4149 = vpush %v1082_v29 }
 0x38d   : > { %v1066_v58 = vmul.f32 %v4995_v54, %v1045_v35  ;;  %v1049_v1 = vmul.f32 %v4308_v22, %v1048_v43 }
 0x38f   : > { %v5007_v19 = vadd.f32 %v1066_v58, %v4923_v25  ;;  %v1050_v53 = vadd.f32 %v4308_v22, %v1049_v1 }
 0x391   : > { %v1054_v9 = vsel %vm1053_vm4, %v4308_v22, %v1050_v53 }
 0x392   : > { %v1059_v47 = vsel %vm1056_vm5, %v1058_v50, %v1054_v9 }
 0x393   : > { %v1060_v63 = vmul.f32 %v1059_v47, %v4992_v6 }
 0x395   : > { %v1067_v42 = vmul.f32 %v4995_v54, %v1060_v63 }
 0x397   : > { %v5012_v32 = vadd.f32 %v1067_v42, %v4928_v3 }
 0x3bb   : > { %s4148_s25 = spop %4147 }
 0x3bc   : > { %v1075_v0 = vstv %s4148_s25  ;;  %s4150_s26 = spop %4149 }
 0x3bd   : > { %v1077_v25 = vmul.f32 %v1075_v0, %v4669_v27  ;;  %v1078_v20 = vmul.f32 %v1075_v0, %v4693_v46  ;;  %v1079_v11 = vmul.f32 %v1075_v0, %v4704_v59  ;;  %v1080_v4 = vmul.f32 %v1075_v0, %v4706_v60 }
 0x3be   : > { %v1084_v39 = vstv %s4150_s26 }
 0x3bf   : > { %v1086_v34 = vmul.f32 %v1084_v39, %v4667_v26  ;;  %v1087_v6 = vmul.f32 %v1084_v39, %v4691_v45  ;;  %v1088_v54 = vmul.f32 %v1084_v39, %v4710_v62  ;;  %v1089_v3 = vmul.f32 %v1084_v39, %v4708_v61 }
 0x3c1   : > { %v1090_v44 = vadd.f32 %v1086_v34, %v1077_v25  ;;  %v1091_v21 = vadd.f32 %v1087_v6, %v1078_v20  ;;  %v1092_v41 = vadd.f32 %v1088_v54, %v1079_v11  ;;  %v1093_v33 = vadd.f32 %v1089_v3, %v1080_v4 }
 0x3c3   : > { %v1097_v55 = vsub.f32 0.0, %v1093_v33  ;;  %v1095_v37 = vsub.f32 0.0, %v1091_v21  ;;  %v1094_v57 = vsub.f32 0.0, %v1090_v44  ;;  %v1096_v30 = vsub.f32 0.0, %v1092_v41 }
 0x3c5   : > { %v1104_v24 = vmul.f32 1.442695, %v1097_v55  ;;  %v1100_v7 = vmul.f32 1.442695, %v1095_v37  ;;  %v1098_v22 = vmul.f32 1.442695, %v1094_v57 }
 0x3c6   : > { %v1102_v49 = vmul.f32 1.442695, %v1096_v30 }
 0x3c7   : > { %4309 = vpow2.f32 %v1104_v24  ;;  %v4083_v24 = vsel %vm1194_vm8, 1.0, %v6865_v56 }
 0x3c8   : > { %4311 = vpow2.f32 %v1100_v7 }
 0x3c9   : > { %4313 = vpow2.f32 %v1098_v22 }
 0x3ca   : > { %4315 = vpow2.f32 %v1102_v49 }
 0x3cd   : > { %v4310_v29 = vpop.eup %4309 }
 0x3ce   : > { %v4312_v38 = vpop.eup %4311  ;;  %v1109_v8 = vadd.f32 1e-10, %v4310_v29 }
 0x3cf   : > { %v4314_v5 = vpop.eup %4313  ;;  %v1107_v51 = vadd.f32 1e-10, %v4312_v38 }
 0x3d0   : > { %v1113_v35 = vmul.f32 %v1109_v8, %v4695_v48  ;;  %v1106_v43 = vadd.f32 1e-10, %v4314_v5  ;;  %v4316_v1 = vpop.eup %4315  ;;  %v1125_v63 = vmul.f32 %v4686_v40, %v1109_v8 }
 0x3d1   : > { %v1111_v10 = vmul.f32 %v1107_v51, %v4695_v48  ;;  %v1108_v31 = vadd.f32 1e-10, %v4316_v1  ;;  %v1123_v9 = vmul.f32 %v4686_v40, %v1107_v51 }
 0x3d2   : > { %1120 = vadd.xlane.f32.xlu2 %v1113_v35  ;;  %v1110_v58 = vmul.f32 %v1106_v43, %v4695_v48  ;;  %v1122_v50 = vmul.f32 %v4686_v40, %v1106_v43 }
 0x3d3   : > { %1116 = vadd.xlane.f32.xlu0 %v1111_v10  ;;  %v1112_v53 = vmul.f32 %v1108_v31, %v4695_v48  ;;  %v1124_v47 = vmul.f32 %v4686_v40, %v1108_v31 }
 0x3d4   : > { %1114 = vadd.xlane.f32.xlu1 %v1110_v58 }
 0x3dc   : > { %1118 = vadd.xlane.f32.xlu1 %v1112_v53 }
 0x3e4   : > { %1126 = vadd.xlane.f32.xlu1 %v1122_v50 }
 0x3e7   : > { %1205 = vrot.lane.b32.xlu0 %v4950_v28, %s4529_s27 }
 0x3ec   : > { %1128 = vadd.xlane.f32.xlu1 %v1123_v9 }
 0x3f4   : > { %1130 = vadd.xlane.f32.xlu1 %v1124_v47 }
 0x3fc   : > { %1132 = vadd.xlane.f32.xlu1 %v1125_v63 }
 0x415   : > { %1214 = vrot.lane.b32.xlu1 %v4608_v2, %s4529_s27 }
 0x446   : > { %v1117_v25 = vpop.xlane.xlu0 %1116 }
 0x447   : > { %v1115_v42 = vpop.xlane.xlu1 %1114 }
 0x44f   : > { %v5032_v0 = vpop.xlane.xlu1 %1118 }
 0x457   : > { %v1127_v20 = vpop.xlane.xlu1 %1126 }
 0x458   : > { %4317 = vrcp.f32 %v1127_v20  ;;  %v1145_v54 = vand.u32 2147483648, %v1127_v20  ;;  %v1143_v44 = vand.u32 2147483647, %v1127_v20  ;;  %vm1139_vm7 = vweird.f32 %v1127_v20 }
 0x459   : > { %v1206_v11 = vpop.permute.xlu0 %1205 }
 0x45a   : > { %4151 = vpush %v1206_v11  ;;  %v1146_v33 = vor.u32 1.1754944e-38, %v1145_v54  ;;  %vm1144_vm10 = vcmp.eq.f32.partialorder %v1143_v44, 8.507059e+37 }
 0x45e   : > { %v4318_v4 = vpop.eup %4317 }
 0x45f   : > { %v1135_v39 = vmul.f32 %v4318_v4, %v1127_v20  ;;  %v1129_v34 = vpop.xlane.xlu1 %1128  ;;  %vm1140_vm6 = vweird.f32 %v4318_v4 }
 0x460   : > { %4319 = vrcp.f32 %v1129_v34  ;;  %vm1141_vm9 = vmor %vm1139_vm7, %vm1140_vm6  ;;  %v1160_v49 = vand.u32 2147483648, %v1129_v34  ;;  %v1158_v38 = vand.u32 2147483647, %v1129_v34  ;;  %vm1154_vm12 = vweird.f32 %v1129_v34 }
 0x461   : > { %v1136_v6 = vsub.f32 1.0, %v1135_v39 }
 0x462   : > { %v1161_v43 = vor.u32 1.1754944e-38, %v1160_v49  ;;  %vm1159_vm14 = vcmp.eq.f32.partialorder %v1158_v38, 8.507059e+37 }
 0x463   : > { %v1137_v3 = vmul.f32 %v4318_v4, %v1136_v6 }
 0x465   : > { %v1138_v21 = vadd.f32 %v4318_v4, %v1137_v3 }
 0x466   : > { %v4320_v41 = vpop.eup %4319 }
 0x467   : > { %v1142_v55 = vsel %vm1141_vm9, %v4318_v4, %v1138_v21  ;;  %v1150_v37 = vmul.f32 %v4320_v41, %v1129_v34  ;;  %v1131_v57 = vpop.xlane.xlu1 %1130  ;;  %vm1155_vm11 = vweird.f32 %v4320_v41  ;;  %vm1327_vm9 = vcmp.eq.s32.totalorder %v4675_v36, 6 }
 0x468   : > { %v1147_v30 = vsel %vm1144_vm10, %v1146_v33, %v1142_v55  ;;  %4321 = vrcp.f32 %v1131_v57  ;;  %vm1156_vm13 = vmor %vm1154_vm12, %vm1155_vm11  ;;  %v1175_v9 = vand.u32 2147483648, %v1131_v57  ;;  %v1173_v63 = vand.u32 2147483647, %v1131_v57 }
 0x469   : > { %v1151_v7 = vsub.f32 1.0, %v1150_v37  ;;  %v1148_v22 = vmul.f32 %v1147_v30, %v1115_v42  ;;  %vm1169_vm0 = vweird.f32 %v1131_v57 }
 0x46a   : > { %v1176_v4 = vor.u32 1.1754944e-38, %v1175_v9  ;;  %vm1174_vm2 = vcmp.eq.f32.partialorder %v1173_v63, 8.507059e+37 }
 0x46b   : > { %v1152_v29 = vmul.f32 %v4320_v41, %v1151_v7  ;;  %v1197_v8 = vmul.f32 %v4083_v24, %v1148_v22 }
 0x46d   : > { %v1153_v5 = vadd.f32 %v4320_v41, %v1152_v29  ;;  %v5037_v51 = vadd.f32 %v1197_v8, %v4998_v52 }
 0x46e   : > { %v4322_v35 = vpop.eup %4321 }
 0x46f   : > { %v1157_v10 = vsel %vm1156_vm13, %v4320_v41, %v1153_v5  ;;  %v1165_v58 = vmul.f32 %v4322_v35, %v1131_v57  ;;  %v1133_v1 = vpop.xlane.xlu1 %1132  ;;  %vm1170_vm15 = vweird.f32 %v4322_v35  ;;  %v1121_v57 = vpop.xlane.xlu2 %1120 }
 0x470   : > { %v1162_v31 = vsel %vm1159_vm14, %v1161_v43, %v1157_v10  ;;  %4323 = vrcp.f32 %v1133_v1  ;;  %vm1171_vm1 = vmor %vm1169_vm0, %vm1170_vm15  ;;  %v1190_v3 = vand.u32 2147483648, %v1133_v1  ;;  %v1188_v21 = vand.u32 2147483647, %v1133_v1 }
 0x471   : > { %v1163_v53 = vmul.f32 %v1162_v31, %v1117_v25  ;;  %v1166_v50 = vsub.f32 1.0, %v1165_v58  ;;  %vm1184_vm4 = vweird.f32 %v1133_v1 }
 0x472   : > { %v1191_v55 = vor.u32 1.1754944e-38, %v1190_v3  ;;  %vm1189_vm6 = vcmp.eq.f32.partialorder %v1188_v21, 8.507059e+37 }
 0x473   : > { %v1167_v47 = vmul.f32 %v4322_v35, %v1166_v50  ;;  %v1198_v42 = vmul.f32 %v4083_v24, %v1163_v53 }
 0x475   : > { %v1168_v20 = vadd.f32 %v4322_v35, %v1167_v47  ;;  %v5040_v52 = vadd.f32 %v1198_v42, %v5002_v23 }
 0x476   : > { %v4324_v11 = vpop.eup %4323 }
 0x477   : > { %v1172_v39 = vsel %vm1171_vm1, %v4322_v35, %v1168_v20  ;;  %v1180_v34 = vmul.f32 %v4324_v11, %v1133_v1  ;;  %vm1185_vm3 = vweird.f32 %v4324_v11 }
 0x478   : > { %v1177_v6 = vsel %vm1174_vm2, %v1176_v4, %v1172_v39  ;;  %vm1186_vm5 = vmor %vm1184_vm4, %vm1185_vm3 }
 0x479   : > { %v1178_v25 = vmul.f32 %v1177_v6, %v5032_v0  ;;  %v1181_v54 = vsub.f32 1.0, %v1180_v34 }
 0x47b   : > { %v1182_v44 = vmul.f32 %v4324_v11, %v1181_v54  ;;  %v1199_v41 = vmul.f32 %v4083_v24, %v1178_v25 }
 0x47d   : > { %v1183_v33 = vadd.f32 %v4324_v11, %v1182_v44  ;;  %v5044_v23 = vadd.f32 %v1199_v41, %v5007_v19 }
 0x47f   : > { %v1187_v37 = vsel %vm1186_vm5, %v4324_v11, %v1183_v33 }
 0x480   : > { %v1192_v30 = vsel %vm1189_vm6, %v1191_v55, %v1187_v37 }
 0x481   : > { %v1193_v7 = vmul.f32 %v1192_v30, %v1121_v57 }
 0x483   : > { %v1200_v22 = vmul.f32 %v4083_v24, %v1193_v7 }
 0x485   : > { %v5047_v0 = vadd.f32 %v1200_v22, %v5012_v32 }
 0x487   : > { %v1215_v49 = vpop.permute.xlu1 %1214 }
 0x488   : > { %4153 = vpush %v1215_v49 }
 0x48b   : > { %s4152_s0 = spop %4151 }
 0x48c   : > { %v1208_v29 = vstv %s4152_s0 }
 0x48d   : > { %v1210_v38 = vmul.f32 %v1208_v29, %v4669_v27  ;;  %v1211_v19 = vmul.f32 %v1208_v29, %v4693_v46  ;;  %v1213_v5 = vmul.f32 %v1208_v29, %v4706_v60  ;;  %v1212_v63 = vmul.f32 %v1208_v29, %v4704_v59 }
 0x4b9   : > { %s4154_s30 = spop %4153 }
 0x4ba   : > { %v1217_v8 = vstv %s4154_s30 }
 0x4bb   : > { %v1219_v35 = vmul.f32 %v1217_v8, %v4667_v26  ;;  %v1220_v43 = vmul.f32 %v1217_v8, %v4691_v45  ;;  %v1222_v24 = vmul.f32 %v1217_v8, %v4708_v61  ;;  %v1221_v53 = vmul.f32 %v1217_v8, %v4710_v62 }
 0x4bd   : > { %v1223_v32 = vadd.f32 %v1219_v35, %v1210_v38  ;;  %v1224_v10 = vadd.f32 %v1220_v43, %v1211_v19  ;;  %v1226_v58 = vadd.f32 %v1222_v24, %v1213_v5  ;;  %v1225_v42 = vadd.f32 %v1221_v53, %v1212_v63 }
 0x4be   : > { %v5069_v53 = vsel %vm1327_vm9, 1.0, %v6865_v56 }
 0x4bf   : > { %v1230_v1 = vsub.f32 0.0, %v1226_v58  ;;  %v1227_v31 = vsub.f32 0.0, %v1223_v32  ;;  %v1228_v50 = vsub.f32 0.0, %v1224_v10  ;;  %v1229_v11 = vsub.f32 0.0, %v1225_v42 }
 0x4c1   : > { %v1237_v9 = vmul.f32 1.442695, %v1230_v1  ;;  %v1231_v47 = vmul.f32 1.442695, %v1227_v31  ;;  %v1233_v20 = vmul.f32 1.442695, %v1228_v50 }
 0x4c2   : > { %v1235_v54 = vmul.f32 1.442695, %v1229_v11 }
 0x4c3   : > { %4325 = vpow2.f32 %v1237_v9 }
 0x4c4   : > { %4327 = vpow2.f32 %v1231_v47 }
 0x4c5   : > { %4329 = vpow2.f32 %v1233_v20 }
 0x4c6   : > { %4331 = vpow2.f32 %v1235_v54 }
 0x4c9   : > { %v4326_v4 = vpop.eup %4325 }
 0x4ca   : > { %v4328_v39 = vpop.eup %4327  ;;  %v1242_v34 = vadd.f32 1e-10, %v4326_v4 }
 0x4cb   : > { %v1239_v6 = vadd.f32 1e-10, %v4328_v39  ;;  %v4330_v21 = vpop.eup %4329 }
 0x4cc   : > { %v1246_v25 = vmul.f32 %v1242_v34, %v4695_v48  ;;  %v1240_v41 = vadd.f32 1e-10, %v4330_v21  ;;  %v4332_v55 = vpop.eup %4331  ;;  %v1258_v22 = vmul.f32 %v4686_v40, %v1242_v34 }
 0x4cd   : > { %v1255_v3 = vmul.f32 %v4686_v40, %v1239_v6  ;;  %v1243_v44 = vmul.f32 %v1239_v6, %v4695_v48  ;;  %v1241_v37 = vadd.f32 1e-10, %v4332_v55 }
 0x4ce   : > { %1253 = vadd.xlane.f32.xlu0 %v1246_v25  ;;  %v1244_v33 = vmul.f32 %v1240_v41, %v4695_v48  ;;  %v1256_v30 = vmul.f32 %v4686_v40, %v1240_v41 }
 0x4cf   : > { %1259 = vadd.xlane.f32.xlu1 %v1255_v3  ;;  %1247 = vadd.xlane.f32.xlu2 %v1243_v44  ;;  %v1245_v57 = vmul.f32 %v1241_v37, %v4695_v48  ;;  %v1257_v7 = vmul.f32 %v4686_v40, %v1241_v37 }
 0x4d7   : > { %1249 = vadd.xlane.f32.xlu2 %v1244_v33 }
 0x4df   : > { %1251 = vadd.xlane.f32.xlu2 %v1245_v57 }
 0x4e2   : > { %1347 = vrot.lane.b32.xlu0 %v4608_v2, %s4530_s10 }
 0x4e7   : > { %1261 = vadd.xlane.f32.xlu2 %v1256_v30 }
 0x4ef   : > { %1263 = vadd.xlane.f32.xlu2 %v1257_v7 }
 0x4f7   : > { %1265 = vadd.xlane.f32.xlu2 %v1258_v22 }
 0x50f   : > { %1338 = vrot.lane.b32.xlu2 %v4950_v28, %s4530_s10 }
 0x541   : > { %v1254_v3 = vpop.xlane.xlu0 %1253 }
 0x542   : > { %v1260_v49 = vpop.xlane.xlu1 %1259  ;;  %v1248_v29 = vpop.xlane.xlu2 %1247 }
 0x543   : > { %4333 = vrcp.f32 %v1260_v49  ;;  %v1278_v35 = vand.u32 2147483648, %v1260_v49  ;;  %v1276_v24 = vand.u32 2147483647, %v1260_v49  ;;  %vm1272_vm8 = vweird.f32 %v1260_v49 }
 0x545   : > { %v1279_v10 = vor.u32 1.1754944e-38, %v1278_v35  ;;  %vm1277_vm11 = vcmp.eq.f32.partialorder %v1276_v24, 8.507059e+37 }
 0x549   : > { %v4334_v38 = vpop.eup %4333 }
 0x54a   : > { %v1268_v19 = vmul.f32 %v4334_v38, %v1260_v49  ;;  %v1250_v8 = vpop.xlane.xlu2 %1249  ;;  %vm1273_vm7 = vweird.f32 %v4334_v38 }
 0x54b   : > { %vm1274_vm10 = vmor %vm1272_vm8, %vm1273_vm7 }
 0x54c   : > { %v1269_v5 = vsub.f32 1.0, %v1268_v19 }
 0x54e   : > { %v1270_v43 = vmul.f32 %v4334_v38, %v1269_v5 }
 0x550   : > { %v1271_v32 = vadd.f32 %v4334_v38, %v1270_v43 }
 0x552   : > { %v1275_v58 = vsel %vm1274_vm10, %v4334_v38, %v1271_v32  ;;  %v1252_v1 = vpop.xlane.xlu2 %1251  ;;  %vm1460_vm10 = vcmp.eq.s32.totalorder %v4675_v36, 7 }
 0x553   : > { %v1280_v31 = vsel %vm1277_vm11, %v1279_v10, %v1275_v58 }
 0x554   : > { %v1281_v50 = vmul.f32 %v1280_v31, %v1248_v29  ;;  %v1348_v5 = vpop.permute.xlu0 %1347 }
 0x556   : > { %v1330_v9 = vmul.f32 %v5069_v53, %v1281_v50 }
 0x558   : > { %v5073_v47 = vadd.f32 %v1330_v9, %v5037_v51 }
 0x55a   : > { %v1262_v63 = vpop.xlane.xlu2 %1261 }
 0x55b   : > { %4335 = vrcp.f32 %v1262_v63  ;;  %v1293_v39 = vand.u32 2147483648, %v1262_v63  ;;  %v1291_v6 = vand.u32 2147483647, %v1262_v63  ;;  %vm1287_vm13 = vweird.f32 %v1262_v63 }
 0x55d   : > { %v1294_v44 = vor.u32 1.1754944e-38, %v1293_v39  ;;  %vm1292_vm15 = vcmp.eq.f32.partialorder %v1291_v6, 8.507059e+37 }
 0x561   : > { %v4336_v42 = vpop.eup %4335 }
 0x562   : > { %v1283_v20 = vmul.f32 %v4336_v42, %v1262_v63  ;;  %v1264_v11 = vpop.xlane.xlu2 %1263  ;;  %vm1288_vm12 = vweird.f32 %v4336_v42 }
 0x563   : > { %4337 = vrcp.f32 %v1264_v11  ;;  %vm1289_vm14 = vmor %vm1287_vm13, %vm1288_vm12  ;;  %v1308_v57 = vand.u32 2147483648, %v1264_v11  ;;  %v1306_v22 = vand.u32 2147483647, %v1264_v11  ;;  %vm1302_vm1 = vweird.f32 %v1264_v11 }
 0x564   : > { %v1284_v4 = vsub.f32 1.0, %v1283_v20 }
 0x565   : > { %v1309_v19 = vor.u32 1.1754944e-38, %v1308_v57  ;;  %vm1307_vm3 = vcmp.eq.f32.partialorder %v1306_v22, 8.507059e+37 }
 0x566   : > { %v1285_v34 = vmul.f32 %v4336_v42, %v1284_v4 }
 0x568   : > { %v1286_v25 = vadd.f32 %v4336_v42, %v1285_v34 }
 0x569   : > { %v4338_v54 = vpop.eup %4337 }
 0x56a   : > { %v1290_v21 = vsel %vm1289_vm14, %v4336_v42, %v1286_v25  ;;  %v1298_v51 = vmul.f32 %v4338_v54, %v1264_v11  ;;  %v1266_v41 = vpop.xlane.xlu2 %1265  ;;  %vm1303_vm0 = vweird.f32 %v4338_v54 }
 0x56b   : > { %v1295_v33 = vsel %vm1292_vm15, %v1294_v44, %v1290_v21  ;;  %4339 = vrcp.f32 %v1266_v41  ;;  %vm1304_vm2 = vmor %vm1302_vm1, %vm1303_vm0  ;;  %v1323_v58 = vand.u32 2147483648, %v1266_v41  ;;  %v1321_v50 = vand.u32 2147483647, %v1266_v41 }
 0x56c   : > { %v1296_v55 = vmul.f32 %v1295_v33, %v1250_v8  ;;  %v1299_v37 = vsub.f32 1.0, %v1298_v51  ;;  %vm1317_vm5 = vweird.f32 %v1266_v41 }
 0x56d   : > { %v1324_v42 = vor.u32 1.1754944e-38, %v1323_v58  ;;  %vm1322_vm7 = vcmp.eq.f32.partialorder %v1321_v50, 8.507059e+37 }
 0x56e   : > { %v1331_v30 = vmul.f32 %v5069_v53, %v1296_v55  ;;  %v1300_v7 = vmul.f32 %v4338_v54, %v1299_v37 }
 0x570   : > { %v5077_v49 = vadd.f32 %v1331_v30, %v5040_v52  ;;  %v1301_v29 = vadd.f32 %v4338_v54, %v1300_v7 }
 0x571   : > { %v4340_v38 = vpop.eup %4339 }
 0x572   : > { %v1305_v35 = vsel %vm1304_vm2, %v4338_v54, %v1301_v29  ;;  %v1313_v43 = vmul.f32 %v4340_v38, %v1266_v41  ;;  %v1339_v8 = vpop.permute.xlu2 %1338  ;;  %vm1318_vm4 = vweird.f32 %v4340_v38 }
 0x573   : > { %v1310_v24 = vsel %vm1307_vm3, %v1309_v19, %v1305_v35  ;;  %4155 = vpush %v1339_v8  ;;  %vm1319_vm6 = vmor %vm1317_vm5, %vm1318_vm4 }
 0x574   : > { %v1311_v32 = vmul.f32 %v1310_v24, %v1252_v1  ;;  %v1314_v10 = vsub.f32 1.0, %v1313_v43  ;;  %4157 = vpush %v1348_v5 }
 0x576   : > { %v1332_v31 = vmul.f32 %v5069_v53, %v1311_v32  ;;  %v1315_v52 = vmul.f32 %v4340_v38, %v1314_v10 }
 0x578   : > { %v5081_v9 = vadd.f32 %v1332_v31, %v5044_v23  ;;  %v1316_v63 = vadd.f32 %v4340_v38, %v1315_v52 }
 0x57a   : > { %v1320_v20 = vsel %vm1319_vm6, %v4340_v38, %v1316_v63 }
 0x57b   : > { %v1325_v11 = vsel %vm1322_vm7, %v1324_v42, %v1320_v20 }
 0x57c   : > { %v1326_v4 = vmul.f32 %v1325_v11, %v1254_v3 }
 0x57e   : > { %v1333_v1 = vmul.f32 %v5069_v53, %v1326_v4 }
 0x580   : > { %v5085_v39 = vadd.f32 %v1333_v1, %v5047_v0 }
 0x5a4   : > { %s4156_s11 = spop %4155 }
 0x5a5   : > { %v1341_v34 = vstv %s4156_s11  ;;  %s4158_s12 = spop %4157 }
 0x5a6   : > { %v1343_v6 = vmul.f32 %v1341_v34, %v4669_v27  ;;  %v1344_v23 = vmul.f32 %v1341_v34, %v4693_v46  ;;  %v1345_v25 = vmul.f32 %v1341_v34, %v4704_v59  ;;  %v1346_v54 = vmul.f32 %v1341_v34, %v4706_v60 }
 0x5a7   : > { %v1350_v44 = vstv %s4158_s12 }
 0x5a8   : > { %v1352_v21 = vmul.f32 %v1350_v44, %v4667_v26  ;;  %v1353_v3 = vmul.f32 %v1350_v44, %v4691_v45  ;;  %v1354_v53 = vmul.f32 %v1350_v44, %v4710_v62  ;;  %v1355_v0 = vmul.f32 %v1350_v44, %v4708_v61 }
 0x5aa   : > { %v1356_v51 = vadd.f32 %v1352_v21, %v1343_v6  ;;  %v1357_v41 = vadd.f32 %v1353_v3, %v1344_v23  ;;  %v1358_v33 = vadd.f32 %v1354_v53, %v1345_v25  ;;  %v1359_v55 = vadd.f32 %v1355_v0, %v1346_v54 }
 0x5ac   : > { %v1363_v37 = vsub.f32 0.0, %v1359_v55  ;;  %v1361_v57 = vsub.f32 0.0, %v1357_v41  ;;  %v1360_v30 = vsub.f32 0.0, %v1356_v51  ;;  %v1362_v7 = vsub.f32 0.0, %v1358_v33 }
 0x5ae   : > { %v1370_v22 = vmul.f32 1.442695, %v1363_v37  ;;  %v1366_v29 = vmul.f32 1.442695, %v1361_v57  ;;  %v1364_v38 = vmul.f32 1.442695, %v1360_v30 }
 0x5af   : > { %v1368_v19 = vmul.f32 1.442695, %v1362_v7  ;;  %v4085_v7 = vsel %vm1460_vm10, 1.0, %v6865_v56 }
 0x5b0   : > { %4341 = vpow2.f32 %v1370_v22 }
 0x5b1   : > { %4343 = vpow2.f32 %v1366_v29 }
 0x5b2   : > { %4345 = vpow2.f32 %v1364_v38 }
 0x5b3   : > { %4347 = vpow2.f32 %v1368_v19 }
 0x5b6   : > { %v4342_v5 = vpop.eup %4341 }
 0x5b7   : > { %v4344_v35 = vpop.eup %4343  ;;  %v1375_v43 = vadd.f32 1e-10, %v4342_v5 }
 0x5b8   : > { %v4346_v8 = vpop.eup %4345  ;;  %v1373_v24 = vadd.f32 1e-10, %v4344_v35 }
 0x5b9   : > { %v1379_v32 = vmul.f32 %v1375_v43, %v4695_v48  ;;  %v1372_v10 = vadd.f32 1e-10, %v4346_v8  ;;  %v4348_v52 = vpop.eup %4347  ;;  %v1391_v4 = vmul.f32 %v4686_v40, %v1375_v43 }
 0x5ba   : > { %v1377_v58 = vmul.f32 %v1373_v24, %v4695_v48  ;;  %v1374_v50 = vadd.f32 1e-10, %v4348_v52  ;;  %v1389_v20 = vmul.f32 %v4686_v40, %v1373_v24 }
 0x5bb   : > { %1386 = vadd.xlane.f32.xlu0 %v1379_v32  ;;  %v1376_v31 = vmul.f32 %v1372_v10, %v4695_v48  ;;  %v1388_v42 = vmul.f32 %v4686_v40, %v1372_v10 }
 0x5bc   : > { %1382 = vadd.xlane.f32.xlu2 %v1377_v58  ;;  %v1378_v63 = vmul.f32 %v1374_v50, %v4695_v48  ;;  %v1390_v11 = vmul.f32 %v4686_v40, %v1374_v50 }
 0x5bd   : > { %1380 = vadd.xlane.f32.xlu1 %v1376_v31 }
 0x5c5   : > { %1384 = vadd.xlane.f32.xlu1 %v1378_v63 }
 0x5cd   : > { %1392 = vadd.xlane.f32.xlu1 %v1388_v42 }
 0x5d4   : > { %1471 = vrot.lane.b32.xlu2 %v4950_v28, %s4531_s13 }
 0x5d5   : > { %1394 = vadd.xlane.f32.xlu1 %v1389_v20 }
 0x5dd   : > { %1396 = vadd.xlane.f32.xlu1 %v1390_v11 }
 0x5e5   : > { %1398 = vadd.xlane.f32.xlu1 %v1391_v4 }
 0x5fe   : > { %1480 = vrot.lane.b32.xlu1 %v4608_v2, %s4531_s13 }
 0x62f   : > { %v1383_v1 = vpop.xlane.xlu2 %1382 }
 0x630   : > { %v1381_v34 = vpop.xlane.xlu1 %1380 }
 0x637   : > { %v1472_v6 = vpop.permute.xlu2 %1471 }
 0x638   : > { %v5105_v23 = vpop.xlane.xlu1 %1384  ;;  %4159 = vpush %v1472_v6 }
 0x640   : > { %v1393_v25 = vpop.xlane.xlu1 %1392 }
 0x641   : > { %4349 = vrcp.f32 %v1393_v25  ;;  %v1411_v3 = vand.u32 2147483648, %v1393_v25  ;;  %v1409_v0 = vand.u32 2147483647, %v1393_v25  ;;  %vm1405_vm9 = vweird.f32 %v1393_v25 }
 0x643   : > { %v1412_v33 = vor.u32 1.1754944e-38, %v1411_v3  ;;  %vm1410_vm12 = vcmp.eq.f32.partialorder %v1409_v0, 8.507059e+37 }
 0x647   : > { %v4350_v54 = vpop.eup %4349 }
 0x648   : > { %v1401_v44 = vmul.f32 %v4350_v54, %v1393_v25  ;;  %v1395_v28 = vpop.xlane.xlu1 %1394  ;;  %vm1406_vm8 = vweird.f32 %v4350_v54 }
 0x649   : > { %4351 = vrcp.f32 %v1395_v28  ;;  %vm1407_vm11 = vmor %vm1405_vm9, %vm1406_vm8  ;;  %v1426_v38 = vand.u32 2147483648, %v1395_v28  ;;  %v1424_v5 = vand.u32 2147483647, %v1395_v28  ;;  %vm1420_vm14 = vweird.f32 %v1395_v28 }
 0x64a   : > { %v1402_v21 = vsub.f32 1.0, %v1401_v44 }
 0x64b   : > { %v1427_v32 = vor.u32 1.1754944e-38, %v1426_v38  ;;  %vm1425_vm0 = vcmp.eq.f32.partialorder %v1424_v5, 8.507059e+37 }
 0x64c   : > { %v1403_v53 = vmul.f32 %v4350_v54, %v1402_v21 }
 0x64e   : > { %v1404_v51 = vadd.f32 %v4350_v54, %v1403_v53 }
 0x64f   : > { %v4352_v41 = vpop.eup %4351 }
 0x650   : > { %v1408_v55 = vsel %vm1407_vm11, %v4350_v54, %v1404_v51  ;;  %v1416_v37 = vmul.f32 %v4352_v41, %v1395_v28  ;;  %v1397_v57 = vpop.xlane.xlu1 %1396  ;;  %vm1421_vm13 = vweird.f32 %v4352_v41  ;;  %vm1593_vm11 = vcmp.eq.s32.totalorder %v4675_v36, 8 }
 0x651   : > { %v1413_v30 = vsel %vm1410_vm12, %v1412_v33, %v1408_v55  ;;  %4353 = vrcp.f32 %v1397_v57  ;;  %vm1422_vm15 = vmor %vm1420_vm14, %vm1421_vm13  ;;  %v1441_v42 = vand.u32 2147483648, %v1397_v57  ;;  %v1439_v11 = vand.u32 2147483647, %v1397_v57 }
 0x652   : > { %v1417_v22 = vsub.f32 1.0, %v1416_v37  ;;  %v1414_v29 = vmul.f32 %v1413_v30, %v1381_v34  ;;  %vm1435_vm2 = vweird.f32 %v1397_v57  ;;  %v1387_v37 = vpop.xlane.xlu0 %1386 }
 0x653   : > { %v1442_v25 = vor.u32 1.1754944e-38, %v1441_v42  ;;  %vm1440_vm4 = vcmp.eq.f32.partialorder %v1439_v11, 8.507059e+37 }
 0x654   : > { %v1418_v19 = vmul.f32 %v4352_v41, %v1417_v22  ;;  %v1463_v35 = vmul.f32 %v4085_v7, %v1414_v29 }
 0x656   : > { %v1419_v43 = vadd.f32 %v4352_v41, %v1418_v19  ;;  %v5110_v8 = vadd.f32 %v1463_v35, %v5073_v47 }
 0x657   : > { %v4354_v24 = vpop.eup %4353 }
 0x658   : > { %v1423_v10 = vsel %vm1422_vm15, %v4352_v41, %v1419_v43  ;;  %v1431_v58 = vmul.f32 %v4354_v24, %v1397_v57  ;;  %v1399_v31 = vpop.xlane.xlu1 %1398  ;;  %vm1436_vm1 = vweird.f32 %v4354_v24 }
 0x659   : > { %v1428_v52 = vsel %vm1425_vm0, %v1427_v32, %v1423_v10  ;;  %4355 = vrcp.f32 %v1399_v31  ;;  %vm1437_vm3 = vmor %vm1435_vm2, %vm1436_vm1  ;;  %v1456_v3 = vand.u32 2147483648, %v1399_v31  ;;  %v1454_v0 = vand.u32 2147483647, %v1399_v31 }
 0x65a   : > { %v1429_v50 = vmul.f32 %v1428_v52, %v1383_v1  ;;  %v1432_v63 = vsub.f32 1.0, %v1431_v58  ;;  %vm1450_vm6 = vweird.f32 %v1399_v31 }
 0x65b   : > { %v1457_v33 = vor.u32 1.1754944e-38, %v1456_v3  ;;  %vm1455_vm8 = vcmp.eq.f32.partialorder %v1454_v0, 8.507059e+37 }
 0x65c   : > { %v1433_v20 = vmul.f32 %v4354_v24, %v1432_v63  ;;  %v1464_v4 = vmul.f32 %v4085_v7, %v1429_v50 }
 0x65e   : > { %v1434_v34 = vadd.f32 %v4354_v24, %v1433_v20  ;;  %v5113_v47 = vadd.f32 %v1464_v4, %v5077_v49 }
 0x65f   : > { %v4356_v6 = vpop.eup %4355 }
 0x660   : > { %v1438_v54 = vsel %vm1437_vm3, %v4354_v24, %v1434_v34  ;;  %v1446_v44 = vmul.f32 %v4356_v6, %v1399_v31  ;;  %vm1451_vm5 = vweird.f32 %v4356_v6 }
 0x661   : > { %v1443_v28 = vsel %vm1440_vm4, %v1442_v25, %v1438_v54  ;;  %vm1452_vm7 = vmor %vm1450_vm6, %vm1451_vm5 }
 0x662   : > { %v1444_v1 = vmul.f32 %v1443_v28, %v5105_v23  ;;  %v1447_v21 = vsub.f32 1.0, %v1446_v44 }
 0x664   : > { %v1448_v53 = vmul.f32 %v4356_v6, %v1447_v21  ;;  %v1465_v51 = vmul.f32 %v4085_v7, %v1444_v1 }
 0x666   : > { %v1449_v41 = vadd.f32 %v4356_v6, %v1448_v53  ;;  %v5117_v49 = vadd.f32 %v1465_v51, %v5081_v9 }
 0x668   : > { %v1453_v55 = vsel %vm1452_vm7, %v4356_v6, %v1449_v41 }
 0x669   : > { %v1458_v57 = vsel %vm1455_vm8, %v1457_v33, %v1453_v55  ;;  %s4160_s29 = spop %4159 }
 0x66a   : > { %v1459_v30 = vmul.f32 %v1458_v57, %v1387_v37  ;;  %v1474_v38 = vstv %s4160_s29 }
 0x66b   : > { %v1476_v19 = vmul.f32 %v1474_v38, %v4669_v27  ;;  %v1477_v9 = vmul.f32 %v1474_v38, %v4693_v46  ;;  %v1478_v35 = vmul.f32 %v1474_v38, %v4704_v59  ;;  %v1479_v20 = vmul.f32 %v1474_v38, %v4706_v60 }
 0x66c   : > { %v1466_v22 = vmul.f32 %v4085_v7, %v1459_v30 }
 0x66e   : > { %v5120_v23 = vadd.f32 %v1466_v22, %v5085_v39  ;;  %v5142_v22 = vld [vmem:[%s6819_s6] sm:$0xff] }
 0x670   : > { %v1481_v29 = vpop.permute.xlu1 %1480 }
 0x671   : > { %4161 = vpush %v1481_v29 }
 0x6a2   : > { %s4162_s8 = spop %4161 }
 0x6a3   : > { %v1483_v5 = vstv %s4162_s8 }
 0x6a4   : > { %v1485_v43 = vmul.f32 %v1483_v5, %v4667_v26  ;;  %v1486_v24 = vmul.f32 %v1483_v5, %v4691_v45  ;;  %v1487_v7 = vmul.f32 %v1483_v5, %v4710_v62  ;;  %v1488_v52 = vmul.f32 %v1483_v5, %v4708_v61 }
 0x6a6   : > { %v1489_v39 = vadd.f32 %v1485_v43, %v1476_v19  ;;  %v1490_v32 = vadd.f32 %v1486_v24, %v1477_v9  ;;  %v1491_v10 = vadd.f32 %v1487_v7, %v1478_v35  ;;  %v1492_v11 = vadd.f32 %v1488_v52, %v1479_v20 }
 0x6a7   : > { %v4086_v52 = vsel %vm1593_vm11, 1.0, %v6865_v56 }
 0x6a8   : > { %v1495_v58 = vsub.f32 0.0, %v1491_v10  ;;  %v1493_v31 = vsub.f32 0.0, %v1489_v39  ;;  %v1494_v50 = vsub.f32 0.0, %v1490_v32  ;;  %v1496_v34 = vsub.f32 0.0, %v1492_v11 }
 0x6aa   : > { %v1501_v63 = vmul.f32 1.442695, %v1495_v58  ;;  %v1497_v42 = vmul.f32 1.442695, %v1493_v31  ;;  %v1499_v4 = vmul.f32 1.442695, %v1494_v50 }
 0x6ab   : > { %v1503_v1 = vmul.f32 1.442695, %v1496_v34 }
 0x6ac   : > { %4357 = vpow2.f32 %v1501_v63 }
 0x6ad   : > { %4359 = vpow2.f32 %v1497_v42 }
 0x6ae   : > { %4361 = vpow2.f32 %v1499_v4 }
 0x6af   : > { %4363 = vpow2.f32 %v1503_v1 }
 0x6b2   : > { %v4358_v6 = vpop.eup %4357 }
 0x6b3   : > { %v4360_v25 = vpop.eup %4359  ;;  %v1507_v54 = vadd.f32 1e-10, %v4358_v6 }
 0x6b4   : > { %v1505_v44 = vadd.f32 1e-10, %v4360_v25  ;;  %v4362_v53 = vpop.eup %4361 }
 0x6b5   : > { %v1511_v28 = vmul.f32 %v1507_v54, %v4695_v48  ;;  %v1506_v0 = vadd.f32 1e-10, %v4362_v53  ;;  %v4364_v41 = vpop.eup %4363  ;;  %v1523_v57 = vmul.f32 %v4686_v40, %v1507_v54 }
 0x6b6   : > { %v1521_v21 = vmul.f32 %v4686_v40, %v1505_v44  ;;  %v1509_v3 = vmul.f32 %v1505_v44, %v4695_v48  ;;  %v1508_v33 = vadd.f32 1e-10, %v4364_v41 }
 0x6b7   : > { %1517 = vadd.xlane.f32.xlu2 %v1511_v28  ;;  %v1510_v51 = vmul.f32 %v1506_v0, %v4695_v48  ;;  %v1522_v37 = vmul.f32 %v4686_v40, %v1506_v0 }
 0x6b8   : > { %1525 = vadd.xlane.f32.xlu1 %v1521_v21  ;;  %1513 = vadd.xlane.f32.xlu0 %v1509_v3  ;;  %v1512_v55 = vmul.f32 %v1508_v33, %v4695_v48  ;;  %v1524_v30 = vmul.f32 %v4686_v40, %v1508_v33 }
 0x6c0   : > { %1515 = vadd.xlane.f32.xlu0 %v1510_v51 }
 0x6c8   : > { %1519 = vadd.xlane.f32.xlu0 %v1512_v55 }
 0x6cf   : > { %1613 = vrot.lane.b32.xlu2 %v4608_v2, %s4532_s14 }
 0x6d0   : > { %1527 = vadd.xlane.f32.xlu0 %v1522_v37 }
 0x6d8   : > { %1529 = vadd.xlane.f32.xlu0 %v1523_v57 }
 0x6e0   : > { %1531 = vadd.xlane.f32.xlu0 %v1524_v30 }
 0x6f4   : > { %1604 = vrot.lane.b32.xlu0 %v5142_v22, %s4532_s14 }
 0x72b   : > { %v1526_v29 = vpop.xlane.xlu1 %1525  ;;  %v1514_v38 = vpop.xlane.xlu0 %1513 }
 0x72c   : > { %4365 = vrcp.f32 %v1526_v29  ;;  %v1544_v43 = vand.u32 2147483648, %v1526_v29  ;;  %v1542_v7 = vand.u32 2147483647, %v1526_v29  ;;  %vm1538_vm10 = vweird.f32 %v1526_v29 }
 0x72e   : > { %v1545_v32 = vor.u32 1.1754944e-38, %v1544_v43  ;;  %vm1543_vm13 = vcmp.eq.f32.partialorder %v1542_v7, 8.507059e+37  ;;  %v1518_v43 = vpop.xlane.xlu2 %1517 }
 0x732   : > { %v4366_v19 = vpop.eup %4365 }
 0x733   : > { %v1534_v9 = vmul.f32 %v4366_v19, %v1526_v29  ;;  %v1516_v5 = vpop.xlane.xlu0 %1515  ;;  %vm1539_vm9 = vweird.f32 %v4366_v19 }
 0x734   : > { %vm1540_vm12 = vmor %vm1538_vm10, %vm1539_vm9 }
 0x735   : > { %v1535_v35 = vsub.f32 1.0, %v1534_v9 }
 0x737   : > { %v1536_v24 = vmul.f32 %v4366_v19, %v1535_v35 }
 0x739   : > { %v1537_v39 = vadd.f32 %v4366_v19, %v1536_v24 }
 0x73b   : > { %v1541_v10 = vsel %vm1540_vm12, %v4366_v19, %v1537_v39  ;;  %v1520_v58 = vpop.xlane.xlu0 %1519  ;;  %vm1726_vm12 = vcmp.eq.s32.totalorder %v4675_v36, 9 }
 0x73c   : > { %v1546_v31 = vsel %vm1543_vm13, %v1545_v32, %v1541_v10 }
 0x73d   : > { %v1547_v50 = vmul.f32 %v1546_v31, %v1514_v38 }
 0x73f   : > { %v1596_v63 = vmul.f32 %v4086_v52, %v1547_v50 }
 0x741   : > { %v5148_v42 = vadd.f32 %v1596_v63, %v5110_v8 }
 0x743   : > { %v1528_v20 = vpop.xlane.xlu0 %1527 }
 0x744   : > { %4367 = vrcp.f32 %v1528_v20  ;;  %v1559_v25 = vand.u32 2147483648, %v1528_v20  ;;  %v1557_v44 = vand.u32 2147483647, %v1528_v20  ;;  %vm1553_vm15 = vweird.f32 %v1528_v20 }
 0x746   : > { %v1560_v21 = vor.u32 1.1754944e-38, %v1559_v25  ;;  %vm1558_vm1 = vcmp.eq.f32.partialorder %v1557_v44, 8.507059e+37 }
 0x74a   : > { %v4368_v11 = vpop.eup %4367 }
 0x74b   : > { %v1549_v4 = vmul.f32 %v4368_v11, %v1528_v20  ;;  %v1530_v34 = vpop.xlane.xlu0 %1529  ;;  %vm1554_vm14 = vweird.f32 %v4368_v11 }
 0x74c   : > { %4369 = vrcp.f32 %v1530_v34  ;;  %vm1555_vm0 = vmor %vm1553_vm15, %vm1554_vm14  ;;  %v1574_v33 = vand.u32 2147483648, %v1530_v34  ;;  %v1572_v57 = vand.u32 2147483647, %v1530_v34  ;;  %vm1568_vm3 = vweird.f32 %v1530_v34 }
 0x74d   : > { %v1550_v6 = vsub.f32 1.0, %v1549_v4 }
 0x74e   : > { %v1575_v19 = vor.u32 1.1754944e-38, %v1574_v33  ;;  %vm1573_vm5 = vcmp.eq.f32.partialorder %v1572_v57, 8.507059e+37 }
 0x74f   : > { %v1551_v54 = vmul.f32 %v4368_v11, %v1550_v6 }
 0x751   : > { %v1552_v28 = vadd.f32 %v4368_v11, %v1551_v54 }
 0x752   : > { %v4370_v1 = vpop.eup %4369 }
 0x753   : > { %v1556_v3 = vsel %vm1555_vm0, %v4368_v11, %v1552_v28  ;;  %v1564_v8 = vmul.f32 %v4370_v1, %v1530_v34  ;;  %v1532_v53 = vpop.xlane.xlu0 %1531  ;;  %vm1569_vm2 = vweird.f32 %v4370_v1  ;;  %v1614_v34 = vpop.permute.xlu2 %1613 }
 0x754   : > { %v1561_v0 = vsel %vm1558_vm1, %v1560_v21, %v1556_v3  ;;  %4371 = vrcp.f32 %v1532_v53  ;;  %vm1570_vm4 = vmor %vm1568_vm3, %vm1569_vm2  ;;  %v1589_v39 = vand.u32 2147483648, %v1532_v53  ;;  %v1587_v31 = vand.u32 2147483647, %v1532_v53 }
 0x755   : > { %v1562_v51 = vmul.f32 %v1561_v0, %v1516_v5  ;;  %v1565_v41 = vsub.f32 1.0, %v1564_v8  ;;  %vm1583_vm7 = vweird.f32 %v1532_v53 }
 0x756   : > { %v1590_v63 = vor.u32 1.1754944e-38, %v1589_v39  ;;  %vm1588_vm9 = vcmp.eq.f32.partialorder %v1587_v31, 8.507059e+37 }
 0x757   : > { %v1597_v55 = vmul.f32 %v4086_v52, %v1562_v51  ;;  %v1566_v37 = vmul.f32 %v4370_v1, %v1565_v41 }
 0x759   : > { %v1567_v30 = vadd.f32 %v4370_v1, %v1566_v37  ;;  %v5151_v29 = vadd.f32 %v1597_v55, %v5113_v47 }
 0x75a   : > { %v4372_v38 = vpop.eup %4371 }
 0x75b   : > { %v1571_v9 = vsel %vm1570_vm4, %v4370_v1, %v1567_v30  ;;  %v1579_v35 = vmul.f32 %v4372_v38, %v1532_v53  ;;  %vm1584_vm6 = vweird.f32 %v4372_v38 }
 0x75c   : > { %v1576_v24 = vsel %vm1573_vm5, %v1575_v19, %v1571_v9  ;;  %vm1585_vm8 = vmor %vm1583_vm7, %vm1584_vm6 }
 0x75d   : > { %v1577_v5 = vmul.f32 %v1576_v24, %v1518_v43  ;;  %v1580_v7 = vsub.f32 1.0, %v1579_v35 }
 0x75f   : > { %v1598_v32 = vmul.f32 %v4086_v52, %v1577_v5  ;;  %v1581_v10 = vmul.f32 %v4372_v38, %v1580_v7 }
 0x761   : > { %v1582_v50 = vadd.f32 %v4372_v38, %v1581_v10  ;;  %v5154_v47 = vadd.f32 %v1598_v32, %v5117_v49 }
 0x763   : > { %v1586_v20 = vsel %vm1585_vm8, %v4372_v38, %v1582_v50 }
 0x764   : > { %v1591_v11 = vsel %vm1588_vm9, %v1590_v63, %v1586_v20 }
 0x765   : > { %v1592_v4 = vmul.f32 %v1591_v11, %v1520_v58 }
 0x766   : > { %v1605_v6 = vpop.permute.xlu0 %1604 }
 0x767   : > { %v1599_v25 = vmul.f32 %v4086_v52, %v1592_v4  ;;  %4163 = vpush %v1605_v6 }
 0x768   : > { %4165 = vpush %v1614_v34 }
 0x769   : > { %v5157_v54 = vadd.f32 %v1599_v25, %v5120_v23 }
 0x798   : > { %s4164_s17 = spop %4163 }
 0x799   : > { %v1607_v44 = vstv %s4164_s17  ;;  %s4166_s18 = spop %4165 }
 0x79a   : > { %v1609_v49 = vmul.f32 %v1607_v44, %v4669_v27  ;;  %v1610_v28 = vmul.f32 %v1607_v44, %v4693_v46  ;;  %v1611_v1 = vmul.f32 %v1607_v44, %v4704_v59  ;;  %v1616_v21 = vstv %s4166_s18 }
 0x79b   : > { %v1618_v58 = vmul.f32 %v1616_v21, %v4667_v26  ;;  %v1619_v3 = vmul.f32 %v1616_v21, %v4691_v45  ;;  %v1620_v52 = vmul.f32 %v1616_v21, %v4710_v62  ;;  %v1612_v41 = vmul.f32 %v1607_v44, %v4706_v60 }
 0x79c   : > { %v1621_v33 = vmul.f32 %v1616_v21, %v4708_v61 }
 0x79d   : > { %v1622_v8 = vadd.f32 %v1618_v58, %v1609_v49  ;;  %v1623_v53 = vadd.f32 %v1619_v3, %v1610_v28  ;;  %v1624_v23 = vadd.f32 %v1620_v52, %v1611_v1 }
 0x79e   : > { %v1625_v30 = vadd.f32 %v1621_v33, %v1612_v41 }
 0x79f   : > { %v1628_v0 = vsub.f32 0.0, %v1624_v23  ;;  %v1626_v51 = vsub.f32 0.0, %v1622_v8  ;;  %v1627_v55 = vsub.f32 0.0, %v1623_v53 }
 0x7a0   : > { %v1629_v19 = vsub.f32 0.0, %v1625_v30 }
 0x7a1   : > { %v1634_v37 = vmul.f32 1.442695, %v1628_v0  ;;  %v1630_v57 = vmul.f32 1.442695, %v1626_v51  ;;  %v1632_v38 = vmul.f32 1.442695, %v1627_v55 }
 0x7a2   : > { %v1636_v7 = vmul.f32 1.442695, %v1629_v19  ;;  %v5191_v0 = vsel %vm1726_vm12, 1.0, %v6865_v56 }
 0x7a3   : > { %4373 = vpow2.f32 %v1634_v37 }
 0x7a4   : > { %4375 = vpow2.f32 %v1630_v57 }
 0x7a5   : > { %4377 = vpow2.f32 %v1632_v38 }
 0x7a6   : > { %4379 = vpow2.f32 %v1636_v7 }
 0x7a9   : > { %v4374_v9 = vpop.eup %4373 }
 0x7aa   : > { %v4376_v35 = vpop.eup %4375  ;;  %v1640_v43 = vadd.f32 1e-10, %v4374_v9 }
 0x7ab   : > { %v1638_v24 = vadd.f32 1e-10, %v4376_v35  ;;  %v4378_v10 = vpop.eup %4377 }
 0x7ac   : > { %v1644_v5 = vmul.f32 %v1640_v43, %v4695_v48  ;;  %v1639_v31 = vadd.f32 1e-10, %v4378_v10  ;;  %v4380_v63 = vpop.eup %4379  ;;  %v1656_v34 = vmul.f32 %v4686_v40, %v1640_v43 }
 0x7ad   : > { %v1654_v39 = vmul.f32 %v4686_v40, %v1638_v24  ;;  %v1642_v32 = vmul.f32 %v1638_v24, %v4695_v48  ;;  %v1641_v20 = vadd.f32 1e-10, %v4380_v63 }
 0x7ae   : > { %1650 = vadd.xlane.f32.xlu0 %v1644_v5  ;;  %v1643_v50 = vmul.f32 %v1639_v31, %v4695_v48  ;;  %v1655_v4 = vmul.f32 %v4686_v40, %v1639_v31 }
 0x7af   : > { %1658 = vadd.xlane.f32.xlu2 %v1654_v39  ;;  %1646 = vadd.xlane.f32.xlu1 %v1642_v32  ;;  %v1645_v11 = vmul.f32 %v1641_v20, %v4695_v48  ;;  %v1657_v6 = vmul.f32 %v4686_v40, %v1641_v20 }
 0x7b7   : > { %1648 = vadd.xlane.f32.xlu1 %v1643_v50 }
 0x7bf   : > { %1652 = vadd.xlane.f32.xlu1 %v1645_v11 }
 0x7c2   : > { %1746 = vrot.lane.b32.xlu0 %v4608_v2, %s4533_s19 }
 0x7c7   : > { %1879 = vrot.lane.b32.xlu2 %v4608_v2, %s4534_s20  ;;  %1660 = vadd.xlane.f32.xlu1 %v1655_v4 }
 0x7ca   : > { %2012 = vrot.lane.b32.xlu0 %v4608_v2, %s4535_s21 }
 0x7cf   : > { %2278 = vrot.lane.b32.xlu2 %v4608_v2, %s4536_s22 }
 0x7d2   : > { %2145 = vrot.lane.b32.xlu0 %v4608_v2, %s4537_s23 }
 0x7da   : > { %2402 = vrot.lane.b32.xlu0 %v5142_v22, %s4538_s24 }
 0x7e0   : > { %1737 = vrot.lane.b32.xlu1 %v5142_v22, %s4533_s19 }
 0x7e8   : > { %1870 = vrot.lane.b32.xlu1 %v5142_v22, %s4534_s20 }
 0x7f0   : > { %2003 = vrot.lane.b32.xlu1 %v5142_v22, %s4535_s21 }
 0x7f8   : > { %1662 = vadd.xlane.f32.xlu2 %v1656_v34  ;;  %2136 = vrot.lane.b32.xlu1 %v5142_v22, %s4537_s23  ;;  %s6783_s23 = scalar_lea.vmem %s6820_s7, %s4617_s9 }
 0x800   : > { %2269 = vrot.lane.b32.xlu1 %v5142_v22, %s4536_s22 }
 0x804   : > { %1664 = vadd.xlane.f32.xlu0 %v1657_v6 }
 0x808   : > { %2411 = vrot.lane.b32.xlu1 %v4608_v2, %s4538_s24 }
 0x821   : > { %v5197_v43 = vpop.xlane.xlu0 %1650 }
 0x822   : > { %v1659_v25 = vpop.xlane.xlu2 %1658  ;;  %v1647_v44 = vpop.xlane.xlu1 %1646 }
 0x823   : > { %4381 = vrcp.f32 %v1659_v25  ;;  %v1677_v58 = vand.u32 2147483648, %v1659_v25  ;;  %v1675_v52 = vand.u32 2147483647, %v1659_v25  ;;  %vm1671_vm11 = vweird.f32 %v1659_v25 }
 0x825   : > { %v1678_v22 = vor.u32 1.1754944e-38, %v1677_v58  ;;  %vm1676_vm14 = vcmp.eq.f32.partialorder %v1675_v52, 8.507059e+37 }
 0x829   : > { %v4382_v49 = vpop.eup %4381 }
 0x82a   : > { %v1667_v28 = vmul.f32 %v4382_v49, %v1659_v25  ;;  %v1649_v1 = vpop.xlane.xlu1 %1648  ;;  %vm1672_vm10 = vweird.f32 %v4382_v49  ;;  %v1880_v50 = vpop.permute.xlu2 %1879 }
 0x82b   : > { %vm1673_vm13 = vmor %vm1671_vm11, %vm1672_vm10 }
 0x82c   : > { %v1668_v21 = vsub.f32 1.0, %v1667_v28 }
 0x82e   : > { %v1669_v3 = vmul.f32 %v4382_v49, %v1668_v21 }
 0x830   : > { %v1670_v8 = vadd.f32 %v4382_v49, %v1669_v3 }
 0x832   : > { %v1674_v53 = vsel %vm1673_vm13, %v4382_v49, %v1670_v8  ;;  %v5188_v2 = vpop.xlane.xlu1 %1652  ;;  %v2279_v25 = vpop.permute.xlu2 %2278  ;;  %vm1859_vm13 = vcmp.eq.s32.totalorder %v4675_v36, 10 }
 0x833   : > { %v1679_v23 = vsel %vm1676_vm14, %v1678_v22, %v1674_v53 }
 0x834   : > { %v1680_v51 = vmul.f32 %v1679_v23, %v1647_v44  ;;  %v1747_v10 = vpop.permute.xlu0 %1746 }
 0x836   : > { %v1729_v41 = vmul.f32 %v5191_v0, %v1680_v51 }
 0x838   : > { %v5195_v33 = vadd.f32 %v1729_v41, %v5148_v42 }
 0x83a   : > { %v1661_v55 = vpop.xlane.xlu1 %1660 }
 0x83b   : > { %4383 = vrcp.f32 %v1661_v55  ;;  %v1692_v38 = vand.u32 2147483648, %v1661_v55  ;;  %v1690_v9 = vand.u32 2147483647, %v1661_v55  ;;  %vm1686_vm0 = vweird.f32 %v1661_v55 }
 0x83c   : > { %v2013_v20 = vpop.permute.xlu0 %2012 }
 0x83d   : > { %v1693_v24 = vor.u32 1.1754944e-38, %v1692_v38  ;;  %vm1691_vm2 = vcmp.eq.f32.partialorder %v1690_v9, 8.507059e+37 }
 0x841   : > { %v4384_v37 = vpop.eup %4383 }
 0x842   : > { %v1682_v57 = vmul.f32 %v4384_v37, %v1661_v55  ;;  %vm1687_vm15 = vweird.f32 %v4384_v37 }
 0x843   : > { %vm1688_vm1 = vmor %vm1686_vm0, %vm1687_vm15 }
 0x844   : > { %v1683_v30 = vsub.f32 1.0, %v1682_v57  ;;  %v2146_v4 = vpop.permute.xlu0 %2145 }
 0x846   : > { %v1684_v19 = vmul.f32 %v4384_v37, %v1683_v30 }
 0x848   : > { %v1685_v35 = vadd.f32 %v4384_v37, %v1684_v19 }
 0x84a   : > { %v1689_v5 = vsel %vm1688_vm1, %v4384_v37, %v1685_v35 }
 0x84b   : > { %v1694_v7 = vsel %vm1691_vm2, %v1693_v24, %v1689_v5 }
 0x84c   : > { %v1695_v42 = vmul.f32 %v1694_v7, %v1649_v1 }
 0x84e   : > { %v1730_v39 = vmul.f32 %v5191_v0, %v1695_v42 }
 0x850   : > { %v5201_v32 = vadd.f32 %v1730_v39, %v5151_v29  ;;  %v2403_v29 = vpop.permute.xlu0 %2402 }
 0x852   : > { %v1738_v31 = vpop.permute.xlu1 %1737 }
 0x853   : > { %4167 = vpush %v1738_v31 }
 0x854   : > { %4169 = vpush %v1747_v10 }
 0x85a   : > { %v1871_v63 = vpop.permute.xlu1 %1870 }
 0x85b   : > { %4171 = vpush %v1871_v63 }
 0x85c   : > { %4173 = vpush %v1880_v50 }
 0x862   : > { %v2004_v11 = vpop.permute.xlu1 %2003 }
 0x863   : > { %4175 = vpush %v2004_v11 }
 0x864   : > { %4177 = vpush %v2013_v20 }
 0x86a   : > { %v2137_v34 = vpop.permute.xlu1 %2136 }
 0x86b   : > { %4179 = vpush %v2137_v34 }
 0x86c   : > { %4181 = vpush %v2146_v4 }
 0x872   : > { %v2270_v6 = vpop.permute.xlu1 %2269 }
 0x873   : > { %4183 = vpush %v2270_v6 }
 0x874   : > { %4185 = vpush %v2279_v25 }
 0x875   : > { %4187 = vpush %v2403_v29 }
 0x87a   : > { %v2412_v44 = vpop.permute.xlu1 %2411 }
 0x87b   : > { %4189 = vpush %v2412_v44 }
 0x884   : > { %s4168_s25 = spop %4167 }
 0x885   : > { %v1740_v49 = vstv %s4168_s25  ;;  %s4170_s26 = spop %4169 }
 0x886   : > { %v1742_v28 = vmul.f32 %v1740_v49, %v4669_v27  ;;  %v1743_v1 = vmul.f32 %v1740_v49, %v4693_v46  ;;  %v1744_v21 = vmul.f32 %v1740_v49, %v4704_v59  ;;  %v1749_v58 = vstv %s4170_s26 }
 0x887   : > { %v1745_v3 = vmul.f32 %v1740_v49, %v4706_v60  ;;  %v1751_v52 = vmul.f32 %v1749_v58, %v4667_v26  ;;  %v1752_v8 = vmul.f32 %v1749_v58, %v4691_v45  ;;  %v1753_v22 = vmul.f32 %v1749_v58, %v4710_v62 }
 0x888   : > { %v1754_v53 = vmul.f32 %v1749_v58, %v4708_v61 }
 0x889   : > { %v1755_v23 = vadd.f32 %v1751_v52, %v1742_v28  ;;  %v1756_v51 = vadd.f32 %v1752_v8, %v1743_v1  ;;  %v1757_v41 = vadd.f32 %v1753_v22, %v1744_v21 }
 0x88a   : > { %v1758_v55 = vadd.f32 %v1754_v53, %v1745_v3 }
 0x88b   : > { %v1761_v37 = vsub.f32 0.0, %v1757_v41  ;;  %v1760_v57 = vsub.f32 0.0, %v1756_v51  ;;  %v1759_v30 = vsub.f32 0.0, %v1755_v23 }
 0x88c   : > { %s4172_s27 = spop %4171  ;;  %v1762_v42 = vsub.f32 0.0, %v1758_v55 }
 0x88d   : > { %v1873_v38 = vstv %s4172_s27  ;;  %s4174_s0 = spop %4173  ;;  %v1767_v35 = vmul.f32 1.442695, %v1761_v37  ;;  %v1765_v24 = vmul.f32 1.442695, %v1760_v57  ;;  %v1763_v7 = vmul.f32 1.442695, %v1759_v30 }
 0x88e   : > { %v1875_v19 = vmul.f32 %v1873_v38, %v4669_v27  ;;  %v1882_v9 = vstv %s4174_s0  ;;  %v1769_v10 = vmul.f32 1.442695, %v1762_v42  ;;  %v1878_v31 = vmul.f32 %v1873_v38, %v4706_v60 }
 0x88f   : > { %v1884_v5 = vmul.f32 %v1882_v9, %v4667_v26  ;;  %4385 = vpow2.f32 %v1767_v35  ;;  %v1887_v50 = vmul.f32 %v1882_v9, %v4708_v61  ;;  %v1877_v11 = vmul.f32 %v1873_v38, %v4704_v59 }
 0x890   : > { %4387 = vpow2.f32 %v1765_v24  ;;  %v1886_v4 = vmul.f32 %v1882_v9, %v4710_v62  ;;  %v1876_v34 = vmul.f32 %v1873_v38, %v4693_v46  ;;  %v1885_v6 = vmul.f32 %v1882_v9, %v4691_v45 }
 0x891   : > { %v1888_v39 = vadd.f32 %v1884_v5, %v1875_v19  ;;  %4389 = vpow2.f32 %v1763_v7  ;;  %v1891_v49 = vadd.f32 %v1887_v50, %v1878_v31 }
 0x892   : > { %4391 = vpow2.f32 %v1769_v10  ;;  %v1890_v1 = vadd.f32 %v1886_v4, %v1877_v11  ;;  %v1889_v52 = vadd.f32 %v1885_v6, %v1876_v34 }
 0x893   : > { %v1892_v63 = vsub.f32 0.0, %v1888_v39  ;;  %v1895_v23 = vsub.f32 0.0, %v1891_v49 }
 0x894   : > { %s4176_s30 = spop %4175  ;;  %v1894_v51 = vsub.f32 0.0, %v1890_v1  ;;  %v1893_v41 = vsub.f32 0.0, %v1889_v52 }
 0x895   : > { %v4386_v20 = vpop.eup %4385  ;;  %v1896_v28 = vmul.f32 1.442695, %v1892_v63  ;;  %s4178_s10 = spop %4177  ;;  %v1902_v37 = vmul.f32 1.442695, %v1895_v23  ;;  %v2006_v57 = vstv %s4176_s30 }
 0x896   : > { %v4388_v25 = vpop.eup %4387  ;;  %v1773_v29 = vadd.f32 1e-10, %v4386_v20  ;;  %v2015_v30 = vstv %s4178_s10  ;;  %v1900_v19 = vmul.f32 1.442695, %v1894_v51  ;;  %v1898_v35 = vmul.f32 1.442695, %v1893_v41 }
 0x897   : > { %v4390_v44 = vpop.eup %4389  ;;  %v1772_v58 = vadd.f32 1e-10, %v4388_v25  ;;  %4393 = vpow2.f32 %v1896_v28  ;;  %v2009_v7 = vmul.f32 %v2006_v57, %v4693_v46  ;;  %v2018_v42 = vmul.f32 %v2015_v30, %v4691_v45 }
 0x898   : > { %v1777_v21 = vmul.f32 %v1773_v29, %v4695_v48  ;;  %v1771_v3 = vadd.f32 1e-10, %v4390_v44  ;;  %v4392_v53 = vpop.eup %4391  ;;  %4395 = vpow2.f32 %v1902_v37  ;;  %v2008_v10 = vmul.f32 %v2006_v57, %v4669_v27 }
 0x899   : > { %v1776_v8 = vmul.f32 %v1772_v58, %v4695_v48  ;;  %v1774_v55 = vadd.f32 1e-10, %v4392_v53  ;;  %v1788_v38 = vmul.f32 %v4686_v40, %v1772_v58  ;;  %4397 = vpow2.f32 %v1900_v19 }
 0x89a   : > { %1783 = vadd.xlane.f32.xlu0 %v1777_v21  ;;  %v1775_v22 = vmul.f32 %v1771_v3, %v4695_v48  ;;  %v1787_v24 = vmul.f32 %v4686_v40, %v1771_v3  ;;  %v2017_v31 = vmul.f32 %v2015_v30, %v4667_v26  ;;  %4399 = vpow2.f32 %v1898_v35 }
 0x89b   : > { %1781 = vadd.xlane.f32.xlu2 %v1776_v8  ;;  %v1778_v5 = vmul.f32 %v1774_v55, %v4695_v48  ;;  %v2022_v50 = vadd.f32 %v2018_v42, %v2009_v7  ;;  %v1790_v34 = vmul.f32 %v4686_v40, %v1774_v55  ;;  %v1789_v6 = vmul.f32 %v4686_v40, %v1773_v29 }
 0x89c   : > { %1779 = vadd.xlane.f32.xlu1 %v1775_v22  ;;  %v2021_v11 = vadd.f32 %v2017_v31, %v2008_v10  ;;  %s4180_s11 = spop %4179  ;;  %v2010_v28 = vmul.f32 %v2006_v57, %v4704_v59  ;;  %v2019_v1 = vmul.f32 %v2015_v30, %v4710_v62  ;;  %v2020_v19 = vmul.f32 %v2015_v30, %v4708_v61 }
 0x89d   : > { %v4394_v9 = vpop.eup %4393  ;;  %v2026_v44 = vsub.f32 0.0, %v2022_v50  ;;  %s4182_s12 = spop %4181  ;;  %v2139_v8 = vstv %s4180_s11 }
 0x89e   : > { %v1904_v39 = vadd.f32 1e-10, %v4394_v9  ;;  %v4396_v20 = vpop.eup %4395  ;;  %v2025_v21 = vsub.f32 0.0, %v2021_v11  ;;  %v2148_v22 = vstv %s4182_s12  ;;  %v2023_v53 = vadd.f32 %v2019_v1, %v2010_v28 }
 0x89f   : > { %v4398_v4 = vpop.eup %4397  ;;  %v1907_v49 = vadd.f32 1e-10, %v4396_v20  ;;  %v2031_v52 = vmul.f32 1.442695, %v2026_v44  ;;  %v2141_v55 = vmul.f32 %v2139_v8, %v4669_v27  ;;  %v2150_v37 = vmul.f32 %v2148_v22, %v4667_v26 }
 0x8a0   : > { %v1908_v63 = vmul.f32 %v1904_v39, %v4695_v48  ;;  %v4400_v25 = vpop.eup %4399  ;;  %v1906_v58 = vadd.f32 1e-10, %v4398_v4  ;;  %v2029_v23 = vmul.f32 1.442695, %v2025_v21  ;;  %v2027_v9 = vsub.f32 0.0, %v2023_v53 }
 0x8a1   : > { %v1905_v3 = vadd.f32 1e-10, %v4400_v25  ;;  %v1911_v29 = vmul.f32 %v1907_v49, %v4695_v48  ;;  %4401 = vpow2.f32 %v2031_v52  ;;  %v2154_v35 = vadd.f32 %v2150_v37, %v2141_v55 }
 0x8a2   : > { %1793 = vadd.xlane.f32.xlu0 %v1788_v38  ;;  %v1910_v51 = vmul.f32 %v1906_v58, %v4695_v48  ;;  %v2011_v38 = vmul.f32 %v2006_v57, %v4706_v60  ;;  %4403 = vpow2.f32 %v2029_v23  ;;  %v2033_v42 = vmul.f32 1.442695, %v2027_v9 }
 0x8a3   : > { %1791 = vadd.xlane.f32.xlu2 %v1787_v24  ;;  %v1909_v41 = vmul.f32 %v1905_v3, %v4695_v48  ;;  %v1922_v24 = vmul.f32 %v4686_v40, %v1906_v58  ;;  %v1921_v10 = vmul.f32 %v4686_v40, %v1905_v3  ;;  %v1920_v31 = vmul.f32 %v4686_v40, %v1904_v39 }
 0x8a4   : > { %1785 = vadd.xlane.f32.xlu1 %v1778_v5  ;;  %v2024_v7 = vadd.f32 %v2020_v19, %v2011_v38  ;;  %v2153_v57 = vmul.f32 %v2148_v22, %v4708_v61  ;;  %s4184_s13 = spop %4183  ;;  %v2158_v30 = vsub.f32 0.0, %v2154_v35  ;;  %v2142_v20 = vmul.f32 %v2139_v8, %v4693_v46 }
 0x8a5   : > { %v2151_v11 = vmul.f32 %v2148_v22, %v4691_v45  ;;  %s4186_s29 = spop %4185  ;;  %4405 = vpow2.f32 %v2033_v42  ;;  %v2272_v21 = vstv %s4184_s13  ;;  %v1923_v53 = vmul.f32 %v4686_v40, %v1907_v49 }
 0x8a6   : > { %v2028_v39 = vsub.f32 0.0, %v2024_v7  ;;  %v2162_v28 = vmul.f32 1.442695, %v2158_v30  ;;  %v2281_v58 = vstv %s4186_s29  ;;  %v2274_v37 = vmul.f32 %v2272_v21, %v4669_v27  ;;  %s4188_s8 = spop %4187 }
 0x8a7   : > { %v4402_v5 = vpop.eup %4401  ;;  %v2155_v1 = vadd.f32 %v2151_v11, %v2142_v20  ;;  %v2283_v38 = vmul.f32 %v2281_v58, %v4667_v26  ;;  %v2275_v49 = vmul.f32 %v2272_v21, %v4693_v46  ;;  %v2284_v19 = vmul.f32 %v2281_v58, %v4691_v45 }
 0x8a8   : > { %v4404_v50 = vpop.eup %4403  ;;  %v2038_v4 = vadd.f32 1e-10, %v4402_v5  ;;  %4407 = vpow2.f32 %v2162_v28  ;;  %v2405_v30 = vstv %s4188_s8 }
 0x8a9   : > { %v2037_v25 = vadd.f32 1e-10, %v4404_v50  ;;  %v2159_v55 = vsub.f32 0.0, %v2155_v1  ;;  %v2287_v42 = vadd.f32 %v2283_v38, %v2274_v37 }
 0x8aa   : > { %1912 = vadd.xlane.f32.xlu0 %v1908_v63  ;;  %v2144_v63 = vmul.f32 %v2139_v8, %v4706_v60  ;;  %v2042_v3 = vmul.f32 %v2038_v4, %v4695_v48 }
 0x8ab   : > { %1797 = vadd.xlane.f32.xlu2 %v1790_v34  ;;  %v2143_v34 = vmul.f32 %v2139_v8, %v4704_v59  ;;  %v2041_v8 = vmul.f32 %v2037_v25, %v4695_v48  ;;  %v4406_v23 = vpop.eup %4405  ;;  %v2164_v7 = vmul.f32 1.442695, %v2159_v55  ;;  %v2053_v11 = vmul.f32 %v4686_v40, %v2037_v25 }
 0x8ac   : > { %1795 = vadd.xlane.f32.xlu1 %v1789_v6  ;;  %v2152_v6 = vmul.f32 %v2148_v22, %v4710_v62  ;;  %v2157_v44 = vadd.f32 %v2153_v57, %v2144_v63  ;;  %v2276_v22 = vmul.f32 %v2272_v21, %v4704_v59  ;;  %s4190_s14 = spop %4189  ;;  %v2039_v35 = vadd.f32 1e-10, %v4406_v23 }
 0x8ad   : > { %v2288_v63 = vadd.f32 %v2284_v19, %v2275_v49  ;;  %v2291_v28 = vsub.f32 0.0, %v2287_v42  ;;  %v2410_v42 = vmul.f32 %v2405_v30, %v4706_v60 }
 0x8ae   : > { %v2156_v52 = vadd.f32 %v2152_v6, %v2143_v34  ;;  %v4408_v50 = vpop.eup %4407  ;;  %v2043_v20 = vmul.f32 %v2039_v35, %v4695_v48  ;;  %v2277_v6 = vmul.f32 %v2272_v21, %v4706_v60  ;;  %v2407_v21 = vmul.f32 %v2405_v30, %v4669_v27 }
 0x8af   : > { %v2292_v25 = vsub.f32 0.0, %v2288_v63 }
 0x8b0   : > { %v2160_v9 = vsub.f32 0.0, %v2156_v52  ;;  %v2408_v52 = vmul.f32 %v2405_v30, %v4693_v46 }
 0x8b2   : > { %1918 = vadd.xlane.f32.xlu0 %v1911_v29  ;;  %v2035_v29 = vmul.f32 1.442695, %v2028_v39  ;;  %v2166_v57 = vmul.f32 1.442695, %v2160_v9 }
 0x8b3   : > { %1916 = vadd.xlane.f32.xlu2 %v1910_v51  ;;  %v2285_v51 = vmul.f32 %v2281_v58, %v4710_v62 }
 0x8b4   : > { %1914 = vadd.xlane.f32.xlu1 %v1909_v41  ;;  %v2161_v41 = vsub.f32 0.0, %v2157_v44  ;;  %4409 = vpow2.f32 %v2035_v29 }
 0x8b6   : > { %v2168_v5 = vmul.f32 1.442695, %v2161_v41  ;;  %v2297_v41 = vmul.f32 1.442695, %v2292_v25 }
 0x8b8   : > { %4411 = vpow2.f32 %v2168_v5 }
 0x8b9   : > { %4413 = vpow2.f32 %v2164_v7 }
 0x8ba   : > { %1928 = vadd.xlane.f32.xlu0 %v1922_v24  ;;  %v2289_v24 = vadd.f32 %v2285_v51, %v2276_v22  ;;  %v4410_v34 = vpop.eup %4409  ;;  %4415 = vpow2.f32 %v2166_v57 }
 0x8bb   : > { %1926 = vadd.xlane.f32.xlu2 %v1921_v10  ;;  %v2414_v10 = vstv %s4190_s14  ;;  %v5270_v29 = vadd.f32 1e-10, %v4410_v34 }
 0x8bc   : > { %1924 = vadd.xlane.f32.xlu1 %v1920_v31  ;;  %v2054_v31 = vmul.f32 %v4686_v40, %v2038_v4  ;;  %v2417_v39 = vmul.f32 %v2414_v10, %v4691_v45  ;;  %v2293_v44 = vsub.f32 0.0, %v2289_v24  ;;  %v2416_v1 = vmul.f32 %v2414_v10, %v4667_v26 }
 0x8bd   : > { %v5265_v4 = vadd.f32 1e-10, %v4408_v50  ;;  %v2056_v46 = vmul.f32 %v4686_v40, %v5270_v29  ;;  %v2418_v38 = vmul.f32 %v2414_v10, %v4710_v62  ;;  %v2419_v24 = vmul.f32 %v2414_v10, %v4708_v61 }
 0x8be   : > { %v2421_v45 = vadd.f32 %v2417_v39, %v2408_v52  ;;  %v2420_v23 = vadd.f32 %v2416_v1, %v2407_v21  ;;  %v4412_v22 = vpop.eup %4411 }
 0x8bf   : > { %v2186_v26 = vmul.f32 %v4686_v40, %v5265_v4  ;;  %v4414_v55 = vpop.eup %4413  ;;  %v5278_v19 = vadd.f32 1e-10, %v4412_v22 }
 0x8c0   : > { %v4416_v27 = vpop.eup %4415  ;;  %v2425_v37 = vsub.f32 0.0, %v2421_v45  ;;  %v2424_v49 = vsub.f32 0.0, %v2420_v23  ;;  %v2171_v7 = vadd.f32 1e-10, %v4414_v55 }
 0x8c1   : > { %v2172_v5 = vadd.f32 1e-10, %v4416_v27  ;;  %v2189_v62 = vmul.f32 %v4686_v40, %v5278_v19 }
 0x8c2   : > { %2047 = vadd.xlane.f32.xlu0 %v2042_v3  ;;  %v2286_v3 = vmul.f32 %v2281_v58, %v4708_v61  ;;  %v2055_v58 = vmul.f32 %v4686_v40, %v2039_v35  ;;  %v2409_v35 = vmul.f32 %v2405_v30, %v4704_v59  ;;  %v2428_v63 = vmul.f32 1.442695, %v2424_v49 }
 0x8c3   : > { %2045 = vadd.xlane.f32.xlu2 %v2041_v8  ;;  %v2295_v8 = vmul.f32 1.442695, %v2291_v28  ;;  %v2187_v61 = vmul.f32 %v4686_v40, %v2171_v7 }
 0x8c4   : > { %1930 = vadd.xlane.f32.xlu1 %v1923_v53  ;;  %v2299_v53 = vmul.f32 1.442695, %v2293_v44  ;;  %v2290_v51 = vadd.f32 %v2286_v3, %v2277_v6  ;;  %v2422_v50 = vadd.f32 %v2418_v38, %v2409_v35  ;;  %v2188_v6 = vmul.f32 %v4686_v40, %v2172_v5 }
 0x8c5   : > { %v2175_v35 = vmul.f32 %v2171_v7, %v4695_v48 }
 0x8c6   : > { %4417 = vpow2.f32 %v2299_v53  ;;  %v2294_v9 = vsub.f32 0.0, %v2290_v51  ;;  %v2426_v10 = vsub.f32 0.0, %v2422_v50 }
 0x8c7   : > { %4419 = vpow2.f32 %v2295_v8 }
 0x8c8   : > { %4421 = vpow2.f32 %v2297_v41  ;;  %v2432_v28 = vmul.f32 1.442695, %v2426_v10 }
 0x8ca   : > { %2059 = vadd.xlane.f32.xlu0 %v2054_v31  ;;  %v2430_v31 = vmul.f32 1.442695, %v2425_v37  ;;  %v2044_v37 = vmul.f32 %v5270_v29, %v4695_v48  ;;  %v2177_v29 = vmul.f32 %v5278_v19, %v4695_v48 }
 0x8cb   : > { %2057 = vadd.xlane.f32.xlu2 %v2053_v11  ;;  %v2423_v11 = vadd.f32 %v2419_v24, %v2410_v42  ;;  %v2174_v24 = vmul.f32 %v5265_v4, %v4695_v48 }
 0x8cc   : > { %2049 = vadd.xlane.f32.xlu1 %v2043_v20  ;;  %v4418_v57 = vpop.eup %4417  ;;  %v2301_v20 = vmul.f32 1.442695, %v2294_v9  ;;  %4423 = vpow2.f32 %v2430_v31  ;;  %v2176_v9 = vmul.f32 %v2172_v5, %v4695_v48  ;;  %v1663_v31 = vpop.xlane.xlu2 %1662 }
 0x8cd   : > { %v4420_v34 = vpop.eup %4419  ;;  %4425 = vpow2.f32 %v2428_v63  ;;  %v2305_v60 = vadd.f32 1e-10, %v4418_v57  ;;  %v2427_v30 = vsub.f32 0.0, %v2423_v11  ;;  %v5305_v5 = vpop.xlane.xlu0 %1664  ;;  %vm1701_vm4 = vweird.f32 %v1663_v31 }
 0x8ce   : > { %v4422_v59 = vpop.eup %4421  ;;  %4427 = vpow2.f32 %v2301_v20  ;;  %v2303_v44 = vadd.f32 1e-10, %v4420_v34  ;;  %vm1716_vm6 = vweird.f32 %v5305_v5 }
 0x8cf   : > { %v2304_v39 = vadd.f32 1e-10, %v4422_v59  ;;  %v2321_v1 = vmul.f32 %v4686_v40, %v2305_v60  ;;  %v2434_v52 = vmul.f32 1.442695, %v2427_v30  ;;  %4429 = vpow2.f32 %v2432_v28 }
 0x8d0   : > { %v2319_v45 = vmul.f32 %v4686_v40, %v2303_v44  ;;  %v2309_v7 = vmul.f32 %v2305_v60, %v4695_v48  ;;  %v4497_v60 = vld [vmem:[%s6819_s6] sm:$0xff] }
 0x8d1   : > { %v2320_v21 = vmul.f32 %v4686_v40, %v2304_v39  ;;  %4431 = vpow2.f32 %v2434_v52  ;;  %v2308_v42 = vmul.f32 %v2304_v39, %v4695_v48  ;;  %v2693_v30 = vsub.f32 1.0, %v4497_v60 }
 0x8d2   : > { %2190 = vadd.xlane.f32.xlu0 %v2186_v26  ;;  %v4424_v3 = vpop.eup %4423  ;;  %4433 = vrcp.f32 %v1663_v31  ;;  %v1705_v52 = vand.u32 2147483647, %v1663_v31 }
 0x8d3   : > { %2063 = vadd.xlane.f32.xlu2 %v2056_v46  ;;  %v4426_v25 = vpop.eup %4425  ;;  %v2437_v8 = vadd.f32 1e-10, %v4424_v3  ;;  %4435 = vrcp.f32 %v5305_v5 }
 0x8d4   : > { %2061 = vadd.xlane.f32.xlu1 %v2055_v58  ;;  %v4428_v53 = vpop.eup %4427  ;;  %v2436_v26 = vadd.f32 1e-10, %v4426_v25  ;;  %v1707_v25 = vand.u32 2147483648, %v1663_v31  ;;  %vm5349_vm5 = vcmp.eq.f32.partialorder %v1705_v52, 8.507059e+37 }
 0x8d5   : > { %v2306_v23 = vadd.f32 1e-10, %v4428_v53  ;;  %v2453_v22 = vmul.f32 %v4686_v40, %v2437_v8  ;;  %v4430_v51 = vpop.eup %4429  ;;  %v5339_v53 = vperm.slane %v4497_v60, 7 }
 0x8d6   : > { %v2452_v55 = vmul.f32 %v4686_v40, %v2436_v26  ;;  %v2438_v46 = vadd.f32 1e-10, %v4430_v51  ;;  %v2440_v4 = vmul.f32 %v2436_v26, %v4695_v48 }
 0x8d7   : > { %v2322_v41 = vmul.f32 %v4686_v40, %v2306_v23  ;;  %v4432_v58 = vpop.eup %4431  ;;  %v2310_v50 = vmul.f32 %v2306_v23, %v4695_v48 }
 0x8d8   : > { %v2439_v27 = vadd.f32 1e-10, %v4432_v58  ;;  %v2454_v38 = vmul.f32 %v4686_v40, %v2438_v46  ;;  %v5311_v19 = vpop.eup %4433  ;;  %v2442_v59 = vmul.f32 %v2438_v46, %v4695_v48  ;;  %v1708_v58 = vor.u32 1.1754944e-38, %v1707_v25 }
 0x8d9   : > { %v1697_v11 = vmul.f32 %v5311_v19, %v1663_v31  ;;  %vm1702_vm3 = vweird.f32 %v5311_v19 }
 0x8da   : > { %2196 = vadd.xlane.f32.xlu0 %v2189_v62  ;;  %v2455_v49 = vmul.f32 %v4686_v40, %v2439_v27  ;;  %v2307_v40 = vmul.f32 %v2303_v44, %v4695_v48  ;;  %v5315_v62 = vpop.eup %4435  ;;  %v2443_v34 = vmul.f32 %v2439_v27, %v4695_v48  ;;  %vm5358_vm8 = vmor %vm1701_vm4, %vm1702_vm3 }
 0x8db   : > { %2194 = vadd.xlane.f32.xlu2 %v2188_v6  ;;  %v1712_v6 = vmul.f32 %v5315_v62, %v5305_v5  ;;  %v1698_v10 = vsub.f32 1.0, %v1697_v11  ;;  %vm1717_vm7 = vweird.f32 %v5315_v62 }
 0x8dc   : > { %2192 = vadd.xlane.f32.xlu1 %v2187_v61  ;;  %v2441_v61 = vmul.f32 %v2437_v8, %v4695_v48  ;;  %v5336_v48 = vperm.slane %v2693_v30, 7  ;;  %v5341_v8 = vperm.slane %v4497_v60, 6  ;;  %vm5373_vm9 = vmor %vm1716_vm6, %vm1717_vm7 }
 0x8dd   : > { %v1713_v44 = vsub.f32 1.0, %v1712_v6  ;;  %v1699_v3 = vmul.f32 %v5311_v19, %v1698_v10 }
 0x8de   : > { %v5347_v26 = vmul.f32 %v5336_v48, %v4647_v15  ;;  %v1720_v15 = vand.u32 2147483647, %v5305_v5 }
 0x8df   : > { %v1700_v23 = vadd.f32 %v5311_v19, %v1699_v3  ;;  %v4088_v3 = vsel %vm1859_vm13, 1.0, %v6865_v56 }
 0x8e0   : > { %vm1721_vm14 = vcmp.eq.f32.partialorder %v1720_v15, 8.507059e+37 }
 0x8e2   : > { %2327 = vadd.xlane.f32.xlu0 %v2321_v1 }
 0x8e3   : > { %2325 = vadd.xlane.f32.xlu2 %v2320_v21  ;;  %v1714_v21 = vmul.f32 %v5315_v62, %v1713_v44 }
 0x8e4   : > { %2323 = vadd.xlane.f32.xlu1 %v2319_v45 }
 0x8e5   : > { %v1715_v46 = vadd.f32 %v5315_v62, %v1714_v21 }
 0x8ea   : > { %2458 = vadd.xlane.f32.xlu0 %v2453_v22  ;;  %v2689_v22 = vmul.f32 %v5339_v53, %v4641_v12 }
 0x8eb   : > { %2456 = vadd.xlane.f32.xlu2 %v2452_v55 }
 0x8ec   : > { %2329 = vadd.xlane.f32.xlu1 %v2322_v41 }
 0x8f2   : > { %2051 = vadd.xlane.f32.xlu0 %v2044_v37  ;;  %v1722_v37 = vand.u32 2147483648, %v5305_v5 }
 0x8f3   : > { %2462 = vadd.xlane.f32.xlu2 %v2455_v49 }
 0x8f4   : > { %2460 = vadd.xlane.f32.xlu1 %v2454_v38  ;;  %v1723_v6 = vor.u32 1.1754944e-38, %v1722_v37 }
 0x8fa   : > { %2182 = vadd.xlane.f32.xlu0 %v2176_v9 }
 0x8fb   : > { %2180 = vadd.xlane.f32.xlu2 %v2175_v35  ;;  %v1704_v35 = vsel %vm5358_vm8, %v5311_v19, %v1700_v23 }
 0x8fc   : > { %2178 = vadd.xlane.f32.xlu1 %v2174_v24 }
 0x902   : > { %2313 = vadd.xlane.f32.xlu0 %v2308_v42 }
 0x903   : > { %2311 = vadd.xlane.f32.xlu2 %v2307_v40 }
 0x904   : > { %2184 = vadd.xlane.f32.xlu1 %v2177_v29 }
 0x90a   : > { %2444 = vadd.xlane.f32.xlu0 %v2440_v4  ;;  %v1719_v4 = vsel %vm5373_vm9, %v5315_v62, %v1715_v46 }
 0x90b   : > { %2317 = vadd.xlane.f32.xlu2 %v2310_v50  ;;  %v1724_v30 = vsel %vm1721_vm14, %v1723_v6, %v1719_v4 }
 0x90c   : > { %2315 = vadd.xlane.f32.xlu1 %v2309_v7  ;;  %v1725_v27 = vmul.f32 %v1724_v30, %v5188_v2 }
 0x90d   : > { %v5313_v63 = vpop.xlane.xlu0 %1783 }
 0x90e   : > { %v5317_v57 = vpop.xlane.xlu2 %1781 }
 0x90f   : > { %v5319_v20 = vpop.xlane.xlu1 %1779 }
 0x912   : > { %2450 = vadd.xlane.f32.xlu0 %v2443_v34  ;;  %v1709_v34 = vsel %vm5349_vm5, %v1708_v58, %v1704_v35 }
 0x913   : > { %2448 = vadd.xlane.f32.xlu2 %v2442_v59 }
 0x914   : > { %2446 = vadd.xlane.f32.xlu1 %v2441_v61 }
 0x915   : > { %v1794_v39 = vpop.xlane.xlu0 %1793 }
 0x916   : > { %4437 = vrcp.f32 %v1794_v39  ;;  %v5330_v28 = vpop.xlane.xlu2 %1791  ;;  %v1823_v42 = vand.u32 2147483647, %v1794_v39  ;;  %v1825_v29 = vand.u32 2147483648, %v1794_v39  ;;  %vm1819_vm11 = vweird.f32 %v1794_v39 }
 0x917   : > { %v5332_v1 = vpop.xlane.xlu1 %1785  ;;  %4439 = vrcp.f32 %v5330_v28  ;;  %v1808_v7 = vand.u32 2147483647, %v5330_v28  ;;  %v1810_v50 = vand.u32 2147483648, %v5330_v28  ;;  %vm1804_vm1 = vweird.f32 %v5330_v28 }
 0x918   : > { %v1826_v61 = vor.u32 1.1754944e-38, %v1825_v29  ;;  %vm1824_vm0 = vcmp.eq.f32.partialorder %v1823_v42, 8.507059e+37  ;;  %v2699_v29 = vadd.f32 %v5347_v26, %v2689_v22 }
 0x919   : > { %v1811_v44 = vor.u32 1.1754944e-38, %v1810_v50  ;;  %vm1809_vm3 = vcmp.eq.f32.partialorder %v1808_v7, 8.507059e+37 }
 0x91c   : > { %v4438_v45 = vpop.eup %4437 }
 0x91d   : > { %v1815_v51 = vmul.f32 %v4438_v45, %v1794_v39  ;;  %v5353_v41 = vpop.xlane.xlu0 %1912  ;;  %v4440_v55 = vpop.eup %4439  ;;  %vm1820_vm10 = vweird.f32 %v4438_v45 }
 0x91e   : > { %v1800_v49 = vmul.f32 %v4440_v55, %v5330_v28  ;;  %v5365_v9 = vpop.xlane.xlu2 %1797  ;;  %vm1805_vm12 = vweird.f32 %v4440_v55  ;;  %vm1821_vm15 = vmor %vm1819_vm11, %vm1820_vm10 }
 0x91f   : > { %v1816_v38 = vsub.f32 1.0, %v1815_v51  ;;  %v5367_v24 = vpop.xlane.xlu1 %1795  ;;  %4441 = vrcp.f32 %v5365_v9  ;;  %vm1806_vm2 = vmor %vm1804_vm1, %vm1805_vm12  ;;  %v1710_v51 = vmul.f32 %v1709_v34, %v5197_v43  ;;  %v1853_v37 = vand.u32 2147483647, %v5365_v9 }
 0x920   : > { %v1801_v5 = vsub.f32 1.0, %v1800_v49  ;;  %4443 = vrcp.f32 %v5367_v24  ;;  %v1840_v35 = vand.u32 2147483648, %v5367_v24  ;;  %vm1849_vm6 = vweird.f32 %v5365_v9 }
 0x921   : > { %v1817_v31 = vmul.f32 %v4438_v45, %v1816_v38  ;;  %v1855_v38 = vand.u32 2147483648, %v5365_v9  ;;  %v1731_v40 = vmul.f32 %v5191_v0, %v1710_v51  ;;  %vm1834_vm8 = vweird.f32 %v5367_v24 }
 0x922   : > { %v1802_v11 = vmul.f32 %v4440_v55, %v1801_v5  ;;  %vm1854_vm9 = vcmp.eq.f32.partialorder %v1853_v37, 8.507059e+37  ;;  %v1841_v50 = vor.u32 1.1754944e-38, %v1840_v35  ;;  %v1732_v34 = vmul.f32 %v5191_v0, %v1725_v27 }
 0x923   : > { %v1818_v19 = vadd.f32 %v4438_v45, %v1817_v31  ;;  %v1856_v7 = vor.u32 1.1754944e-38, %v1855_v38  ;;  %v1735_v0 = vadd.f32 %v1731_v40, %v5154_v47 }
 0x924   : > { %v1803_v62 = vadd.f32 %v4440_v55, %v1802_v11 }
 0x925   : > { %v1822_v59 = vsel %vm1821_vm15, %v4438_v45, %v1818_v19  ;;  %v5387_v10 = vpop.xlane.xlu0 %1918  ;;  %v4442_v60 = vpop.eup %4441 }
 0x926   : > { %v1827_v39 = vsel %vm1824_vm0, %v1826_v61, %v1822_v59  ;;  %v4444_v52 = vpop.eup %4443  ;;  %v1807_v21 = vsel %vm1806_vm2, %v4440_v55, %v1803_v62  ;;  %v1845_v45 = vmul.f32 %v4442_v60, %v5365_v9  ;;  %v5395_v28 = vpop.xlane.xlu2 %1916  ;;  %vm1850_vm4 = vweird.f32 %v4442_v60 }
 0x927   : > { %v1828_v25 = vmul.f32 %v1827_v39, %v5317_v57  ;;  %v5397_v23 = vpop.xlane.xlu1 %1914  ;;  %v1812_v58 = vsel %vm1809_vm3, %v1811_v44, %v1807_v21  ;;  %v1830_v46 = vmul.f32 %v4444_v52, %v5367_v24  ;;  %vm1835_vm5 = vweird.f32 %v4444_v52  ;;  %vm1851_vm7 = vmor %vm1849_vm6, %vm1850_vm4 }
 0x928   : > { %v1813_v57 = vmul.f32 %v1812_v58, %v5319_v20  ;;  %v1846_v55 = vsub.f32 1.0, %v1845_v45  ;;  %v1838_v20 = vand.u32 2147483647, %v5367_v24  ;;  %vm1836_vm10 = vmor %vm1834_vm8, %vm1835_vm5  ;;  %v5426_v24 = vmul.f32 %v5341_v8, %v2699_v29 }
 0x929   : > { %v1863_v15 = vmul.f32 %v4088_v3, %v1828_v25  ;;  %v1831_v49 = vsub.f32 1.0, %v1830_v46  ;;  %vm1992_vm3 = vcmp.eq.s32.totalorder %v4675_v36, 11 }
 0x92a   : > { %v1847_v42 = vmul.f32 %v4442_v60, %v1846_v55  ;;  %v1862_v43 = vmul.f32 %v4088_v3, %v1813_v57  ;;  %vm1839_vm11 = vcmp.eq.f32.partialorder %v1838_v20, 8.507059e+37  ;;  %6880 = vst [vmem:[#allocation7_spill] sm:$0xff] %v5426_v24  ;;  %v2711_v47 = vand.u32 2139095040, %v5426_v24 }
 0x92b   : > { %v5409_v12 = vadd.f32 %v1863_v15, %v5201_v32  ;;  %v1832_v2 = vmul.f32 %v4444_v52, %v1831_v49 }
 0x92c   : > { %v1848_v31 = vadd.f32 %v4442_v60, %v1847_v42  ;;  %v5416_v4 = vadd.f32 %v1862_v43, %v5195_v33 }
 0x92d   : > { %v1929_v5 = vpop.xlane.xlu0 %1928  ;;  %v1833_v32 = vadd.f32 %v4444_v52, %v1832_v2 }
 0x92e   : > { %4445 = vrcp.f32 %v1929_v5  ;;  %v1852_v26 = vsel %vm1851_vm7, %v4442_v60, %v1848_v31  ;;  %v1927_v19 = vpop.xlane.xlu2 %1926  ;;  %v1736_v60 = vadd.f32 %v1732_v34, %v5157_v54  ;;  %v1973_v21 = vand.u32 2147483648, %v1929_v5 }
 0x92f   : > { %v5419_v11 = vpop.xlane.xlu1 %1924  ;;  %v1857_v9 = vsel %vm1854_vm9, %v1856_v7, %v1852_v26  ;;  %v1837_v6 = vsel %vm1836_vm10, %v4444_v52, %v1833_v32  ;;  %4447 = vrcp.f32 %v1927_v19  ;;  %vm1967_vm12 = vweird.f32 %v1929_v5 }
 0x930   : > { %v1858_v33 = vmul.f32 %v1857_v9, %v5332_v1  ;;  %v1842_v61 = vsel %vm1839_vm11, %v1841_v50, %v1837_v6  ;;  %4449 = vrcp.f32 %v5419_v11  ;;  %v1971_v1 = vand.u32 2147483647, %v1929_v5 }
 0x931   : > { %v1843_v59 = vmul.f32 %v1842_v61, %v5313_v63  ;;  %vm1952_vm14 = vweird.f32 %v1927_v19  ;;  %v1958_v15 = vand.u32 2147483648, %v1927_v19  ;;  %v1974_v38 = vor.u32 1.1754944e-38, %v1973_v21 }
 0x932   : > { %v1865_v30 = vmul.f32 %v4088_v3, %v1858_v33  ;;  %vm5443_vm15 = vcmp.eq.f32.partialorder %v1971_v1, 8.507059e+37  ;;  %v1941_v29 = vand.u32 2147483647, %v5419_v11  ;;  %v1943_v2 = vand.u32 2147483648, %v5419_v11 }
 0x933   : > { %v1864_v39 = vmul.f32 %v4088_v3, %v1843_v59  ;;  %v1956_v3 = vand.u32 2147483647, %v1927_v19  ;;  %v1959_v26 = vor.u32 1.1754944e-38, %v1958_v15  ;;  %vm1937_vm6 = vweird.f32 %v5419_v11 }
 0x934   : > { %v4446_v62 = vpop.eup %4445  ;;  %v5432_v45 = vadd.f32 %v1865_v30, %v1736_v60  ;;  %vm1942_vm8 = vcmp.eq.f32.partialorder %v1941_v29, 8.507059e+37  ;;  %v1944_v59 = vor.u32 1.1754944e-38, %v1943_v2 }
 0x935   : > { %v1963_v44 = vmul.f32 %v4446_v62, %v1929_v5  ;;  %v5430_v52 = vpop.xlane.xlu0 %2047  ;;  %v4448_v25 = vpop.eup %4447  ;;  %v5434_v63 = vadd.f32 %v1864_v39, %v1735_v0  ;;  %vm1968_vm13 = vweird.f32 %v4446_v62  ;;  %vm5447_vm1 = vcmp.eq.f32.partialorder %v1956_v3, 8.507059e+37 }
 0x936   : > { %v1948_v22 = vmul.f32 %v4448_v25, %v1927_v19  ;;  %v5436_v58 = vpop.xlane.xlu2 %2045  ;;  %v4450_v54 = vpop.eup %4449  ;;  %vm1953_vm0 = vweird.f32 %v4448_v25  ;;  %vm1969_vm2 = vmor %vm1967_vm12, %vm1968_vm13 }
 0x937   : > { %v1964_v51 = vsub.f32 1.0, %v1963_v44  ;;  %v5438_v46 = vpop.xlane.xlu1 %1930  ;;  %v1933_v55 = vmul.f32 %v4450_v54, %v5419_v11  ;;  %vm1938_vm4 = vweird.f32 %v4450_v54  ;;  %vm1954_vm5 = vmor %vm1952_vm14, %vm1953_vm0  ;;  %v4089_v11 = vsel %vm1992_vm3, 1.0, %v6865_v56 }
 0x938   : > { %4451 = vrcp.f32 %v5438_v46  ;;  %v1949_v27 = vsub.f32 1.0, %v1948_v22  ;;  %vm1939_vm7 = vmor %vm1937_vm6, %vm1938_vm4  ;;  %v1988_v0 = vand.u32 2147483648, %v5438_v46  ;;  %vm1982_vm10 = vweird.f32 %v5438_v46 }
 0x939   : > { %v1965_v57 = vmul.f32 %v4446_v62, %v1964_v51  ;;  %v1934_v42 = vsub.f32 1.0, %v1933_v55  ;;  %v2712_v51 = vshrl.u32 %v2711_v47, 23  ;;  %vm2125_vm0 = vcmp.eq.s32.totalorder %v4675_v36, 12 }
 0x93a   : > { %v1950_v49 = vmul.f32 %v4448_v25, %v1949_v27  ;;  %v1989_v27 = vor.u32 1.1754944e-38, %v1988_v0 }
 0x93b   : > { %v1966_v35 = vadd.f32 %v4446_v62, %v1965_v57  ;;  %v1935_v31 = vmul.f32 %v4450_v54, %v1934_v42 }
 0x93c   : > { %v1951_v20 = vadd.f32 %v4448_v25, %v1950_v49 }
 0x93d   : > { %v1970_v40 = vsel %vm1969_vm2, %v4446_v62, %v1966_v35  ;;  %v5455_v7 = vpop.xlane.xlu0 %2059  ;;  %v1936_v9 = vadd.f32 %v4450_v54, %v1935_v31 }
 0x93e   : > { %v4452_v32 = vpop.eup %4451  ;;  %v1975_v5 = vsel %vm5443_vm15, %v1974_v38, %v1970_v40  ;;  %4453 = vrcp.f32 %v5455_v7  ;;  %v1955_v50 = vsel %vm1954_vm5, %v4448_v25, %v1951_v20  ;;  %v5464_v33 = vpop.xlane.xlu2 %2057  ;;  %v1986_v25 = vand.u32 2147483647, %v5438_v46 }
 0x93f   : > { %v1976_v34 = vmul.f32 %v1975_v5, %v5395_v28  ;;  %v1978_v6 = vmul.f32 %v4452_v32, %v5438_v46  ;;  %v5466_v61 = vpop.xlane.xlu1 %2049  ;;  %v1960_v19 = vsel %vm5447_vm1, %v1959_v26, %v1955_v50  ;;  %v1940_v62 = vsel %vm1939_vm7, %v4450_v54, %v1936_v9 }
 0x940   : > { %v1961_v28 = vmul.f32 %v1960_v19, %v5397_v23  ;;  %4455 = vrcp.f32 %v5464_v33  ;;  %v1945_v30 = vsel %vm1942_vm8, %v1944_v59, %v1940_v62  ;;  %vm1983_vm9 = vweird.f32 %v4452_v32 }
 0x941   : > { %v1979_v60 = vsub.f32 1.0, %v1978_v6  ;;  %v1946_v39 = vmul.f32 %v1945_v30, %v5353_v41  ;;  %v1997_v21 = vmul.f32 %v4089_v11, %v1976_v34  ;;  %vm1984_vm11 = vmor %vm1982_vm10, %vm1983_vm9  ;;  %vm1987_vm12 = vcmp.eq.f32.partialorder %v1986_v25, 8.507059e+37 }
 0x942   : > { %v1996_v22 = vmul.f32 %v4089_v11, %v1961_v28  ;;  %v2089_v42 = vand.u32 2147483647, %v5455_v7  ;;  %v2091_v43 = vand.u32 2147483648, %v5455_v7  ;;  %vm2085_vm14 = vweird.f32 %v5455_v7 }
 0x943   : > { %v1980_v44 = vmul.f32 %v4452_v32, %v1979_v60  ;;  %v5484_v57 = vadd.f32 %v1997_v21, %v5434_v63  ;;  %v1995_v63 = vmul.f32 %v4089_v11, %v1946_v39  ;;  %v2074_v20 = vand.u32 2147483647, %v5464_v33 }
 0x944   : > { %v4454_v1 = vpop.eup %4453  ;;  %v5487_v41 = vadd.f32 %v1996_v22, %v5409_v12  ;;  %v4098_v12 = vadd.s32 4294967169, %v2712_v51  ;;  %vm2090_vm2 = vcmp.eq.f32.partialorder %v2089_v42, 8.507059e+37  ;;  %v2092_v6 = vor.u32 1.1754944e-38, %v2091_v43 }
 0x945   : > { %v1981_v3 = vadd.f32 %v4452_v32, %v1980_v44  ;;  %v2081_v23 = vmul.f32 %v4454_v1, %v5455_v7  ;;  %v5481_v54 = vpop.xlane.xlu0 %2190  ;;  %vm2086_vm13 = vweird.f32 %v4454_v1  ;;  %v5512_v26 = vadd.f32 %v1995_v63, %v5416_v4 }
 0x946   : > { %v5489_v55 = vpop.eup %4455  ;;  %v5491_v37 = vpop.xlane.xlu2 %2063  ;;  %4457 = vrcp.f32 %v5481_v54  ;;  %vm5505_vm15 = vmor %vm2085_vm14, %vm2086_vm13  ;;  %v5516_v50 = vadd.s32 1, %v4098_v12  ;;  %v2076_v4 = vand.u32 2147483648, %v5464_v33  ;;  %vm2070_vm3 = vweird.f32 %v5464_v33 }
 0x947   : > { %v1985_v15 = vsel %vm1984_vm11, %v4452_v32, %v1981_v3  ;;  %v2082_v47 = vsub.f32 1.0, %v2081_v23  ;;  %v5494_v46 = vpop.xlane.xlu1 %2061  ;;  %v2066_v49 = vmul.f32 %v5489_v55, %v5464_v33  ;;  %4459 = vrcp.f32 %v5491_v37 }
 0x948   : > { %v1990_v38 = vsel %vm1987_vm12, %v1989_v27, %v1985_v15  ;;  %4461 = vrcp.f32 %v5494_v46  ;;  %vm2071_vm1 = vweird.f32 %v5489_v55  ;;  %vm5528_vm4 = vcmp.eq.f32.partialorder %v2074_v20, 8.507059e+37 }
 0x949   : > { %v2083_v35 = vmul.f32 %v4454_v1, %v2082_v47  ;;  %v2067_v29 = vsub.f32 1.0, %v2066_v49  ;;  %v1991_v40 = vmul.f32 %v1990_v38, %v5387_v10  ;;  %vm5546_vm5 = vmor %vm2070_vm3, %vm2071_vm1  ;;  %v2077_v21 = vor.u32 1.1754944e-38, %v2076_v4 }
 0x94a   : > { %v2121_v3 = vand.u32 2147483648, %v5491_v37  ;;  %vm2100_vm6 = vweird.f32 %v5494_v46  ;;  %v2207_v27 = vand.u32 2147483647, %v5481_v54  ;;  %v2119_v12 = vand.u32 2147483647, %v5491_v37 }
 0x94b   : > { %v2084_v2 = vadd.f32 %v4454_v1, %v2083_v35  ;;  %v2068_v32 = vmul.f32 %v5489_v55, %v2067_v29  ;;  %v1998_v34 = vmul.f32 %v4089_v11, %v1991_v40  ;;  %v5539_v11 = vsel %vm2125_vm0, 1.0, %v6865_v56 }
 0x94c   : > { %v5514_v5 = vpop.eup %4457  ;;  %vm2115_vm9 = vweird.f32 %v5491_v37  ;;  %v5581_v29 = vor.u32 1.1754944e-38, %v2121_v3  ;;  %vm2258_vm12 = vcmp.eq.s32.totalorder %v4675_v36, 13  ;;  %vm5613_vm0 = vcmp.eq.f32.partialorder %v2119_v12, 8.507059e+37 }
 0x94d   : > { %v2088_v7 = vsel %vm5505_vm15, %v4454_v1, %v2084_v2  ;;  %v5521_v10 = vpop.xlane.xlu0 %2196  ;;  %v5523_v9 = vpop.eup %4459  ;;  %v2069_v19 = vadd.f32 %v5489_v55, %v2068_v32  ;;  %v5542_v30 = vadd.f32 %v1998_v34, %v5432_v45  ;;  %v2104_v45 = vand.u32 2147483647, %v5494_v46 }
 0x94e   : > { %v4462_v59 = vpop.eup %4461  ;;  %v5532_v62 = vpop.xlane.xlu2 %2194  ;;  %v2093_v0 = vsel %vm2090_vm2, %v2092_v6, %v2088_v7  ;;  %v2111_v39 = vmul.f32 %v5523_v9, %v5491_v37  ;;  %v2106_v1 = vand.u32 2147483648, %v5494_v46  ;;  %v2199_v22 = vmul.f32 %v5514_v5, %v5481_v54 }
 0x94f   : > { %v5534_v60 = vpop.xlane.xlu1 %2192  ;;  %v2096_v44 = vmul.f32 %v4462_v59, %v5494_v46  ;;  %4463 = vrcp.f32 %v5532_v62  ;;  %v2073_v25 = vsel %vm5546_vm5, %v5489_v55, %v2069_v19  ;;  %v2094_v23 = vmul.f32 %v2093_v0, %v5430_v52 }
 0x950   : > { %4465 = vrcp.f32 %v5534_v60  ;;  %v2078_v55 = vsel %vm5528_vm4, %v2077_v21, %v2073_v25  ;;  %v2112_v15 = vsub.f32 1.0, %v2111_v39  ;;  %vm2101_vm7 = vweird.f32 %v4462_v59 }
 0x951   : > { %v2097_v51 = vsub.f32 1.0, %v2096_v44  ;;  %4467 = vrcp.f32 %v5521_v10  ;;  %vm5569_vm8 = vcmp.eq.f32.partialorder %v2104_v45, 8.507059e+37  ;;  %v2107_v49 = vor.u32 1.1754944e-38, %v2106_v1  ;;  %vm2102_vm11 = vmor %vm2100_vm6, %vm2101_vm7 }
 0x952   : > { %v2129_v35 = vmul.f32 %v5539_v11, %v2094_v23  ;;  %v2200_v42 = vsub.f32 1.0, %v2199_v22  ;;  %vm2116_vm10 = vweird.f32 %v5523_v9  ;;  %v2079_v32 = vmul.f32 %v2078_v55, %v5436_v58 }
 0x953   : > { %v2098_v47 = vmul.f32 %v4462_v59, %v2097_v51  ;;  %v2113_v46 = vmul.f32 %v5523_v9, %v2112_v15  ;;  %vm2204_vm13 = vweird.f32 %v5514_v5  ;;  %vm2233_vm14 = vweird.f32 %v5532_v62  ;;  %vm5663_vm3 = vmor %vm2115_vm9, %vm2116_vm10 }
 0x954   : > { %v5607_v58 = vadd.f32 %v2129_v35, %v5487_v41  ;;  %v2237_v28 = vand.u32 2147483647, %v5532_v62  ;;  %vm2203_vm15 = vweird.f32 %v5481_v54  ;;  %v2239_v44 = vand.u32 2147483648, %v5532_v62 }
 0x955   : > { %v5573_v63 = vpop.xlane.xlu0 %2327  ;;  %v5577_v52 = vpop.eup %4463  ;;  %v2099_v43 = vadd.f32 %v4462_v59, %v2098_v47  ;;  %v5622_v41 = vsel %vm2258_vm12, 1.0, %v6865_v56  ;;  %v2128_v25 = vmul.f32 %v5539_v11, %v2079_v32  ;;  %v2114_v45 = vadd.f32 %v5523_v9, %v2113_v46  ;;  %vm5707_vm9 = vmor %vm2203_vm15, %vm2204_vm13 }
 0x956   : > { %v5583_v2 = vpop.eup %4465  ;;  %v2229_v20 = vmul.f32 %v5577_v52, %v5532_v62  ;;  %4469 = vrcp.f32 %v5573_v63  ;;  %v5590_v40 = vpop.xlane.xlu2 %2325  ;;  %v2201_v21 = vmul.f32 %v5514_v5, %v2200_v42  ;;  %vm2218_vm1 = vweird.f32 %v5534_v60 }
 0x957   : > { %v5592_v31 = vpop.xlane.xlu1 %2323  ;;  %v2103_v7 = vsel %vm2102_vm11, %v4462_v59, %v2099_v43  ;;  %v2214_v34 = vmul.f32 %v5583_v2, %v5534_v60  ;;  %4471 = vrcp.f32 %v5590_v40  ;;  %v5601_v6 = vpop.eup %4467  ;;  %v2222_v23 = vand.u32 2147483647, %v5534_v60 }
 0x958   : > { %v2108_v19 = vsel %vm5569_vm8, %v2107_v49, %v2103_v7  ;;  %v2230_v4 = vsub.f32 1.0, %v2229_v20  ;;  %4473 = vrcp.f32 %v5592_v31  ;;  %v5633_v51 = vmul.f32 %v5601_v6, %v5521_v10 }
 0x959   : > { %v2215_v59 = vsub.f32 1.0, %v2214_v34  ;;  %v2109_v0 = vmul.f32 %v2108_v19, %v5466_v61  ;;  %v5640_v55 = vadd.f32 %v2128_v25, %v5512_v26  ;;  %vm2234_vm2 = vweird.f32 %v5577_v52 }
 0x95a   : > { %v2231_v39 = vmul.f32 %v5577_v52, %v2230_v4  ;;  %v2224_v49 = vand.u32 2147483648, %v5534_v60  ;;  %vm2219_vm4 = vweird.f32 %v5583_v2  ;;  %v2118_v32 = vsel %vm5663_vm3, %v5523_v9, %v2114_v45  ;;  %vm5685_vm5 = vmor %vm2233_vm14, %vm2234_vm2 }
 0x95b   : > { %v2130_v61 = vmul.f32 %v5539_v11, %v2109_v0  ;;  %v2216_v1 = vmul.f32 %v5583_v2, %v2215_v59  ;;  %v2202_v7 = vadd.f32 %v5514_v5, %v2201_v21  ;;  %v2209_v19 = vand.u32 2147483648, %v5481_v54  ;;  %vm5695_vm7 = vmor %vm2218_vm1, %vm2219_vm4 }
 0x95c   : > { %v5629_v22 = vpop.eup %4469  ;;  %v2232_v47 = vadd.f32 %v5577_v52, %v2231_v39  ;;  %vm2238_vm6 = vcmp.eq.f32.partialorder %v2237_v28, 8.507059e+37  ;;  %v2240_v59 = vor.u32 1.1754944e-38, %v2239_v44  ;;  %v2245_v62 = vsub.f32 1.0, %v5633_v51 }
 0x95d   : > { %v5635_v3 = vpop.xlane.xlu0 %2458  ;;  %v5642_v15 = vpop.eup %4471  ;;  %v5647_v38 = vadd.f32 %v2130_v61, %v5484_v57  ;;  %v2217_v43 = vadd.f32 %v5583_v2, %v2216_v1  ;;  %v5678_v37 = vmul.f32 %v5629_v22, %v5573_v63  ;;  %vm2223_vm8 = vcmp.eq.f32.partialorder %v2222_v23, 8.507059e+37 }
 0x95e   : > { %v5650_v12 = vpop.eup %4473  ;;  %v2347_v35 = vmul.f32 %v5642_v15, %v5590_v40  ;;  %4475 = vrcp.f32 %v5635_v3  ;;  %v5655_v26 = vpop.xlane.xlu2 %2456  ;;  %v2236_v4 = vsel %vm5685_vm5, %v5577_v52, %v2232_v47  ;;  %v2123_v28 = vsel %vm5613_vm0, %v5581_v29, %v2118_v32 }
 0x95f   : > { %v5657_v42 = vpop.xlane.xlu1 %2329  ;;  %v2332_v20 = vmul.f32 %v5650_v12, %v5592_v31  ;;  %4477 = vrcp.f32 %v5655_v26  ;;  %v2221_v39 = vsel %vm5695_vm7, %v5583_v2, %v2217_v43  ;;  %v2225_v44 = vor.u32 1.1754944e-38, %v2224_v49 }
 0x960   : > { %v2348_v34 = vsub.f32 1.0, %v2347_v35  ;;  %4479 = vrcp.f32 %v5657_v42  ;;  %v2206_v2 = vsel %vm5707_vm9, %v5514_v5, %v2202_v7  ;;  %vm5720_vm10 = vcmp.eq.f32.partialorder %v2207_v27, 8.507059e+37 }
 0x961   : > { %v2333_v9 = vsub.f32 1.0, %v2332_v20  ;;  %v2363_v61 = vsub.f32 1.0, %v5678_v37  ;;  %v5727_v21 = vsel %vm2238_vm6, %v2240_v59, %v2236_v4  ;;  %v2210_v33 = vor.u32 1.1754944e-38, %v2209_v19 }
 0x962   : > { %v2349_v60 = vmul.f32 %v5642_v15, %v2348_v34  ;;  %vm2351_vm11 = vweird.f32 %v5590_v40  ;;  %v5732_v51 = vsel %vm2223_vm8, %v2225_v44, %v2221_v39  ;;  %vm2352_vm12 = vweird.f32 %v5642_v15 }
 0x963   : > { %v2334_v5 = vmul.f32 %v5650_v12, %v2333_v9  ;;  %v2211_v35 = vsel %vm5720_vm10, %v2210_v33, %v2206_v2  ;;  %v2355_v57 = vand.u32 2147483647, %v5590_v40  ;;  %v2357_v43 = vand.u32 2147483648, %v5590_v40  ;;  %vm5762_vm14 = vmor %vm2351_vm11, %vm2352_vm12 }
 0x964   : > { %v5724_v45 = vpop.eup %4475  ;;  %v2350_v54 = vadd.f32 %v5642_v15, %v2349_v60  ;;  %vm2391_vm13 = vcmp.eq.s32.totalorder %v4675_v36, 14  ;;  %vm2337_vm15 = vweird.f32 %v5650_v12  ;;  %v2340_v46 = vand.u32 2147483647, %v5592_v31 }
 0x965   : > { %v2052_v1 = vpop.xlane.xlu0 %2051  ;;  %v5730_v29 = vpop.eup %4477  ;;  %v5755_v7 = vmul.f32 %v5724_v45, %v5635_v3  ;;  %v2335_v4 = vadd.f32 %v5650_v12, %v2334_v5  ;;  %v2246_v59 = vmul.f32 %v5601_v6, %v2245_v62  ;;  %v2358_v39 = vor.u32 1.1754944e-38, %v2357_v43 }
 0x966   : > { %v5737_v27 = vpop.eup %4479  ;;  %v2465_v23 = vmul.f32 %v5730_v29, %v5655_v26  ;;  %v5741_v47 = vpop.xlane.xlu2 %2462  ;;  %v2124_v32 = vmul.f32 %v2123_v28, %v2052_v1  ;;  %v2354_v9 = vsel %vm5762_vm14, %v5642_v15, %v2350_v54  ;;  %vm2336_vm0 = vweird.f32 %v5592_v31 }
 0x967   : > { %v5743_v49 = vpop.xlane.xlu1 %2460  ;;  %v2377_v20 = vmul.f32 %v5737_v27, %v5657_v42  ;;  %4481 = vrcp.f32 %v5741_v47  ;;  %v2342_v40 = vand.u32 2147483648, %v5592_v31  ;;  %vm2356_vm1 = vcmp.eq.f32.partialorder %v2355_v57, 8.507059e+37  ;;  %vm5785_vm2 = vmor %vm2336_vm0, %vm2337_vm15 }
 0x968   : > { %4483 = vrcp.f32 %v5743_v49  ;;  %v2466_v0 = vsub.f32 1.0, %v2465_v23  ;;  %v2131_v52 = vmul.f32 %v5539_v11, %v2124_v32  ;;  %v5779_v60 = vsel %vm2391_vm13, 1.0, %v6865_v56 }
 0x969   : > { %v2378_v19 = vsub.f32 1.0, %v2377_v20  ;;  %v2481_v28 = vsub.f32 1.0, %v5755_v7  ;;  %v2359_v62 = vsel %vm2356_vm1, %v2358_v39, %v2354_v9  ;;  %vm5789_vm3 = vcmp.eq.f32.partialorder %v2340_v46, 8.507059e+37 }
 0x96a   : > { %vm2248_vm4 = vweird.f32 %v5521_v10  ;;  %v2339_v25 = vsel %vm5785_vm2, %v5650_v12, %v2335_v4  ;;  %v2247_v1 = vadd.f32 %v5601_v6, %v2246_v59  ;;  %vm2249_vm5 = vweird.f32 %v5601_v6 }
 0x96b   : > { %v2379_v15 = vmul.f32 %v5737_v27, %v2378_v19  ;;  %v2252_v33 = vand.u32 2147483647, %v5521_v10  ;;  %v2343_v57 = vor.u32 1.1754944e-38, %v2342_v40  ;;  %v2254_v43 = vand.u32 2147483648, %v5521_v10  ;;  %vm5821_vm7 = vmor %vm2248_vm4, %vm2249_vm5 }
 0x96c   : > { %v2385_v20 = vand.u32 2147483647, %v5657_v42  ;;  %v2467_v32 = vmul.f32 %v5730_v29, %v2466_v0  ;;  %v5808_v34 = vadd.f32 %v2131_v52, %v5542_v30  ;;  %vm2382_vm6 = vweird.f32 %v5737_v27 }
 0x96d   : > { %v2183_v44 = vpop.xlane.xlu0 %2182  ;;  %v5794_v31 = vpop.eup %4481  ;;  %v2380_v12 = vadd.f32 %v5737_v27, %v2379_v15  ;;  %v2387_v46 = vand.u32 2147483648, %v5657_v42  ;;  %v2344_v4 = vsel %vm5789_vm3, %v2343_v57, %v2339_v25  ;;  %vm2381_vm8 = vweird.f32 %v5657_v42 }
 0x96e   : > { %v5802_v54 = vpop.eup %4483  ;;  %v2181_v5 = vpop.xlane.xlu2 %2180  ;;  %v2510_v59 = vmul.f32 %v5794_v31, %v5741_v47  ;;  %v2242_v0 = vmul.f32 %v5727_v21, %v2183_v44  ;;  %vm5832_vm9 = vcmp.eq.f32.partialorder %v2252_v33, 8.507059e+37  ;;  %v2255_v10 = vor.u32 1.1754944e-38, %v2254_v43  ;;  %vm5836_vm10 = vmor %vm2381_vm8, %vm2382_vm6 }
 0x96f   : > { %v2179_v23 = vpop.xlane.xlu1 %2178  ;;  %v2495_v19 = vmul.f32 %v5802_v54, %v5743_v49  ;;  %vm5840_vm11 = vcmp.eq.f32.partialorder %v2385_v20, 8.507059e+37  ;;  %v2468_v52 = vadd.f32 %v5730_v29, %v2467_v32  ;;  %vm2470_vm12 = vweird.f32 %v5730_v29 }
 0x970   : > { %v2212_v9 = vmul.f32 %v2211_v35, %v2179_v23  ;;  %v2251_v35 = vsel %vm5821_vm7, %v5601_v6, %v2247_v1  ;;  %v2384_v6 = vsel %vm5836_vm10, %v5737_v27, %v2380_v12  ;;  %v2388_v21 = vor.u32 1.1754944e-38, %v2387_v46 }
 0x971   : > { %vm2469_vm13 = vweird.f32 %v5655_v26  ;;  %v2364_v15 = vmul.f32 %v5629_v22, %v2363_v61  ;;  %v2496_v44 = vsub.f32 1.0, %v2495_v19  ;;  %v2473_v25 = vand.u32 2147483647, %v5655_v26 }
 0x972   : > { %v2261_v2 = vmul.f32 %v5622_v41, %v2212_v9  ;;  %v2475_v1 = vand.u32 2147483648, %v5655_v26  ;;  %v2511_v33 = vsub.f32 1.0, %v2510_v59  ;;  %v5857_v23 = vmul.f32 %v5622_v41, %v2242_v0  ;;  %vm5862_vm14 = vmor %vm2469_vm13, %vm2470_vm12 }
 0x973   : > { %v2227_v27 = vmul.f32 %v5732_v51, %v2181_v5  ;;  %v2256_v57 = vsel %vm5832_vm9, %v2255_v10, %v2251_v35  ;;  %v2389_v20 = vsel %vm5840_vm11, %v2388_v21, %v2384_v6  ;;  %v2472_v26 = vsel %vm5862_vm14, %v5730_v29, %v2468_v52 }
 0x974   : > { %vm2524_vm15 = vcmp.eq.s32.totalorder %v4675_v36, 15  ;;  %vm2367_vm0 = vweird.f32 %v5629_v22  ;;  %v2365_v5 = vadd.f32 %v5629_v22, %v2364_v15  ;;  %v2370_v32 = vand.u32 2147483647, %v5573_v63 }
 0x975   : > { %v2314_v11 = vpop.xlane.xlu0 %2313  ;;  %v2372_v12 = vand.u32 2147483648, %v5573_v63  ;;  %v2265_v46 = vadd.f32 %v2261_v2, %v5640_v55  ;;  %vm2474_vm1 = vcmp.eq.f32.partialorder %v2473_v25, 8.507059e+37  ;;  %v2476_v19 = vor.u32 1.1754944e-38, %v2475_v1 }
 0x976   : > { %v2312_v61 = vpop.xlane.xlu2 %2311  ;;  %v2497_v9 = vmul.f32 %v5802_v54, %v2496_v44  ;;  %v2360_v30 = vmul.f32 %v2359_v62, %v2314_v11  ;;  %v5879_v29 = vsel %vm2524_vm15, 1.0, %v6865_v56  ;;  %vm2366_vm2 = vweird.f32 %v5573_v63 }
 0x977   : > { %v2185_v43 = vpop.xlane.xlu1 %2184  ;;  %v2345_v51 = vmul.f32 %v2344_v4, %v2312_v61  ;;  %v2477_v4 = vsel %vm2474_vm1, %v2476_v19, %v2472_v26  ;;  %vm5885_vm3 = vmor %vm2366_vm2, %vm2367_vm0  ;;  %vm2499_vm4 = vweird.f32 %v5743_v49  ;;  %v2512_v55 = vmul.f32 %v5794_v31, %v2511_v33 }
 0x978   : > { %v2257_v59 = vmul.f32 %v2256_v57, %v2185_v43  ;;  %v2369_v62 = vsel %vm5885_vm3, %v5629_v22, %v2365_v5  ;;  %vm2371_vm5 = vcmp.eq.f32.partialorder %v2370_v32, 8.507059e+37  ;;  %v2373_v35 = vor.u32 1.1754944e-38, %v2372_v12 }
 0x979   : > { %v2394_v36 = vmul.f32 %v5779_v60, %v2345_v51  ;;  %vm2500_vm6 = vweird.f32 %v5802_v54  ;;  %v2498_v39 = vadd.f32 %v5802_v54, %v2497_v9  ;;  %v2503_v10 = vand.u32 2147483647, %v5743_v49 }
 0x97a   : > { %v2513_v40 = vadd.f32 %v5794_v31, %v2512_v55  ;;  %vm2515_vm7 = vweird.f32 %v5794_v31  ;;  %vm2719_vm8 = vcmp.gt.s32.totalorder %v5516_v50, 0  ;;  %v2264_v42 = vmul.f32 %v5622_v41, %v2257_v59  ;;  %vm5923_vm13 = vmor %vm2499_vm4, %vm2500_vm6 }
 0x97b   : > { %v2505_v22 = vand.u32 2147483648, %v5743_v49  ;;  %v2482_v6 = vmul.f32 %v5724_v45, %v2481_v28  ;;  %v2398_v21 = vadd.f32 %v2394_v36, %v2265_v46  ;;  %v2374_v44 = vsel %vm2371_vm5, %v2373_v35, %v2369_v62 }
 0x97c   : > { %vm2514_vm9 = vweird.f32 %v5741_v47  ;;  %v2520_v11 = vand.u32 2147483648, %v5741_v47  ;;  %v2518_v57 = vand.u32 2147483647, %v5741_v47  ;;  %vm6847_vm11 = vcmask 130048  }
 0x97d   : > { %v2445_v63 = vpop.xlane.xlu0 %2444  ;;  %vm5908_vm10 = vmor %vm2514_vm9, %vm2515_vm7  ;;  %v2483_v7 = vadd.f32 %v5724_v45, %v2482_v6  ;;  %vm2485_vm12 = vweird.f32 %v5724_v45  ;;  %v2490_v37 = vand.u32 2147483648, %v5635_v3  ;;  %vm2484_vm14 = vweird.f32 %v5635_v3 }
 0x97e   : > { %v2478_v52 = vmul.f32 %v2477_v4, %v2445_v63  ;;  %v2318_v15 = vpop.xlane.xlu2 %2317  ;;  %v2517_v28 = vsel %vm5908_vm10, %v5794_v31, %v2513_v40  ;;  %v2488_v31 = vand.u32 2147483647, %v5635_v3  ;;  %v2395_v26 = vmul.f32 %v5779_v60, %v2360_v30  ;;  %vm5936_vm15 = vmor %vm2484_vm14, %vm2485_vm12 }
 0x97f   : > { %v2316_v2 = vpop.xlane.xlu1 %2315  ;;  %v2390_v25 = vmul.f32 %v2389_v20, %v2318_v15  ;;  %v2262_v20 = vmul.f32 %v5622_v41, %v2227_v27  ;;  %v2502_v51 = vsel %vm5923_vm13, %v5802_v54, %v2498_v39  ;;  %v2521_v5 = vor.u32 1.1754944e-38, %v2520_v11 }
 0x980   : > { %v2527_v1 = vmul.f32 %v5879_v29, %v2478_v52  ;;  %v2375_v61 = vmul.f32 %v2374_v44, %v2316_v2  ;;  %vm2519_vm0 = vcmp.eq.f32.partialorder %v2518_v57, 8.507059e+37  ;;  %v2487_v41 = vsel %vm5936_vm15, %v5724_v45, %v2483_v7 }
 0x981   : > { %v2397_v32 = vmul.f32 %v5779_v60, %v2390_v25  ;;  %vm2504_vm1 = vcmp.eq.f32.partialorder %v2503_v10, 8.507059e+37  ;;  %v2506_v3 = vor.u32 1.1754944e-38, %v2505_v22  ;;  %v2522_v27 = vsel %vm2519_vm0, %v2521_v5, %v2517_v28 }
 0x982   : > { %v5927_v47 = vadd.f32 %v2527_v1, %v2398_v21  ;;  %v2491_v54 = vor.u32 1.1754944e-38, %v2490_v37  ;;  %v2268_v19 = vadd.f32 %v2264_v42, %v5808_v34  ;;  %v2396_v9 = vmul.f32 %v5779_v60, %v2375_v61 }
 0x983   : > { %vm2489_vm2 = vcmp.eq.f32.partialorder %v2488_v31, 8.507059e+37  ;;  %v2267_v59 = vadd.f32 %v5857_v23, %v5647_v38  ;;  %v2266_v36 = vadd.f32 %v2262_v20, %v5607_v58  ;;  %v2507_v0 = vsel %vm2504_vm1, %v2506_v3, %v2502_v51 }
 0x984   : > { %v2536_v12 = vsel %vm6847_vm11, %v5927_v47, 0.0  ;;  %v2492_v45 = vsel %vm2489_vm2, %v2491_v54, %v2487_v41  ;;  %v2401_v62 = vadd.f32 %v2397_v32, %v2268_v19  ;;  %v2720_v60 = vsel %vm2719_vm8, %v5516_v50, 0 }
 0x985   : > { %v2451_v46 = vpop.xlane.xlu0 %2450  ;;  %2537 = vadd.xlane.f32.xlu1 %v2536_v12  ;;  %v2399_v34 = vadd.f32 %v2395_v26, %v2266_v36  ;;  %v2400_v10 = vadd.f32 %v2396_v9, %v2267_v59  ;;  %v2722_v22 = vand.u32 31, %v2720_v60  ;;  %v2696_v6 = vmul.f32 %v5336_v48, %v4653_v18 }
 0x986   : > { %v2523_v30 = vmul.f32 %v2522_v27, %v2451_v46  ;;  %v2449_v4 = vpop.xlane.xlu2 %2448  ;;  %v2690_v50 = vmul.f32 %v5339_v53, %v4645_v14  ;;  %v4539_v2 = vmov 1326507024   ;;  %v6832_v14 = vand.u32 2147483647, %v5426_v24 }
 0x987   : > { %v2447_v55 = vpop.xlane.xlu1 %2446  ;;  %v2508_v35 = vmul.f32 %v2507_v0, %v2449_v4  ;;  %v5973_v15 = vsub.s32 32, %v2722_v22  ;;  %v4540_v25 = vmov 920167782   ;;  %v5982_v33 = vshrl.u32 %v2720_v60, 5  ;;  %v6933_v60 = vld [vmem:[#allocation5_spill] sm:$0xff] }
 0x988   : > { %v2530_v63 = vmul.f32 %v5879_v29, %v2523_v30  ;;  %v2493_v39 = vmul.f32 %v2492_v45, %v2447_v55  ;;  %v2700_v44 = vadd.f32 %v2696_v6, %v2690_v50  ;;  %v2737_v1 = vshll.u32 %v4540_v25, %v2722_v22 }
 0x989   : > { %v2529_v40 = vmul.f32 %v5879_v29, %v2508_v35  ;;  %v2738_v11 = vshrl.u32 %v4539_v2, %v5973_v15  ;;  %v4541_v57 = vmov 2131351028   ;;  %v4542_v28 = vmov 2102212464  }
 0x98a   : > { %v2528_v38 = vmul.f32 %v5879_v29, %v2493_v39  ;;  %v5957_v58 = vadd.f32 %v2530_v63, %v2401_v62  ;;  %v5978_v18 = vmul.f32 %v5341_v8, %v2700_v44  ;;  %v2729_v7 = vshrl.u32 %v4541_v57, %v5973_v15 }
 0x98b   : > { %v5961_v42 = vadd.f32 %v2529_v40, %v2400_v10  ;;  %v2732_v37 = vshrl.u32 %v4542_v28, %v5973_v15  ;;  %v2735_v61 = vshrl.u32 %v4540_v25, %v5973_v15  ;;  %v2739_v43 = vor.u32 %v2738_v11, %v2737_v1 }
 0x98c   : > { %6929 = vst [vmem:[#allocation8_spill] sm:$0xff] %v5957_v58  ;;  %v2545_v23 = vsel %vm6847_vm11, %v5957_v58, 0.0  ;;  %v5963_v52 = vadd.f32 %v2528_v38, %v2399_v34  ;;  %v2866_v31 = vand.u32 2139095040, %v5978_v18  ;;  %v4543_v20 = vmov 2475754826  }
 0x98d   : > { %6930 = vst [vmem:[#allocation9_spill] sm:$0xff] %v5961_v42  ;;  %2546 = vadd.xlane.f32.xlu1 %v2545_v23  ;;  %v2542_v29 = vsel %vm6847_vm11, %v5961_v42, 0.0  ;;  %v2728_v26 = vshll.u32 %v4543_v20, %v2722_v22  ;;  %v2731_v51 = vshll.u32 %v4541_v57, %v2722_v22  ;;  %v2734_v5 = vshll.u32 %v4542_v28, %v2722_v22 }
 0x98e   : > { %6931 = vst [vmem:[#allocation10_spill] sm:$0xff] %v5963_v52  ;;  %v2539_v21 = vsel %vm6847_vm11, %v5963_v52, 0.0  ;;  %2543 = vadd.xlane.f32.xlu0 %v2542_v29  ;;  %v2715_v49 = vand.u32 8388607, %v6832_v14  ;;  %v2726_v32 = vshrl.u32 %v4543_v20, %v5973_v15  ;;  %vm2743_vm3 = vcmp.lt.s32.totalorder %v5982_v33, 4 }
 0x98f   : > { %2540 = vadd.xlane.f32.xlu2 %v2539_v21  ;;  %6932 = vst [vmem:[#allocation11_spill] sm:$0xff] %v5978_v18  ;;  %v5998_v12 = vor.u32 %v2729_v7, %v2728_v26  ;;  %v6000_v41 = vor.u32 %v2732_v37, %v2731_v51  ;;  %v2736_v3 = vor.u32 %v2735_v61, %v2734_v5  ;;  %v6833_v27 = vmov 683565275  }
 0x990   : > { %v2725_v46 = vshll.u32 %v6833_v27, %v2722_v22  ;;  %v2753_v54 = vsel %vm2743_vm3, %v2739_v43, 1326507024  ;;  %v2867_v19 = vshrl.u32 %v2866_v31, 23  ;;  %v2698_v9 = vmul.f32 %v5336_v48, %v4649_v16 }
 0x991   : > { %vm2740_vm4 = vcmp.lt.s32.totalorder %v5982_v33, 1  ;;  %vm2742_vm5 = vcmp.lt.s32.totalorder %v5982_v33, 3  ;;  %v2692_v59 = vmul.f32 %v5339_v53, %v4643_v13  ;;  %v2716_v36 = vor.u32 8388608, %v2715_v49 }
 0x992   : > { %v6008_v30 = vor.u32 %v2726_v32, %v2725_v46  ;;  %v2749_v4 = vsel %vm2743_vm3, %v2736_v3, 920167782  ;;  %v2752_v0 = vsel %vm2740_vm4, %v5998_v12, %v6000_v41  ;;  %v2754_v16 = vsel %vm2742_vm5, %v2736_v3, %v2753_v54 }
 0x993   : > { %v4101_v45 = vadd.s32 4294967169, %v2867_v19  ;;  %v2702_v55 = vadd.f32 %v2698_v9, %v2692_v59  ;;  %vm2741_vm6 = vcmp.lt.s32.totalorder %v5982_v33, 2  ;;  %v2750_v62 = vsel %vm2742_vm5, %v6000_v41, %v2749_v4 }
 0x994   : > { %v2748_v13 = vsel %vm2740_vm4, %v6008_v30, %v5998_v12  ;;  %v2755_v35 = vsel %vm2741_vm6, %v2752_v0, %v2754_v16  ;;  %v2697_v63 = vmul.f32 %v5336_v48, %v4651_v17  ;;  %v6034_v39 = vshll.u32 %v2716_v36, 8 }
 0x995   : > { %v2691_v34 = vmul.f32 %v5339_v53, %v6933_v60  ;;  %v2873_v10 = vadd.s32 1, %v4101_v45  ;;  %v6039_v40 = vmul.f32 %v5341_v8, %v2702_v55  ;;  %v2751_v38 = vsel %vm2741_vm6, %v2748_v13, %v2750_v62 }
 0x996   : > { %v2760_v23 = vshrl.u32 %v2755_v35, 16  ;;  %v2757_v6 = vand.u32 65535, %v6034_v39  ;;  %v2782_v50 = vshrl.u32 %v2751_v38, 16  ;;  %v2759_v53 = vand.u32 65535, %v2755_v35 }
 0x997   : > { %6934 = vst [vmem:[#allocation5_spill] sm:$0xff] %v6039_v40  ;;  %v2701_v22 = vadd.f32 %v2697_v63, %v2691_v34  ;;  %vm2874_vm7 = vcmp.gt.s32.totalorder %v2873_v10, 0  ;;  %v3176_v17 = vand.u32 2139095040, %v6039_v40  ;;  %v2781_v7 = vand.u32 65535, %v2751_v38 }
 0x998   : > { %v6045_v48 = vmul.u32 %v2760_v23, %v2757_v6  ;;  %v2875_v21 = vsel %vm2874_vm7, %v2873_v10, 0  ;;  %v6050_v44 = vmul.u32 %v2782_v50, %v2757_v6  ;;  %v2758_v37 = vshrl.u32 %v6034_v39, 16 }
 0x999   : > { %v6048_v29 = vmul.f32 %v5341_v8, %v2701_v22  ;;  %v3177_v11 = vshrl.u32 %v3176_v17, 23  ;;  %v2877_v61 = vand.u32 31, %v2875_v21  ;;  %v2761_v31 = vmul.u32 %v2759_v53, %v2757_v6 }
 0x99a   : > { %v2765_v1 = vshll.u32 %v6045_v48, 16  ;;  %v6831_v26 = vand.u32 2147483647, %v5978_v18  ;;  %v6056_v51 = vmul.u32 %v2759_v53, %v2758_v37  ;;  %v2787_v8 = vshll.u32 %v6050_v44, 16 }
 0x99b   : > { %6935 = vst [vmem:[#allocation12_spill] sm:$0xff] %v6048_v29  ;;  %v3021_v43 = vand.u32 2139095040, %v6048_v29  ;;  %v4107_v5 = vadd.s32 4294967169, %v3177_v11  ;;  %v6059_v49 = vmul.u32 %v2781_v7, %v2758_v37  ;;  %v2783_v3 = vmul.u32 %v2781_v7, %v2757_v6 }
 0x99c   : > { %vm2769_vm8 = vc.u32 %v2761_v31, %v2765_v1  ;;  %v2771_v32 = vadd.s32 %v2765_v1, %v2761_v31  ;;  %v6061_v46 = vsub.s32 32, %v2877_v61  ;;  %v2870_v19 = vand.u32 8388607, %v6831_v26 }
 0x99d   : > { %v3022_v54 = vshrl.u32 %v3021_v43, 23  ;;  %v2767_v9 = vshll.u32 %v6056_v51, 16  ;;  %v6936_v59 = vmov 0   ;;  %vm2791_vm9 = vc.u32 %v2783_v3, %v2787_v8 }
 0x99e   : > { %v2770_v36 = vsel %vm2769_vm8, 1, %v6936_v59  ;;  %v3183_v4 = vadd.s32 1, %v4107_v5  ;;  %v2764_v0 = vmul.u32 %v2760_v23, %v2758_v37  ;;  %v2786_v16 = vmul.u32 %v2782_v50, %v2758_v37 }
 0x99f   : > { %v2789_v45 = vshll.u32 %v6059_v49, 16  ;;  %v2793_v55 = vadd.s32 %v2787_v8, %v2783_v3  ;;  %vm2773_vm10 = vc.u32 %v2771_v32, %v2767_v9  ;;  %v2890_v13 = vshrl.u32 %v4540_v25, %v6061_v46 }
 0x9a0   : > { %v2893_v62 = vshrl.u32 %v4539_v2, %v6061_v46  ;;  %v4104_v35 = vadd.s32 4294967169, %v3022_v54  ;;  %v2772_v63 = vadd.s32 %v2770_v36, %v2764_v0  ;;  %v2792_v60 = vsel %vm2791_vm9, 1, %v6936_v59 }
 0x9a1   : > { %v6073_v34 = vshrl.u32 %v2875_v21, 5  ;;  %v2881_v10 = vshrl.u32 %v4543_v20, %v6061_v46  ;;  %v2884_v38 = vshrl.u32 %v4541_v57, %v6061_v46  ;;  %v2889_v23 = vshll.u32 %v4542_v28, %v2877_v61 }
 0x9a2   : > { %v2892_v22 = vshll.u32 %v4540_v25, %v2877_v61  ;;  %vm3184_vm12 = vcmp.gt.s32.totalorder %v3183_v4, 0  ;;  %v2774_v6 = vsel %vm2773_vm10, 1, %v6936_v59  ;;  %vm6082_vm13 = vc.u32 %v2793_v55, %v2789_v45 }
 0x9a3   : > { %v2880_v17 = vshll.u32 %v6833_v27, %v2877_v61  ;;  %v2887_v53 = vshrl.u32 %v4542_v28, %v6061_v46  ;;  %v2883_v21 = vshll.u32 %v4543_v20, %v2877_v61  ;;  %v2891_v11 = vor.u32 %v2890_v13, %v2889_v23 }
 0x9a4   : > { %v2894_v1 = vor.u32 %v2893_v62, %v2892_v22  ;;  %v3028_v7 = vadd.s32 1, %v4104_v35  ;;  %v2724_v37 = vshrl.u32 %v6833_v27, %v5973_v15  ;;  %v2871_v43 = vor.u32 8388608, %v2870_v19 }
 0x9a5   : > { %v2886_v31 = vshll.u32 %v4541_v57, %v2877_v61  ;;  %v3185_v8 = vsel %vm3184_vm12, %v3183_v4, 0  ;;  %v2745_v5 = vsel %vm2743_vm3, %v6000_v41, 2102212464  ;;  %v2794_v32 = vadd.s32 %v2792_v60, %v2786_v16 }
 0x9a6   : > { %v6096_v3 = vor.u32 %v2881_v10, %v2880_v17  ;;  %v6098_v54 = vor.u32 %v2884_v38, %v2883_v21  ;;  %v2776_v9 = vadd.s32 %v2774_v6, %v2772_v63  ;;  %v2796_v36 = vsel %vm6082_vm13, 1, %v6936_v59 }
 0x9a7   : > { %v6103_v0 = vor.u32 %v2887_v53, %v2886_v31  ;;  %vm2898_vm14 = vcmp.lt.s32.totalorder %v6073_v34, 4  ;;  %v3187_v61 = vand.u32 31, %v3185_v8  ;;  %vm3029_vm15 = vcmp.gt.s32.totalorder %v3028_v7, 0 }
 0x9a8   : > { %v2904_v15 = vsel %vm2898_vm14, %v2891_v11, 920167782  ;;  %v2908_v41 = vsel %vm2898_vm14, %v2894_v1, 1326507024  ;;  %v2744_v19 = vsel %vm2740_vm4, %v2724_v37, %v6008_v30  ;;  %v2746_v4 = vsel %vm2742_vm5, %v5998_v12, %v2745_v5 }
 0x9a9   : > { %vm2895_vm0 = vcmp.lt.s32.totalorder %v6073_v34, 1  ;;  %v6117_v16 = vshll.u32 %v2871_v43, 8  ;;  %v2766_v13 = vshrl.u32 %v6045_v48, 16  ;;  %v2798_v62 = vadd.s32 %v2796_v36, %v2794_v32 }
 0x9aa   : > { %vm2897_vm1 = vcmp.lt.s32.totalorder %v6073_v34, 3  ;;  %v2903_v35 = vsel %vm2895_vm0, %v6096_v3, %v6098_v54  ;;  %v2907_v12 = vsel %vm2895_vm0, %v6098_v54, %v6103_v0  ;;  %v3030_v63 = vsel %vm3029_vm15, %v3028_v7, 0 }
 0x9ab   : > { %v2905_v30 = vsel %vm2897_vm1, %v6103_v0, %v2904_v15  ;;  %v2909_v48 = vsel %vm2897_vm1, %v2891_v11, %v2908_v41  ;;  %v2777_v60 = vadd.s32 %v2776_v9, %v2766_v13  ;;  %v6134_v10 = vsub.s32 32, %v3187_v61 }
 0x9ac   : > { %v6138_v38 = vsel %vm2741_vm6, %v2744_v19, %v2746_v4  ;;  %v2788_v23 = vshrl.u32 %v6050_v44, 16  ;;  %vm2896_vm2 = vcmp.lt.s32.totalorder %v6073_v34, 2  ;;  %v6143_v22 = vand.u32 65535, %v6117_v16 }
 0x9ad   : > { %v2768_v6 = vshrl.u32 %v6056_v51, 16  ;;  %v6148_v50 = vsel %vm2896_vm2, %v2903_v35, %v2905_v30  ;;  %v6152_v17 = vsel %vm2896_vm2, %v2907_v12, %v2909_v48  ;;  %v3032_v33 = vand.u32 31, %v3030_v63 }
 0x9ae   : > { %v2790_v53 = vshrl.u32 %v6059_v49, 16  ;;  %v6155_v21 = vadd.s32 %v2793_v55, %v2789_v45  ;;  %v2799_v44 = vadd.s32 %v2798_v62, %v2788_v23  ;;  %v6158_v11 = vshrl.u32 %v6117_v16, 16 }
 0x9af   : > { %v6160_v1 = vadd.s32 %v2777_v60, %v2768_v6  ;;  %v6164_v51 = vshrl.u32 %v6833_v27, %v6061_v46  ;;  %v3200_v7 = vshrl.u32 %v4540_v25, %v6134_v10  ;;  %v3203_v37 = vshrl.u32 %v4539_v2, %v6134_v10 }
 0x9b0   : > { %v2915_v49 = vshrl.u32 %v6152_v17, 16  ;;  %v2937_v45 = vshrl.u32 %v6148_v50, 16  ;;  %v6829_v55 = vand.u32 2147483647, %v6039_v40  ;;  %v3199_v43 = vshll.u32 %v4542_v28, %v3187_v61 }
 0x9b1   : > { %v3191_v31 = vshrl.u32 %v4543_v20, %v6134_v10  ;;  %v3194_v46 = vshrl.u32 %v4541_v57, %v6134_v10  ;;  %v3202_v5 = vshll.u32 %v4540_v25, %v3187_v61  ;;  %v6179_v32 = vsub.s32 32, %v3032_v33 }
 0x9b2   : > { %v6181_v9 = vadd.s32 %v2799_v44, %v2790_v53  ;;  %v2914_v36 = vand.u32 65535, %v6152_v17  ;;  %v6184_v15 = vshrl.u32 %v3185_v8, 5  ;;  %v3197_v41 = vshrl.u32 %v4542_v28, %v6134_v10 }
 0x9b3   : > { %6939 = vst [vmem:[#allocation13_spill] sm:$0xff] %v6179_v32  ;;  %v3190_v19 = vshll.u32 %v6833_v27, %v3187_v61  ;;  %v3193_v4 = vshll.u32 %v4543_v20, %v3187_v61  ;;  %v3201_v13 = vor.u32 %v3200_v7, %v3199_v43  ;;  %v3204_v62 = vor.u32 %v3203_v37, %v3202_v5 }
 0x9b4   : > { %v6193_v35 = vmul.u32 %v2915_v49, %v6143_v22  ;;  %v6198_v30 = vmul.u32 %v2937_v45, %v6143_v22  ;;  %v3180_v8 = vand.u32 8388607, %v6829_v55  ;;  %v3196_v12 = vshll.u32 %v4541_v57, %v3187_v61 }
 0x9b5   : > { %v6203_v48 = vor.u32 %v3191_v31, %v3190_v19  ;;  %v6205_v60 = vor.u32 %v3194_v46, %v3193_v4  ;;  %v6830_v23 = vand.u32 2147483647, %v6048_v29  ;;  %v3045_v6 = vshrl.u32 %v4540_v25, %v6179_v32 }
 0x9b6   : > { %v6210_v53 = vor.u32 %v3197_v41, %v3196_v12  ;;  %vm3205_vm3 = vcmp.lt.s32.totalorder %v6184_v15, 1  ;;  %vm3208_vm4 = vcmp.lt.s32.totalorder %v6184_v15, 4  ;;  %v3048_v44 = vshrl.u32 %v4539_v2, %v6179_v32 }
 0x9b7   : > { %v3214_v61 = vsel %vm3208_vm4, %v3201_v13, 920167782  ;;  %v3218_v7 = vsel %vm3208_vm4, %v3204_v62, 1326507024  ;;  %v6220_v37 = vshrl.u32 %v3030_v63, 5  ;;  %v3044_v43 = vshll.u32 %v4542_v28, %v3032_v33 }
 0x9b8   : > { %v3036_v31 = vshrl.u32 %v4543_v20, %v6179_v32  ;;  %v3039_v46 = vshrl.u32 %v4541_v57, %v6179_v32  ;;  %v3042_v5 = vshrl.u32 %v4542_v28, %v6179_v32  ;;  %v3047_v2 = vshll.u32 %v4540_v25, %v3032_v33 }
 0x9b9   : > { %6940 = vst [vmem:[#allocation14_spill] sm:$0xff] %v6220_v37  ;;  %v3181_v41 = vor.u32 8388608, %v3180_v8  ;;  %vm3207_vm5 = vcmp.lt.s32.totalorder %v6184_v15, 3  ;;  %v3213_v63 = vsel %vm3205_vm3, %v6203_v48, %v6205_v60  ;;  %v3046_v19 = vor.u32 %v3045_v6, %v3044_v43 }
 0x9ba   : > { %v3035_v4 = vshll.u32 %v6833_v27, %v3032_v33  ;;  %v3038_v62 = vshll.u32 %v4543_v20, %v3032_v33  ;;  %v3041_v12 = vshll.u32 %v4541_v57, %v3032_v33  ;;  %v3049_v55 = vor.u32 %v3048_v44, %v3047_v2 }
 0x9bb   : > { %v3215_v25 = vsel %vm3207_vm5, %v6210_v53, %v3214_v61  ;;  %v3217_v28 = vsel %vm3205_vm3, %v6205_v60, %v6210_v53  ;;  %v3219_v8 = vsel %vm3207_vm5, %v3201_v13, %v3218_v7  ;;  %v3025_v6 = vand.u32 8388607, %v6830_v23 }
 0x9bc   : > { %v6249_v43 = vor.u32 %v3036_v31, %v3035_v4  ;;  %v6251_v20 = vor.u32 %v3039_v46, %v3038_v62  ;;  %v6253_v57 = vor.u32 %v3042_v5, %v3041_v12  ;;  %vm3053_vm6 = vcmp.lt.s32.totalorder %v6220_v37, 4 }
 0x9bd   : > { %v6257_v33 = vadd.s32 1, %v6181_v9  ;;  %v2936_v44 = vand.u32 65535, %v6148_v50  ;;  %vm3206_vm7 = vcmp.lt.s32.totalorder %v6184_v15, 2  ;;  %v3059_v13 = vsel %vm3053_vm6, %v3046_v19, 920167782 }
 0x9be   : > { %6941 = vst [vmem:[#allocation15_spill] sm:$0xff] %v6249_v43  ;;  %v2916_v61 = vmul.u32 %v2914_v36, %v6143_v22  ;;  %v6268_v7 = vsel %vm3206_vm7, %v3213_v63, %v3215_v25  ;;  %v6272_v31 = vsel %vm3206_vm7, %v3217_v28, %v3219_v8  ;;  %v3063_v46 = vsel %vm3053_vm6, %v3049_v55, 1326507024 }
 0x9bf   : > { %6942 = vst [vmem:[#allocation16_spill] sm:$0xff] %v6251_v20  ;;  %v2920_v5 = vshll.u32 %v6193_v35, 16  ;;  %v6277_v2 = vshll.u32 %v3181_v41, 8  ;;  %vm3050_vm8 = vcmp.lt.s32.totalorder %v6220_v37, 1  ;;  %vm6855_vm9 = vcmp.lt.s32.totalorder %v6220_v37, 3 }
 0x9c0   : > { %6943 = vst [vmem:[#allocation17_spill] sm:$0xff] %v6253_v57  ;;  %v2942_v4 = vshll.u32 %v6198_v30, 16  ;;  %v3026_v62 = vor.u32 8388608, %v3025_v6  ;;  %v3058_v63 = vsel %vm3050_vm8, %v6249_v43, %v6251_v20  ;;  %v3060_v55 = vsel %vm6855_vm9, %v6253_v57, %v3059_v13 }
 0x9c1   : > { %6944 = vst [vmem:[#allocation18_spill] sm:$0xff] %v6277_v2  ;;  %v3225_v12 = vshrl.u32 %v6272_v31, 16  ;;  %v6835_v41 = vshrl.u32 %v6268_v7, 16  ;;  %v3062_v25 = vsel %vm3050_vm8, %v6251_v20, %v6253_v57  ;;  %v3064_v28 = vsel %vm6855_vm9, %v3046_v19, %v3063_v46 }
 0x9c2   : > { %v2938_v8 = vmul.u32 %v2936_v44, %v6143_v22  ;;  %v6299_v6 = vmul.u32 %v2936_v44, %v6158_v11  ;;  %vm6846_vm10 = vcmp.lt.s32.totalorder %v6220_v37, 2  ;;  %v6305_v13 = vmul.u32 %v2914_v36, %v6158_v11 }
 0x9c3   : > { %v2919_v23 = vmul.u32 %v2915_v49, %v6158_v11  ;;  %v3222_v26 = vand.u32 65535, %v6277_v2  ;;  %v6313_v19 = vsel %vm6846_vm10, %v3058_v63, %v3060_v55  ;;  %vm6315_vm12 = vc.u32 %v2916_v61, %v2920_v5 }
 0x9c4   : > { %vm2946_vm13 = vc.u32 %v2938_v8, %v2942_v4  ;;  %v6321_v44 = vsel %vm6846_vm10, %v3062_v25, %v3064_v28  ;;  %v6323_v36 = vshll.u32 %v3026_v62, 8  ;;  %v6325_v46 = vadd.s32 %v2942_v4, %v2938_v8 }
 0x9c5   : > { %v6327_v17 = vmul.u32 %v3225_v12, %v3222_v26  ;;  %v6331_v49 = vmul.u32 %v6835_v41, %v3222_v26  ;;  %v4545_v63 = vmov 16.0   ;;  %v2926_v14 = vadd.s32 %v2920_v5, %v2916_v61 }
 0x9c6   : > { %6947 = vst [vmem:[#allocation19_spill] sm:$0xff] %v6323_v36  ;;  %4485 = vrcp.f32 %v4545_v63  ;;  %v6839_v27 = vshll.u32 %v6299_v6, 16  ;;  %v2947_v62 = vsel %vm2946_vm13, 1, %v6936_v59  ;;  %v3224_v4 = vand.u32 65535, %v6272_v31 }
 0x9c7   : > { %v3246_v28 = vand.u32 65535, %v6268_v7  ;;  %v2922_v41 = vshll.u32 %v6305_v13, 16  ;;  %v2925_v63 = vsel %vm6315_vm12, 1, %v6936_v59  ;;  %v2941_v61 = vmul.u32 %v2937_v45, %v6158_v11 }
 0x9c8   : > { %v3067_v5 = vand.u32 65535, %v6323_v36  ;;  %vm2950_vm15 = vc.u32 %v6325_v46, %v6839_v27  ;;  %v3223_v31 = vshrl.u32 %v6277_v2, 16  ;;  %v3230_v55 = vshll.u32 %v6327_v17, 16 }
 0x9c9   : > { %v3252_v8 = vshll.u32 %v6331_v49, 16  ;;  %vm2928_vm13 = vc.u32 %v2926_v14, %v2922_v41  ;;  %v2943_v22 = vshrl.u32 %v6198_v30, 16  ;;  %v2949_v25 = vadd.s32 %v2947_v62, %v2941_v61 }
 0x9ca   : > { %v6948_v56 = vshrl.u32 %v6313_v19, 16  ;;  %v3226_v45 = vmul.u32 %v3224_v4, %v3222_v26  ;;  %v6361_v29 = vmul.u32 %v3224_v4, %v3223_v31  ;;  %v3248_v27 = vmul.u32 %v3246_v28, %v3222_v26 }
 0x9cb   : > { %v6949_v40 = vshrl.u32 %v6321_v44, 16  ;;  %v2927_v24 = vadd.s32 %v2925_v63, %v2919_v23  ;;  %v2951_v14 = vsel %vm2950_vm15, 1, %v6936_v59  ;;  %v6368_v41 = vmul.u32 %v3246_v28, %v3223_v31 }
 0x9cc   : > { %v6357_v50 = vmul.u32 %v6948_v56, %v3067_v5  ;;  %v6359_v11 = vpop.eup %4485  ;;  %v3091_v30 = vand.u32 65535, %v6313_v19  ;;  %vm2803_vm12 = vc.u32 %v6160_v1, %v6155_v21  ;;  %v2929_v56 = vsel %vm2928_vm13, 1, %v6936_v59 }
 0x9cd   : > { %v6365_v18 = vmul.u32 %v6949_v40, %v3067_v5  ;;  %vm3234_vm10 = vc.u32 %v3226_v45, %v3230_v55  ;;  %vm3256_vm11 = vc.u32 %v3248_v27, %v3252_v8  ;;  %v3069_v26 = vand.u32 65535, %v6321_v44 }
 0x9ce   : > { %v6375_v62 = vadd.s32 %v3252_v8, %v3248_v27  ;;  %v3068_v40 = vshrl.u32 %v6323_v36, 16  ;;  %v3097_v23 = vshll.u32 %v6357_v50, 16  ;;  %v2549_v4 = vmul.f32 16.0, %v6359_v11 }
 0x9cf   : > { %v2953_v28 = vadd.s32 %v2951_v14, %v2949_v25  ;;  %v3229_v63 = vmul.u32 %v3225_v12, %v3223_v31  ;;  %v3232_v61 = vshll.u32 %v6361_v29, 16  ;;  %v3075_v52 = vshll.u32 %v6365_v18, 16 }
 0x9d0   : > { %v3236_v42 = vadd.s32 %v3230_v55, %v3226_v45  ;;  %v6860_v58 = vshll.u32 %v6368_v41, 16  ;;  %v3093_v2 = vmul.u32 %v3091_v30, %v3067_v5  ;;  %v6383_v20 = vmul.u32 %v3091_v30, %v3068_v40 }
 0x9d1   : > { %v3235_v27 = vsel %vm3234_vm10, 1, %v6936_v59  ;;  %v3257_v8 = vsel %vm3256_vm11, 1, %v6936_v59  ;;  %v3071_v36 = vmul.u32 %v3069_v26, %v3067_v5  ;;  %v6387_v43 = vmul.u32 %v3069_v26, %v3068_v40 }
 0x9d2   : > { %vm3260_vm15 = vc.u32 %v6375_v62, %v6860_v58  ;;  %vm3101_vm13 = vc.u32 %v3093_v2, %v3097_v23  ;;  %v6392_v12 = vadd.s32 %v3097_v23, %v3093_v2  ;;  %v2550_v55 = vsub.f32 1.0, %v2549_v4 }
 0x9d3   : > { %v2931_v25 = vadd.s32 %v2929_v56, %v2927_v24  ;;  %v6950_v45 = vshrl.u32 %v6268_v7, 16  ;;  %vm3079_vm9 = vc.u32 %v3071_v36, %v3075_v52  ;;  %v3081_v30 = vadd.s32 %v3075_v52, %v3071_v36 }
 0x9d4   : > { %v2954_v32 = vadd.s32 %v2953_v28, %v2943_v22  ;;  %v3237_v37 = vadd.s32 %v3235_v27, %v3229_v63  ;;  %vm3238_vm11 = vc.u32 %v3236_v42, %v3232_v61  ;;  %v3099_v5 = vshll.u32 %v6383_v20, 16 }
 0x9d5   : > { %v3251_v14 = vmul.u32 %v6950_v45, %v3223_v31  ;;  %v3261_v57 = vsel %vm3260_vm15, 1, %v6936_v59  ;;  %v3077_v58 = vshll.u32 %v6387_v43, 16  ;;  %v3102_v2 = vsel %vm3101_vm13, 1, %v6936_v59 }
 0x9d6   : > { %v3080_v23 = vsel %vm3079_vm9, 1, %v6936_v59  ;;  %v6951_v24 = vshrl.u32 %v6313_v19, 16  ;;  %vm3105_vm10 = vc.u32 %v6392_v12, %v3099_v5  ;;  %v2551_v42 = vmul.f32 %v6359_v11, %v2550_v55 }
 0x9d7   : > { %v3259_v26 = vadd.s32 %v3257_v8, %v3251_v14  ;;  %v6952_v52 = vshrl.u32 %v6193_v35, 16  ;;  %v3239_v31 = vsel %vm3238_vm11, 1, %v6936_v59  ;;  %v6953_v22 = vshrl.u32 %v6321_v44, 16 }
 0x9d8   : > { %v3096_v7 = vmul.u32 %v6951_v24, %v3068_v40  ;;  %vm3083_vm15 = vc.u32 %v3081_v30, %v3077_v58  ;;  %v2805_v19 = vsel %vm2803_vm12, %v6257_v33, %v6181_v9  ;;  %v2900_v4 = vsel %vm2898_vm14, %v6103_v0, 2102212464 }
 0x9d9   : > { %v2932_v36 = vadd.s32 %v2931_v25, %v6952_v52  ;;  %v3074_v56 = vmul.u32 %v6953_v22, %v3068_v40  ;;  %v2945_v28 = vshrl.u32 %v6299_v6, 16  ;;  %v2923_v63 = vshrl.u32 %v6305_v13, 16 }
 0x9da   : > { %v3104_v35 = vadd.s32 %v3102_v2, %v3096_v7  ;;  %v3263_v61 = vadd.s32 %v3261_v57, %v3259_v26  ;;  %v3106_v44 = vsel %vm3105_vm10, 1, %v6936_v59  ;;  %v3241_v40 = vadd.s32 %v3239_v31, %v3237_v37 }
 0x9db   : > { %v3082_v27 = vadd.s32 %v3080_v23, %v3074_v56  ;;  %v2955_v58 = vadd.s32 %v2954_v32, %v2945_v28  ;;  %v3084_v8 = vsel %vm3083_vm15, 1, %v6936_v59  ;;  %v2552_v55 = vadd.f32 %v6359_v11, %v2551_v42 }
 0x9dc   : > { %v2801_v9 = vmul.u32 %v6034_v39, %v6138_v38  ;;  %v6427_v33 = vadd.s32 %v2932_v36, %v2923_v63  ;;  %v3253_v0 = vshrl.u32 %v6331_v49, 16  ;;  %vm2553_vm14 = vweird.f32 %v6359_v11  ;;  %v6959_v63 = vld [vmem:[#allocation13_spill] sm:$0xff] }
 0x9dd   : > { %v2899_v57 = vsel %vm2895_vm0, %v6164_v51, %v6096_v3  ;;  %v2901_v59 = vsel %vm2897_vm1, %v6098_v54, %v2900_v4  ;;  %v3231_v32 = vshrl.u32 %v6327_v17, 16  ;;  %v3108_v37 = vadd.s32 %v3106_v44, %v3104_v35  ;;  %v6958_v4 = vld [vmem:[#allocation14_spill] sm:$0xff] }
 0x9de   : > { %v6439_v13 = vadd.s32 %v2805_v19, %v2801_v9  ;;  %v6954_v39 = vshll.u32 %v6299_v6, 16  ;;  %v3264_v49 = vadd.s32 %v3263_v61, %v3253_v0  ;;  %v3086_v25 = vadd.s32 %v3084_v8, %v3082_v27  ;;  %v6957_v19 = vld [vmem:[#allocation17_spill] sm:$0xff]  ;;  %v6961_v27 = vld [vmem:[#allocation16_spill] sm:$0xff] }
 0x9df   : > { %v2959_v45 = vadd.s32 1, %v2955_v58  ;;  %v3242_v14 = vadd.s32 %v3241_v40, %v3231_v32  ;;  %v3098_v3 = vshrl.u32 %v6357_v50, 16  ;;  %v6448_v51 = vsel %vm2553_vm14, %v6359_v11, %v2552_v55 }
 0x9e0   : > { %v6444_v38 = vadd.s32 %v6325_v46, %v6954_v39  ;;  %v3255_v54 = vshrl.u32 %v6368_v41, 16  ;;  %v3076_v17 = vshrl.u32 %v6365_v18, 16  ;;  %v2902_v6 = vsel %vm2896_vm2, %v2899_v57, %v2901_v59  ;;  %v6964_v59 = vld [vmem:[#allocation18_spill] sm:$0xff] }
 0x9e1   : > { %v3210_v46 = vsel %vm3208_vm4, %v6210_v53, 2102212464  ;;  %v3233_v30 = vshrl.u32 %v6361_v29, 16  ;;  %v3109_v50 = vadd.s32 %v3108_v37, %v3098_v3  ;;  %v6955_v11 = vmov 683565275  }
 0x9e2   : > { %vm2958_vm0 = vc.u32 %v6427_v33, %v6444_v38  ;;  %v3189_v2 = vshrl.u32 %v6955_v11, %v6134_v10  ;;  %v3265_v23 = vadd.s32 %v3264_v49, %v3255_v54  ;;  %v3087_v24 = vadd.s32 %v3086_v25, %v3076_v17  ;;  %v6966_v49 = vld [vmem:[#allocation8_spill] sm:$0xff]  ;;  %v6967_v54 = vld [vmem:[#allocation19_spill] sm:$0xff] }
 0x9e3   : > { %v2807_v18 = vadd.s32 536870912, %v6439_v13  ;;  %v2960_v42 = vsel %vm2958_vm0, %v2959_v45, %v2955_v58  ;;  %v6464_v34 = vadd.s32 %v3242_v14, %v3233_v30  ;;  %v3100_v52 = vshrl.u32 %v6383_v20, 16  ;;  %v6969_v30 = vld [vmem:[#allocation10_spill] sm:$0xff] }
 0x9e4   : > { %v3209_v29 = vsel %vm3205_vm3, %v3189_v2, %v6203_v48  ;;  %v3211_v53 = vsel %vm3207_vm5, %v6205_v60, %v3210_v46  ;;  %v3078_v10 = vshrl.u32 %v6387_v43, 16  ;;  %v2956_v31 = vmul.u32 %v6117_v16, %v2902_v6  ;;  %v6968_v6 = vld [vmem:[#allocation9_spill] sm:$0xff] }
 0x9e5   : > { %v6956_v22 = vshll.u32 %v6368_v41, 16  ;;  %v3055_v48 = vsel %vm3053_vm6, %v6957_v19, 2102212464  ;;  %v3110_v28 = vadd.s32 %v3109_v50, %v3100_v52  ;;  %v3269_v35 = vadd.s32 1, %v3265_v23 }
 0x9e6   : > { %v3034_v60 = vshrl.u32 %v6955_v11, %v6959_v63  ;;  %v6488_v43 = vadd.s32 %v3087_v24, %v3078_v10  ;;  %v2961_v16 = vadd.s32 %v2960_v42, %v2956_v31  ;;  %v3212_v41 = vsel %vm3206_vm7, %v3209_v29, %v3211_v53 }
 0x9e7   : > { %v6481_v56 = vadd.s32 %v6375_v62, %v6956_v22  ;;  %v6960_v62 = vld [vmem:[#allocation15_spill] sm:$0xff]  ;;  %vm6962_vm2 = vcmp.lt.s32.totalorder %v6958_v4, 3  ;;  %v6505_v58 = vadd.s32 %v6392_v12, %v3099_v5  ;;  %vm6963_vm3 = vcmask 130048  }
 0x9e8   : > { %v3054_v61 = vsel %vm3050_vm8, %v3034_v60, %v6960_v62  ;;  %v3056_v44 = vsel %vm6962_vm2, %v6961_v27, %v3055_v48  ;;  %v6508_v15 = vshrl.u32 %v2807_v18, 30  ;;  %v3114_v8 = vadd.s32 1, %v3110_v28  ;;  %vm6970_vm6 = vmmov %vm6963_vm3 }
 0x9e9   : > { %vm3268_vm1 = vc.u32 %v6464_v34, %v6481_v56  ;;  %vm3113_vm4 = vc.u32 %v6488_v43, %v6505_v58  ;;  %v2962_v57 = vadd.s32 536870912, %v2961_v16  ;;  %v3266_v32 = vmul.u32 %v6964_v59, %v3212_v41  ;;  %vm6971_vm7 = vmmov %vm6963_vm3 }
 0x9ea   : > { %v3270_v9 = vsel %vm3268_vm1, %v3269_v35, %v3265_v23  ;;  %vm6965_vm5 = vcmp.lt.s32.totalorder %v6958_v4, 2  ;;  %v2809_v45 = vshll.u32 %v6508_v15, 30  ;;  %v3115_v3 = vsel %vm3113_vm4, %v3114_v8, %v3110_v28  ;;  %vm6972_vm8 = vmmov %vm6963_vm3 }
 0x9eb   : > { %v3057_v20 = vsel %vm6965_vm5, %v3054_v61, %v3056_v44  ;;  %v3271_v14 = vadd.s32 %v3270_v9, %v3266_v32  ;;  %v6531_v11 = vshrl.u32 %v2962_v57, 30 }
 0x9ec   : > { %v3111_v17 = vmul.u32 %v6967_v54, %v3057_v20  ;;  %v2810_v18 = vsub.s32 %v6439_v13, %v2809_v45 }
 0x9ed   : > { %v3272_v42 = vadd.s32 536870912, %v3271_v14  ;;  %v2964_v53 = vshll.u32 %v6531_v11, 30 }
 0x9ee   : > { %v3116_v2 = vadd.s32 %v3115_v3, %v3111_v17  ;;  %v2812_v31 = vsub.s32 0, %v2810_v18  ;;  %vm2811_vm9 = vcmp.lt.s32.totalorder %v2810_v18, 0 }
 0x9ef   : > { %v6542_v22 = vshrl.u32 %v3272_v42, 30  ;;  %v2965_v19 = vsub.s32 %v2961_v16, %v2964_v53 }
 0x9f0   : > { %v3117_v10 = vadd.s32 536870912, %v3116_v2  ;;  %v2813_v48 = vsel %vm2811_vm9, %v2812_v31, %v2810_v18 }
 0x9f1   : > { %v3274_v13 = vshll.u32 %v6542_v22, 30  ;;  %v2967_v28 = vsub.s32 0, %v2965_v19  ;;  %v2814_v35 = vclz %v2813_v48  ;;  %vm2966_vm12 = vcmp.lt.s32.totalorder %v2965_v19, 0 }
 0x9f2   : > { %v6544_v4 = vshrl.u32 %v3117_v10, 30 }
 0x9f3   : > { %v6548_v60 = vsub.s32 %v3271_v14, %v3274_v13  ;;  %v4099_v41 = vadd.s32 4294967294, %v2814_v35  ;;  %v3267_v13 = vadd.s32 %v6481_v56, %v6464_v34 }
 0x9f4   : > { %v3119_v63 = vshll.u32 %v6544_v4, 30 }
 0x9f5   : > { %v3277_v27 = vsub.s32 0, %v6548_v60  ;;  %vm3276_vm13 = vcmp.lt.s32.totalorder %v6548_v60, 0  ;;  %vm4100_vm11 = vcmp.lt.s32.totalorder %v4099_v41, 0 }
 0x9f6   : > { %v6550_v62 = vsub.s32 %v3116_v2, %v3119_v63  ;;  %v2817_v8 = vsel %vm4100_vm11, 0, %v4099_v41 }
 0x9f7   : > { %v2819_v54 = vshll.u32 %v2810_v18, %v2817_v8 }
 0x9f8   : > { %v2538_v26 = vpop.xlane.xlu1 %2537  ;;  %v3122_v16 = vsub.s32 0, %v6550_v62  ;;  %vm3121_vm10 = vcmp.lt.s32.totalorder %v6550_v62, 0 }
 0x9f9   : > { %v2555_v7 = vmul.f32 %v6448_v51, %v2538_v26 }
 0x9fb   : > { %v6475_v36 = vsub.f32 %v5927_v47, %v2555_v7 }
 0x9fd   : > { %v2563_v47 = vmul.f32 %v6475_v36, %v6475_v36 }
 0x9ff   : > { %v2567_v40 = vsel %vm6963_vm3, %v2563_v47, 0.0  ;;  %v2968_v47 = vsel %vm2966_vm12, %v2967_v28, %v2965_v19 }
 0xa00   : > { %2568 = vadd.xlane.f32.xlu2 %v2567_v40  ;;  %v2547_v55 = vpop.xlane.xlu1 %2546  ;;  %v2969_v61 = vclz %v2968_v47  ;;  %v3278_v40 = vsel %vm3276_vm13, %v3277_v27, %v6548_v60 }
 0xa01   : > { %v2558_v0 = vmul.f32 %v6448_v51, %v2547_v55  ;;  %v2544_v12 = vpop.xlane.xlu0 %2543  ;;  %v3123_v55 = vsel %vm3121_vm10, %v3122_v16, %v6550_v62  ;;  %v3279_v9 = vclz %v3278_v40  ;;  %v6973_v40 = vld [vmem:[#allocation7_spill] sm:$0xff] }
 0xa02   : > { %v2541_v5 = vpop.xlane.xlu2 %2540  ;;  %v2557_v37 = vmul.f32 %v6448_v51, %v2544_v12  ;;  %v4102_v44 = vadd.s32 4294967294, %v2969_v61  ;;  %v3124_v57 = vclz %v3123_v55  ;;  %vm2710_vm1 = vcmp.lt.s32.totalorder %v6973_v40, 0 }
 0xa03   : > { %v2556_v39 = vmul.f32 %v6448_v51, %v2541_v5  ;;  %v6519_v25 = vsub.f32 %v6966_v49, %v2558_v0  ;;  %v2822_v0 = vsub.s32 4294967266, %v2817_v8  ;;  %v4108_v32 = vadd.s32 4294967294, %v3279_v9 }
 0xa04   : > { %v6524_v46 = vsub.f32 %v6968_v6, %v2557_v37  ;;  %vm4103_vm15 = vcmp.lt.s32.totalorder %v4102_v44, 0  ;;  %v4105_v12 = vadd.s32 4294967294, %v3124_v57  ;;  %v2818_v5 = vsub.s32 32, %v2817_v8 }
 0xa05   : > { %v6527_v50 = vsub.f32 %v6969_v30, %v2556_v39  ;;  %v2566_v26 = vmul.f32 %v6519_v25, %v6519_v25  ;;  %v2972_v59 = vsel %vm4103_vm15, 0, %v4102_v44  ;;  %v2823_v20 = vadd.s32 127, %v2822_v0 }
 0xa06   : > { %v2565_v23 = vmul.f32 %v6524_v46, %v6524_v46  ;;  %v2977_v37 = vsub.s32 4294967266, %v2972_v59  ;;  %vm4109_vm14 = vcmp.lt.s32.totalorder %v4108_v32, 0  ;;  %v2802_v39 = vadd.s32 %v6155_v21, %v6160_v1 }
 0xa07   : > { %v2564_v24 = vmul.f32 %v6527_v50, %v6527_v50  ;;  %v2576_v7 = vsel %vm6970_vm6, %v2566_v26, 0.0  ;;  %v2824_v49 = vshll.u32 %v2823_v20, 23  ;;  %vm4106_vm0 = vcmp.lt.s32.totalorder %v4105_v12, 0 }
 0xa08   : > { %2577 = vadd.xlane.f32.xlu2 %v2576_v7  ;;  %v2573_v52 = vsel %vm6971_vm7, %v2565_v23, 0.0  ;;  %v2820_v45 = vshrl.u32 %v2802_v39, %v2818_v5  ;;  %v2978_v14 = vadd.s32 127, %v2977_v37  ;;  %v3282_v3 = vsel %vm4109_vm14, 0, %v4108_v32 }
 0xa09   : > { %v2570_v29 = vsel %vm6972_vm8, %v2564_v24, 0.0  ;;  %2574 = vadd.xlane.f32.xlu1 %v2573_v52  ;;  %v2825_v17 = vor.u32 4788187, %v2824_v49  ;;  %v2973_v6 = vsub.s32 32, %v2972_v59  ;;  %v3127_v30 = vsel %vm4106_vm0, 0, %v4105_v12 }
 0xa0a   : > { %2571 = vadd.xlane.f32.xlu0 %v2570_v29  ;;  %v3287_v26 = vsub.s32 4294967266, %v3282_v3  ;;  %v2821_v2 = vor.u32 %v2820_v45, %v2819_v54  ;;  %v2957_v23 = vadd.s32 %v6444_v38, %v6427_v33  ;;  %v2979_v24 = vshll.u32 %v2978_v14, 23 }
 0xa0b   : > { %v3132_v7 = vsub.s32 4294967266, %v3127_v30  ;;  %v2826_v42 = vand.u32 2147483647, %v2825_v17  ;;  %v2974_v1 = vshll.u32 %v2965_v19, %v2972_v59  ;;  %v3283_v10 = vsub.s32 32, %v3282_v3 }
 0xa0c   : > { %v2975_v52 = vshrl.u32 %v2957_v23, %v2973_v6  ;;  %v3288_v29 = vadd.s32 127, %v3287_v26  ;;  %v2828_v21 = vcvt.s32.f32 %v2821_v2  ;;  %v2980_v53 = vor.u32 4788187, %v2979_v24  ;;  %v6982_v23 = vld [vmem:[#allocation12_spill] sm:$0xff] }
 0xa0d   : > { %v3133_v31 = vadd.s32 127, %v3132_v7  ;;  %v3128_v35 = vsub.s32 32, %v3127_v30  ;;  %v3285_v47 = vshrl.u32 %v3267_v13, %v3283_v10  ;;  %v3112_v33 = vadd.s32 %v6505_v58, %v6488_v43 }
 0xa0e   : > { %v2829_v48 = vmul.f32 %v2828_v21, %v2826_v42  ;;  %v2976_v18 = vor.u32 %v2975_v52, %v2974_v1  ;;  %v3289_v28 = vshll.u32 %v3288_v29, 23  ;;  %v2981_v63 = vand.u32 2147483647, %v2980_v53 }
 0xa0f   : > { %v3134_v38 = vshll.u32 %v3133_v31, 23  ;;  %v3284_v19 = vshll.u32 %v6548_v60, %v3282_v3  ;;  %v3130_v16 = vshrl.u32 %v3112_v33, %v3128_v35  ;;  %v3129_v34 = vshll.u32 %v6550_v62, %v3127_v30  ;;  %v6977_v62 = vld [vmem:[#allocation11_spill] sm:$0xff]  ;;  %v6981_v30 = vld [vmem:[#allocation5_spill] sm:$0xff] }
 0xa10   : > { %v2830_v41 = vxor.u32 2147483648, %v2829_v48  ;;  %v2983_v61 = vcvt.s32.f32 %v2976_v18  ;;  %v3290_v27 = vor.u32 4788187, %v3289_v28  ;;  %v6974_v43 = vand.u32 2147483647, %v6973_v40 }
 0xa11   : > { %v3286_v8 = vor.u32 %v3285_v47, %v3284_v19  ;;  %v3135_v56 = vor.u32 4788187, %v3134_v38  ;;  %v3131_v0 = vor.u32 %v3130_v16, %v3129_v34  ;;  %vm2865_vm3 = vcmp.lt.s32.totalorder %v6977_v62, 0 }
 0xa12   : > { %v2984_v44 = vmul.f32 %v2983_v61, %v2981_v63  ;;  %v2831_v55 = vsel %vm2710_vm1, %v2830_v41, %v2829_v48  ;;  %v3291_v9 = vand.u32 2147483647, %v3290_v27  ;;  %vm6573_vm2 = vcmp.le.f32.partialorder %v6974_v43, 0.7853982 }
 0xa13   : > { %v2834_v57 = vsel %vm6573_vm2, %v6973_v40, %v2831_v55  ;;  %v3293_v59 = vcvt.s32.f32 %v3286_v8  ;;  %v3136_v32 = vand.u32 2147483647, %v3135_v56  ;;  %v3138_v12 = vcvt.s32.f32 %v3131_v0 }
 0xa14   : > { %v2985_v60 = vxor.u32 2147483648, %v2984_v44  ;;  %v2836_v5 = vmul.f32 %v2834_v57, %v2834_v57  ;;  %v6978_v49 = vand.u32 2147483647, %v6977_v62  ;;  %vm3175_vm5 = vcmp.lt.s32.totalorder %v6981_v30, 0 }
 0xa15   : > { %v3294_v20 = vmul.f32 %v3293_v59, %v3291_v9  ;;  %v3139_v39 = vmul.f32 %v3138_v12, %v3136_v32  ;;  %vm3020_vm6 = vcmp.lt.s32.totalorder %v6982_v23, 0  ;;  %v6983_v24 = vand.u32 2147483647, %v6981_v30 }
 0xa16   : > { %v2986_v37 = vsel %vm2865_vm3, %v2985_v60, %v2984_v44  ;;  %vm6585_vm4 = vcmp.le.f32.partialorder %v6978_v49, 0.7853982  ;;  %v2844_v54 = vmul.f32 -0.00019511016, %v2836_v5  ;;  %v2837_v21 = vmul.f32 -0.001358992, %v2836_v5 }
 0xa17   : > { %v6592_v14 = vsel %vm6585_vm4, %v6977_v62, %v2986_v37  ;;  %v3295_v3 = vxor.u32 2147483648, %v3294_v20  ;;  %v3140_v17 = vxor.u32 2147483648, %v3139_v39  ;;  %vm6602_vm7 = vcmp.le.f32.partialorder %v6983_v24, 0.7853982 }
 0xa18   : > { %v2991_v6 = vmul.f32 %v6592_v14, %v6592_v14  ;;  %v2845_v2 = vadd.f32 0.008332121, %v2844_v54  ;;  %v6986_v1 = vand.u32 2147483647, %v6982_v23  ;;  %v2832_v13 = vsub.s32 4, %v6508_v15 }
 0xa19   : > { %v3296_v26 = vsel %vm3175_vm5, %v3295_v3, %v3294_v20  ;;  %v3141_v42 = vsel %vm3020_vm6, %v3140_v17, %v3139_v39  ;;  %v2838_v28 = vadd.f32 0.041655596, %v2837_v21  ;;  %v2987_v16 = vsub.s32 4, %v6531_v11 }
 0xa1a   : > { %v2999_v52 = vmul.f32 -0.00019511016, %v2991_v6  ;;  %v6611_v29 = vsel %vm6602_vm7, %v6981_v30, %v3296_v26  ;;  %vm6615_vm8 = vcmp.le.f32.partialorder %v6986_v1, 0.7853982  ;;  %v2846_v10 = vmul.f32 %v2845_v2, %v2836_v5 }
 0xa1b   : > { %v6622_v31 = vsel %vm6615_vm8, %v6982_v23, %v3141_v42  ;;  %v6626_v48 = vmul.f32 %v6611_v29, %v6611_v29  ;;  %v2992_v47 = vmul.f32 -0.001358992, %v2991_v6  ;;  %v2833_v41 = vsel %vm2710_vm1, %v2832_v13, %v6508_v15 }
 0xa1c   : > { %v3000_v18 = vadd.f32 0.008332121, %v2999_v52  ;;  %v6631_v35 = vmul.f32 %v6622_v31, %v6622_v31  ;;  %v2847_v63 = vadd.f32 -0.16666654, %v2846_v10  ;;  %v2839_v61 = vmul.f32 %v2838_v28, %v2836_v5 }
 0xa1d   : > { %v3309_v33 = vmul.f32 -0.00019511016, %v6626_v48  ;;  %v2993_v44 = vadd.f32 0.041655596, %v2992_v47  ;;  %v2835_v34 = vsel %vm6573_vm2, 0, %v2833_v41  ;;  %v2988_v15 = vsel %vm2865_vm3, %v2987_v16, %v6531_v11 }
 0xa1e   : > { %v3001_v38 = vmul.f32 %v3000_v18, %v2991_v6  ;;  %v3154_v19 = vmul.f32 -0.00019511016, %v6631_v35  ;;  %v2848_v27 = vmul.f32 %v2847_v63, %v2836_v5  ;;  %v2840_v55 = vadd.f32 -0.4999988, %v2839_v61 }
 0xa1f   : > { %v3310_v8 = vadd.f32 0.008332121, %v3309_v33  ;;  %v3302_v9 = vmul.f32 -0.001358992, %v6626_v48  ;;  %v2994_v60 = vmul.f32 %v2993_v44, %v2991_v6  ;;  %v3147_v32 = vmul.f32 -0.001358992, %v6631_v35 }
 0xa20   : > { %v3002_v56 = vadd.f32 -0.16666654, %v3001_v38  ;;  %v3155_v0 = vadd.f32 0.008332121, %v3154_v19  ;;  %v2849_v43 = vadd.f32 1.0, %v2848_v27  ;;  %v2852_v20 = vadd.s32 3, %v2835_v34 }
 0xa21   : > { %v3311_v59 = vmul.f32 %v3310_v8, %v6626_v48  ;;  %v2841_v37 = vmul.f32 %v2840_v55, %v2836_v5  ;;  %v3303_v58 = vadd.f32 0.041655596, %v3302_v9  ;;  %v3477_v3 = vand.u32 3, %v2835_v34 }
 0xa22   : > { %v3003_v12 = vmul.f32 %v3002_v56, %v2991_v6  ;;  %v3156_v39 = vmul.f32 %v3155_v0, %v6631_v35  ;;  %v2850_v49 = vmul.f32 %v2849_v43, %v2834_v57  ;;  %v2990_v54 = vsel %vm6585_vm4, 0, %v2988_v15 }
 0xa23   : > { %v2995_v17 = vadd.f32 -0.4999988, %v2994_v60  ;;  %v3312_v26 = vadd.f32 -0.16666654, %v3311_v59  ;;  %v3148_v2 = vadd.f32 0.041655596, %v3147_v32  ;;  %v3304_v21 = vmul.f32 %v3303_v58, %v6626_v48 }
 0xa24   : > { %v2853_v11 = vand.u32 3, %v2852_v20  ;;  %v3004_v24 = vadd.f32 1.0, %v3003_v12  ;;  %v3297_v42 = vsub.s32 4, %v6542_v22  ;;  %v2842_v52 = vadd.f32 1.0, %v2841_v37  ;;  %v6680_v58 = vld [vmem:[%s6819_s6 + $0x8] sm:$0x3] }
 0xa25   : > { %v3157_v1 = vadd.f32 -0.16666654, %v3156_v39  ;;  %v2856_v5 = vxor.u32 2147483648, %v2850_v49  ;;  %vm3478_vm9 = vcmp.lt.s32.totalorder %v3477_v3, 2  ;;  %vm3479_vm12 = vcmp.eq.s32.totalorder %v3477_v3, 0 }
 0xa26   : > { %v3007_v10 = vadd.s32 3, %v2990_v54  ;;  %v3142_v57 = vsub.s32 4, %v6544_v4  ;;  %vm3482_vm13 = vcmp.eq.s32.totalorder %v3477_v3, 2  ;;  %v2996_v45 = vmul.f32 %v2995_v17, %v2991_v6 }
 0xa27   : > { %v3313_v18 = vmul.f32 %v3312_v26, %v6626_v48  ;;  %v3149_v13 = vmul.f32 %v3148_v2, %v6631_v35  ;;  %vm2854_vm11 = vcmp.lt.s32.totalorder %v2853_v11, 2  ;;  %v3005_v28 = vmul.f32 %v3004_v24, %v6592_v14 }
 0xa28   : > { %v3631_v63 = vand.u32 3, %v2990_v54  ;;  %v3298_v47 = vsel %vm3175_vm5, %v3297_v42, %v6542_v22  ;;  %vm2851_vm10 = vweird.f32 %v6973_v40  ;;  %vm2855_vm15 = vcmp.eq.s32.totalorder %v2853_v11, 0 }
 0xa29   : > { %v2859_v33 = vxor.u32 2147483648, %v2842_v52  ;;  %v3305_v38 = vadd.f32 -0.4999988, %v3304_v21  ;;  %v3158_v41 = vmul.f32 %v3157_v1, %v6631_v35  ;;  %v2857_v6 = vsel %vm2855_vm15, %v2842_v52, %v2856_v5 }
 0xa2a   : > { %vm2858_vm14 = vcmp.eq.s32.totalorder %v2853_v11, 2  ;;  %v3008_v61 = vand.u32 3, %v3007_v10  ;;  %v3143_v19 = vsel %vm3020_vm6, %v3142_v57, %v6544_v4  ;;  %v2997_v14 = vadd.f32 1.0, %v2996_v45 }
 0xa2b   : > { %v3300_v27 = vsel %vm6602_vm7, 0, %v3298_v47  ;;  %v3314_v16 = vadd.f32 1.0, %v3313_v18  ;;  %v3150_v22 = vadd.f32 -0.4999988, %v3149_v13  ;;  %v3481_v44 = vsel %vm3479_vm12, %v2842_v52, %v2856_v5 }
 0xa2c   : > { %v3011_v8 = vxor.u32 2147483648, %v3005_v28  ;;  %vm3632_vm0 = vcmp.lt.s32.totalorder %v3631_v63, 2  ;;  %vm3633_vm1 = vcmp.eq.s32.totalorder %v3631_v63, 0  ;;  %v2860_v34 = vsel %vm2858_vm14, %v2859_v33, %v2850_v49 }
 0xa2d   : > { %v3306_v56 = vmul.f32 %v3305_v38, %v6626_v48  ;;  %v3145_v55 = vsel %vm6615_vm8, 0, %v3143_v19  ;;  %v3159_v9 = vadd.f32 1.0, %v3158_v41  ;;  %v2861_v4 = vsel %vm2854_vm11, %v2857_v6, %v2860_v34 }
 0xa2e   : > { %v3484_v0 = vsel %vm3482_vm13, %v2859_v33, %v2850_v49  ;;  %vm3010_vm2 = vcmp.eq.s32.totalorder %v3008_v61, 0  ;;  %v3317_v7 = vadd.s32 3, %v3300_v27  ;;  %v3014_v15 = vxor.u32 2147483648, %v2997_v14 }
 0xa2f   : > { %v3485_v43 = vsel %vm3478_vm9, %v3481_v44, %v3484_v0  ;;  %v3315_v60 = vmul.f32 %v3314_v16, %v6611_v29  ;;  %v3151_v59 = vmul.f32 %v3150_v22, %v6631_v35  ;;  %vm3009_vm3 = vcmp.lt.s32.totalorder %v3008_v61, 2  ;;  %v6990_v16 = vld [vmem:[#allocation6_spill] sm:$0xff] }
 0xa30   : > { %v3012_v32 = vsel %vm3010_vm2, %v2997_v14, %v3011_v8  ;;  %vm3636_vm4 = vcmp.eq.s32.totalorder %v3631_v63, 2  ;;  %v3162_v48 = vadd.s32 3, %v3145_v55  ;;  %v3635_v53 = vsel %vm3633_vm1, %v2997_v14, %v3011_v8 }
 0xa31   : > { %v3307_v20 = vadd.f32 1.0, %v3306_v56  ;;  %v3939_v12 = vand.u32 3, %v3300_v27  ;;  %v3160_v37 = vmul.f32 %v3159_v9, %v6622_v31  ;;  %v2862_v29 = vsel %vm2851_vm10, nan, %v2861_v4 }
 0xa32   : > { %v3486_v35 = vsel %vm2851_vm10, nan, %v3485_v43  ;;  %vm3013_vm5 = vcmp.eq.s32.totalorder %v3008_v61, 2  ;;  %v3318_v39 = vand.u32 3, %v3317_v7  ;;  %v3638_v3 = vsel %vm3636_vm4, %v3014_v15, %v3005_v28 }
 0xa33   : > { %v3015_v49 = vsel %vm3013_vm5, %v3014_v15, %v3005_v28  ;;  %v3321_v54 = vxor.u32 2147483648, %v3315_v60  ;;  %v3152_v17 = vadd.f32 1.0, %v3151_v59  ;;  %v3639_v31 = vsel %vm3632_vm0, %v3635_v53, %v3638_v3 }
 0xa34   : > { %v3016_v26 = vsel %vm3009_vm3, %v3012_v32, %v3015_v49  ;;  %v3163_v2 = vand.u32 3, %v3162_v48  ;;  %v3949_v11 = vsub.f32 1.0, %v6680_v58  ;;  %vm3006_vm6 = vweird.f32 %v6977_v62 }
 0xa35   : > { %v3324_v24 = vxor.u32 2147483648, %v3307_v20  ;;  %vm3940_vm7 = vcmp.lt.s32.totalorder %v3939_v12, 2  ;;  %vm3941_vm8 = vcmp.eq.s32.totalorder %v3939_v12, 0  ;;  %v3166_v40 = vxor.u32 2147483648, %v3160_v37 }
 0xa36   : > { %vm3319_vm9 = vcmp.lt.s32.totalorder %v3318_v39, 2  ;;  %vm3320_vm12 = vcmp.eq.s32.totalorder %v3318_v39, 0  ;;  %vm3944_vm13 = vcmp.eq.s32.totalorder %v3939_v12, 2  ;;  %v3785_v42 = vand.u32 3, %v3145_v55  ;;  %v4498_v12 = vld [vmem:[%s6819_s6] sm:$0xff] }
 0xa37   : > { %v3322_v21 = vsel %vm3320_vm12, %v3307_v20, %v3321_v54  ;;  %vm3323_vm11 = vcmp.eq.s32.totalorder %v3318_v39, 2  ;;  %v3169_v1 = vxor.u32 2147483648, %v3152_v17  ;;  %v3943_v10 = vsel %vm3941_vm8, %v3307_v20, %v3321_v54 }
 0xa38   : > { %vm3165_vm10 = vcmp.eq.s32.totalorder %v3163_v2, 0  ;;  %v6692_v57 = vperm.slane %v6680_v58, 0  ;;  %v6694_v45 = vperm.slane %v3949_v11, 0  ;;  %v3325_v18 = vsel %vm3323_vm11, %v3324_v24, %v3315_v60 }
 0xa39   : > { %v3167_v13 = vsel %vm3165_vm10, %v3152_v17, %v3166_v40  ;;  %v6989_v28 = vlaneseq  ;;  %v3326_v33 = vsel %vm3319_vm9, %v3322_v21, %v3325_v18  ;;  %v3946_v38 = vsel %vm3944_vm13, %v3324_v24, %v3315_v60 }
 0xa3a   : > { %vm3168_vm15 = vcmp.eq.s32.totalorder %v3163_v2, 2  ;;  %vm3787_vm14 = vcmp.eq.s32.totalorder %v3785_v42, 0  ;;  %v3947_v41 = vsel %vm3940_vm7, %v3943_v10, %v3946_v38  ;;  %vm3164_vm0 = vcmp.lt.s32.totalorder %v3163_v2, 2 }
 0xa3b   : > { %v2632_v63 = vshrl.u32 %v6989_v28, 7  ;;  %v3170_v6 = vsel %vm3168_vm15, %v3169_v1, %v3160_v37  ;;  %v3789_v19 = vsel %vm3787_vm14, %v3152_v17, %v3166_v40  ;;  %v3329_v14 = vmul.f32 %v6692_v57, %v2862_v29 }
 0xa3c   : > { %v3171_v61 = vsel %vm3164_vm0, %v3167_v13, %v3170_v6  ;;  %v3951_v27 = vmul.f32 %v6694_v45, %v3486_v35  ;;  %vm3316_vm1 = vweird.f32 %v6981_v30  ;;  %vm3161_vm2 = vweird.f32 %v6982_v23 }
 0xa3d   : > { %vm3790_vm3 = vcmp.eq.s32.totalorder %v3785_v42, 2  ;;  %vm2636_vm4 = vcmp.lt.s32.totalorder %v2632_v63, %v6990_v16  ;;  %v3017_v22 = vsel %vm3006_vm6, nan, %v3016_v26  ;;  %v3640_v44 = vsel %vm3006_vm6, nan, %v3639_v31 }
 0xa3e   : > { %vm3786_vm5 = vcmp.lt.s32.totalorder %v3785_v42, 2  ;;  %v3792_v8 = vsel %vm3790_vm3, %v3169_v1, %v3160_v37  ;;  %v3327_v34 = vsel %vm3316_vm1, nan, %v3326_v33  ;;  %v3948_v56 = vsel %vm3316_vm1, nan, %v3947_v41 }
 0xa3f   : > { %v3172_v55 = vsel %vm3161_vm2, nan, %v3171_v61  ;;  %v3793_v9 = vsel %vm3786_vm5, %v3789_v19, %v3792_v8  ;;  %v6991_v4 = vmov 0.0   ;;  %v3955_v7 = vadd.f32 %v3951_v27, %v3329_v14 }
 0xa40   : > { %v4094_v0 = vsel %vm2636_vm4, 1.0, %v6991_v4  ;;  %v2633_v43 = vadd.s32 8, %v2632_v63  ;;  %v6717_v62 = vperm.slane %v6680_v58, 1  ;;  %v3330_v48 = vmul.f32 %v6692_v57, %v3017_v22 }
 0xa41   : > { %v3952_v53 = vmul.f32 %v6694_v45, %v3640_v44  ;;  %v6725_v37 = vperm.slane %v4498_v12, 2  ;;  %v2635_v35 = vadd.s32 24, %v2632_v63  ;;  %v2653_v49 = vsub.f32 1.0, %v4094_v0 }
 0xa42   : > { %v6730_v58 = vperm.slane %v4498_v12, 4  ;;  %v3794_v17 = vsel %vm3161_vm2, nan, %v3793_v9  ;;  %vm2637_vm6 = vcmp.lt.s32.totalorder %v2633_v43, %v6990_v16  ;;  %v6739_v31 = vperm.slane %v4498_v12, 3 }
 0xa43   : > { %v6741_v2 = vperm.slane %v4498_v12, 5  ;;  %v3960_v11 = vmul.f32 %v6717_v62, %v3955_v7  ;;  %v2649_v24 = vmul.f32 %v4094_v0, %v6725_v37  ;;  %vm2639_vm7 = vcmp.lt.s32.totalorder %v2635_v35, %v6990_v16 }
 0xa44   : > { %v2658_v23 = vmul.f32 %v6730_v58, %v2653_v49  ;;  %v4095_v42 = vsel %vm2637_vm6, 1.0, %v6991_v4  ;;  %v3954_v10 = vmul.f32 %v6694_v45, %v3948_v56  ;;  %v2667_v18 = vmul.f32 %v4094_v0, %v6739_v31 }
 0xa45   : > { %v2672_v13 = vmul.f32 %v6741_v2, %v2653_v49  ;;  %v4097_v28 = vsel %vm2639_vm7, 1.0, %v6991_v4  ;;  %v6761_v41 = vmul.f32 %v6692_v57, %v3172_v55  ;;  %v6766_v14 = vmul.f32 %v6694_v45, %v3794_v17 }
 0xa46   : > { %v2662_v61 = vadd.f32 %v2658_v23, %v2649_v24  ;;  %v2656_v44 = vsub.f32 1.0, %v4097_v28  ;;  %v2668_v9 = vmul.f32 %v4095_v42, %v6739_v31  ;;  %v2652_v7 = vmul.f32 %v4097_v28, %v6725_v37 }
 0xa47   : > { %v2670_v43 = vmul.f32 %v4097_v28, %v6739_v31  ;;  %vm6992_vm1 = vcmask 130048  }
 0xa48   : > { %vm6993_vm6 = vmmov %vm6992_vm1 }
 0xa49   : > { %vm6994_vm7 = vmmov %vm6992_vm1 }
 0xa73   : > { %v2569_v52 = vpop.xlane.xlu2 %2568 }
 0xa74   : > { %v2579_v5 = vmul.f32 %v2569_v52, %v6448_v51  ;;  %v2634_v52 = vadd.s32 16, %v2632_v63  ;;  %v2654_v63 = vsub.f32 1.0, %v4095_v42 }
 0xa76   : > { %v6697_v47 = vadd.f32 1e-05, %v2579_v5  ;;  %v3332_v5 = vmul.f32 %v6692_v57, %v3327_v34  ;;  %vm2638_vm13 = vcmp.lt.s32.totalorder %v2634_v52, %v6990_v16  ;;  %v2650_v57 = vmul.f32 %v4095_v42, %v6725_v37 }
 0xa77   : > { %v2659_v55 = vmul.f32 %v6730_v58, %v2654_v63  ;;  %v4096_v45 = vsel %vm2638_vm13, 1.0, %v6991_v4  ;;  %v2673_v4 = vmul.f32 %v6741_v2, %v2654_v63 }
 0xa78   : > { %4487 = vrsqrt.f32 %v6697_v47  ;;  %vm2593_vm9 = vweird.f32 %v6697_v47  ;;  %v3958_v8 = vadd.f32 %v3954_v10, %v3332_v5  ;;  %v2651_v42 = vmul.f32 %v4096_v45, %v6725_v37 }
 0xa79   : > { %v2663_v49 = vadd.f32 %v2659_v55, %v2650_v57  ;;  %v2669_v10 = vmul.f32 %v4096_v45, %v6739_v31 }
 0xa7b   : > { %v2578_v30 = vpop.xlane.xlu2 %2577 }
 0xa7c   : > { %v2582_v60 = vmul.f32 %v2578_v30, %v6448_v51  ;;  %v2575_v59 = vpop.xlane.xlu1 %2574 }
 0xa7d   : > { %v2572_v15 = vpop.xlane.xlu0 %2571  ;;  %v2581_v54 = vmul.f32 %v2575_v59, %v6448_v51  ;;  %v2675_v59 = vmul.f32 %v6741_v2, %v2656_v44 }
 0xa7e   : > { %v4488_v32 = vpop.eup %4487  ;;  %v2580_v20 = vmul.f32 %v2572_v15, %v6448_v51  ;;  %v6728_v39 = vadd.f32 1e-05, %v2582_v60  ;;  %v6746_v51 = vadd.f32 %v3952_v53, %v3330_v48 }
 0xa7f   : > { %v2588_v29 = vmul.f32 %v4488_v32, %v6697_v47  ;;  %v6751_v21 = vadd.f32 1e-05, %v2581_v54  ;;  %vm2594_vm8 = vweird.f32 %v4488_v32  ;;  %v2676_v47 = vadd.f32 %v2672_v13, %v2667_v18 }
 0xa80   : > { %v6732_v3 = vadd.f32 1e-05, %v2580_v20  ;;  %4489 = vrsqrt.f32 %v6728_v39  ;;  %vm2595_vm12 = vmor %vm2593_vm9, %vm2594_vm8  ;;  %v2655_v20 = vsub.f32 1.0, %v4096_v45  ;;  %vm2623_vm15 = vweird.f32 %v6728_v39 }
 0xa81   : > { %v2589_v26 = vmul.f32 %v4488_v32, %v2588_v29  ;;  %vm2613_vm4 = vweird.f32 %v6751_v21  ;;  %vm6995_vm8 = vmmov %vm6992_vm1 }
 0xa82   : > { %4491 = vrsqrt.f32 %v6732_v3  ;;  %vm2603_vm14 = vweird.f32 %v6732_v3  ;;  %v2660_v52 = vmul.f32 %v6730_v58, %v2655_v20  ;;  %v2674_v18 = vmul.f32 %v6741_v2, %v2655_v20 }
 0xa83   : > { %v2590_v40 = vmul.f32 0.5, %v2589_v26  ;;  %4493 = vrsqrt.f32 %v6751_v21  ;;  %v3957_v2 = vadd.f32 %v6766_v14, %v6761_v41 }
 0xa84   : > { %v2678_v63 = vadd.f32 %v2674_v18, %v2669_v10 }
 0xa85   : > { %v2591_v1 = vsub.f32 1.5, %v2590_v40  ;;  %v2679_v40 = vadd.f32 %v2675_v59, %v2670_v43 }
 0xa86   : > { %v4490_v33 = vpop.eup %4489 }
 0xa87   : > { %v2592_v38 = vmul.f32 %v4488_v32, %v2591_v1  ;;  %v2618_v19 = vmul.f32 %v4490_v33, %v6728_v39  ;;  %vm2624_vm11 = vweird.f32 %v4490_v33  ;;  %v2677_v39 = vadd.f32 %v2673_v4, %v2668_v9 }
 0xa88   : > { %v4492_v6 = vpop.eup %4491  ;;  %vm2625_vm0 = vmor %vm2623_vm15, %vm2624_vm11 }
 0xa89   : > { %v2596_v27 = vsel %vm2595_vm12, %v4488_v32, %v2592_v38  ;;  %v2598_v22 = vmul.f32 %v4492_v6, %v6732_v3  ;;  %v2619_v56 = vmul.f32 %v4490_v33, %v2618_v19  ;;  %v4494_v30 = vpop.eup %4493  ;;  %vm2604_vm10 = vweird.f32 %v4492_v6 }
 0xa8a   : > { %v2627_v34 = vmul.f32 %v2596_v27, %v6475_v36  ;;  %v2661_v36 = vmul.f32 %v6730_v58, %v2656_v44  ;;  %v2608_v32 = vmul.f32 %v4494_v30, %v6751_v21  ;;  %vm2605_vm2 = vmor %vm2603_vm14, %vm2604_vm10  ;;  %vm2614_vm3 = vweird.f32 %v4494_v30 }
 0xa8b   : > { %v2599_v16 = vmul.f32 %v4492_v6, %v2598_v22  ;;  %v2620_v15 = vmul.f32 0.5, %v2619_v56  ;;  %v2664_v58 = vadd.f32 %v2660_v52, %v2651_v42  ;;  %vm2615_vm5 = vmor %vm2613_vm4, %vm2614_vm3 }
 0xa8c   : > { %v2680_v0 = vmul.f32 %v2662_v61, %v2627_v34  ;;  %v2609_v29 = vmul.f32 %v4494_v30, %v2608_v32  ;;  %v2665_v26 = vadd.f32 %v2661_v36, %v2652_v7 }
 0xa8d   : > { %v2600_v60 = vmul.f32 0.5, %v2599_v16  ;;  %v2621_v53 = vsub.f32 1.5, %v2620_v15 }
 0xa8e   : > { %v2684_v48 = vadd.f32 %v2680_v0, %v2676_v47  ;;  %v2610_v24 = vmul.f32 0.5, %v2609_v29 }
 0xa8f   : > { %v2601_v12 = vsub.f32 1.5, %v2600_v60  ;;  %v2622_v54 = vmul.f32 %v4490_v33, %v2621_v53 }
 0xa90   : > { %v3964_v35 = vadd.f32 %v3960_v11, %v2684_v48  ;;  %v2611_v5 = vsub.f32 1.5, %v2610_v24 }
 0xa91   : > { %v2602_v17 = vmul.f32 %v4492_v6, %v2601_v12  ;;  %v2626_v23 = vsel %vm2625_vm0, %v4490_v33, %v2622_v54  ;;  %v3963_v33 = vmul.f32 %v6717_v62, %v3958_v8 }
 0xa92   : > { %3968 = vst.msk [vmem:[%s6783_s23] sm:$0xff] %vm6992_vm1, %v3964_v35  ;;  %v2630_v1 = vmul.f32 %v2626_v23, %v6519_v25  ;;  %v2612_v28 = vmul.f32 %v4494_v30, %v2611_v5  ;;  %v3961_v25 = vmul.f32 %v6717_v62, %v6746_v51  ;;  %v3962_v51 = vmul.f32 %v6717_v62, %v3957_v2 }
 0xa93   : > { %v2606_v11 = vsel %vm2605_vm2, %v4492_v6, %v2602_v17 }
 0xa94   : > { %v2628_v3 = vmul.f32 %v2606_v11, %v6527_v50  ;;  %v2683_v13 = vmul.f32 %v2665_v26, %v2630_v1  ;;  %v2616_v38 = vsel %vm2615_vm5, %v4494_v30, %v2612_v28 }
 0xa95   : > { %v2629_v6 = vmul.f32 %v2616_v38, %v6524_v46 }
 0xa96   : > { %v2681_v37 = vmul.f32 %v2663_v49, %v2628_v3  ;;  %v2687_v50 = vadd.f32 %v2683_v13, %v2679_v40 }
 0xa97   : > { %v2682_v19 = vmul.f32 %v2664_v58, %v2629_v6 }
 0xa98   : > { %v2685_v31 = vadd.f32 %v2681_v37, %v2677_v39  ;;  %v3967_v21 = vadd.f32 %v3963_v33, %v2687_v50 }
 0xa99   : > { %v2686_v27 = vadd.f32 %v2682_v19, %v2678_v63 }
 0xa9a   : > { %v3965_v61 = vadd.f32 %v3961_v25, %v2685_v31  ;;  %3971 = vst.msk [vmem:[%s6783_s23 + $0x18] sm:$0xff] %vm6993_vm6, %v3967_v21 }
 0xa9b   : > { %v3966_v22 = vadd.f32 %v3962_v51, %v2686_v27 }
 0xa9c   : > { %3969 = vst.msk [vmem:[%s6783_s23 + $0x8] sm:$0xff] %vm6994_vm7, %v3965_v61 }
 0xa9d   : > { %3970 = vst.msk [vmem:[%s6783_s23 + $0x10] sm:$0xff] %vm6995_vm8, %v3966_v22 }
 0xa9e PF: > { %s25_s28 = sadd.s32 1, %s4519_s28  }
 0xa9f   : > { %p22_p4 = scmp.ge.s32.totalorder %s25_s28, 4  }
 0xaa1   :  { %24 = sbr.rel (!%p22_p4) target bundleno = 7 (0x7), region = 86 }

</bundles_post_ra>
